<compile_context>
chip_gen: v6e
topology: v6e:2x2x1
jax: 0.10.0
libtpu: 0.0.40
codegen_flags: <defaults>
</compile_context>

<pallas_src>
import functools

import jax
import jax.numpy as jnp
from jax.experimental import pallas as pl
from jax.experimental.pallas import tpu as pltpu


def _upsample_kernel(x_ref, o_ref, *, scale):
    """Nearest-neighbor integer upsample of one (C, tile_h, W) block.

    x_ref : (C, th, W)             input tile (batch dim squeezed)
    o_ref : (C, s*th, s*W)         output tile
    """
    x = x_ref[...]                               # (C, th, W)
    y = jnp.repeat(x, scale, axis=2)             # lane-axis replicate  -> (C, th, sW)
    o_ref[...] = jnp.repeat(y, scale, axis=1)    # sublane replicate    -> (C, s*th, sW)


def resolution_scaling(x, scale_factor=2, tile_h=None):
    """Nearest-neighbor upsample of an NCHW tensor by an integer factor.

    Matches `F.interpolate(x, scale_factor=s, mode='nearest')` for integer s.
    """
    s = int(scale_factor)
    assert s >= 1 and s == scale_factor, "integer upsampling factors only"
    # TODO(synk): fractional / <1 scale factors (nearest up/down-sampling with
    # non-integer ratios) are not implemented; StyleGAN uses scale_factor=2.

    N, C, H, W = x.shape
    itemsize = jnp.dtype(x.dtype).itemsize
    # Sublane granularity per dtype: f32 -> 8, bf16/f16 -> 16, int8/fp8 -> 32.
    sub = max(8, 32 // itemsize)

    if tile_h is None:
        if H % sub != 0:
            tile_h = H                      # full-H block (allowed by the (8,128) rule)
        else:
            # Grow the H tile while the output block stays within ~4 MiB
            # (comfortable under default double-buffering even on v7x's
            # 64 MiB VMEM once the giant operator matrices are gone).
            budget = 4 * 1024 * 1024
            tile_h = sub
            while (tile_h * 2 <= H and H % (tile_h * 2) == 0 and
                   C * s * (tile_h * 2) * s * W * itemsize <= budget):
                tile_h *= 2
            # v7x has 2 TensorCores: if the batch axis alone cannot give them
            # both work, keep at least 2 H-tiles when H allows it.
            if N < 2:
                while tile_h > sub and H // tile_h < 2:
                    tile_h //= 2
    assert H % tile_h == 0
    assert tile_h == H or tile_h % 8 == 0, "tile_h must satisfy the (8,128) rule"

    grid = (N, H // tile_h)
    out_shape = jax.ShapeDtypeStruct((N, C, s * H, s * W), x.dtype)

    in_blk_bytes = C * tile_h * W * itemsize
    out_blk_bytes = C * s * tile_h * s * W * itemsize
    # Double-buffered input + output blocks plus a little slack.
    vmem_limit = int(min(100 * 1024 * 1024,
                         max(4 * 1024 * 1024,
                             2 * (in_blk_bytes + out_blk_bytes) + (2 << 20))))
    bytes_accessed = (N * C * H * W + N * C * s * H * s * W) * itemsize

    return pl.pallas_call(
        functools.partial(_upsample_kernel, scale=s),
        grid=grid,
        in_specs=[
            # Activation tile: one batch element, tile_h input rows, full W.
            pl.BlockSpec((None, C, tile_h, W), lambda n, t: (n, 0, t, 0)),
        ],
        out_specs=pl.BlockSpec((None, C, s * tile_h, s * W),
                               lambda n, t: (n, 0, t, 0)),
        out_shape=out_shape,
        compiler_params=pltpu.CompilerParams(
            dimension_semantics=("parallel", "parallel"),
            vmem_limit_bytes=vmem_limit),
        cost_estimate=pl.CostEstimate(flops=0, transcendentals=0,
                                      bytes_accessed=int(bytes_accessed)),
    )(x)


if __name__ == "__main__":
    key = jax.random.PRNGKey(0)
    # NCHW, matching the PyTorch module's layout: batch=2, channels=4, 16x16.
    x = jax.random.normal(key, (2, 4, 16, 16), jnp.float32)

    # tile_h=8 exercises the H-tiled, multi-step parallel grid (2 x 2 steps);
    # production sizes auto-pick a larger tile that still fits VMEM.
    fwd = jax.jit(functools.partial(resolution_scaling, scale_factor=2,
                                    tile_h=8))
    out = jax.block_until_ready(fwd(x))

    # Pure-JAX reference for F.interpolate(scale_factor=2, mode='nearest').
    ref = jnp.repeat(jnp.repeat(x, 2, axis=2), 2, axis=3)

    assert out.shape == (2, 4, 32, 32), out.shape
    # Pure gather/copy in the input dtype -> bit-exact match.
    assert bool(jnp.array_equal(out, ref)), \
        float(jnp.max(jnp.abs(out - ref)))

    # Second check: auto tile_h path, bf16 dtype (16-sublane granularity),
    # N=1 so the >=2-grid-step cap kicks in.
    xb = jax.random.normal(jax.random.PRNGKey(1), (1, 4, 32, 8),
                           jnp.float32).astype(jnp.bfloat16)
    outb = jax.block_until_ready(jax.jit(resolution_scaling)(xb))
    refb = jnp.repeat(jnp.repeat(xb, 2, axis=2), 2, axis=3)
    assert outb.shape == (1, 4, 64, 16), outb.shape
    assert bool(jnp.array_equal(outb, refb))

    print("KERNEL_OK")
</pallas_src>

<mosaic_0001>
module attributes {stable_mosaic.version = 11 : i64} {
  func.func @_upsample_kernel(%arg0: i32, %arg1: i32, %arg2: memref<1x4x8x16xf32, #tpu.memory_space<vmem>>, %arg3: memref<1x4x16x32xf32, #tpu.memory_space<vmem>>) attributes {dimension_semantics = [#tpu.dimension_semantics<parallel>, #tpu.dimension_semantics<parallel>], iteration_bounds = array<i64: 2, 2>, scalar_prefetch = 0 : i64, scratch_operands = 0 : i64, tpu.core_type = #tpu.core_type<tc>, window_params = [{transform_indices = @transform_0, window_bounds = array<i64: 1, 4, 8, 16>}, {transform_indices = @transform_1, window_bounds = array<i64: 1, 4, 16, 32>}]} {
    %c0 = arith.constant 0 : index
    %c0_0 = arith.constant 0 : index
    %c0_1 = arith.constant 0 : index
    %c0_2 = arith.constant 0 : index
    %0 = vector.load %arg2[%c0, %c0_0, %c0_1, %c0_2] : memref<1x4x8x16xf32, #tpu.memory_space<vmem>>, vector<1x4x8x16xf32>
    %1 = vector.shape_cast %0 : vector<1x4x8x16xf32> to vector<4x8x16xf32>
    %2 = vector.shape_cast %1 : vector<4x8x16xf32> to vector<4x8x16x1xf32>
    %3 = vector.broadcast %2 : vector<4x8x16x1xf32> to vector<4x8x16x2xf32>
    %4 = vector.shape_cast %3 : vector<4x8x16x2xf32> to vector<4x8x32xf32>
    %5 = vector.shape_cast %4 : vector<4x8x32xf32> to vector<4x8x1x32xf32>
    %6 = vector.broadcast %5 : vector<4x8x1x32xf32> to vector<4x8x2x32xf32>
    %7 = vector.shape_cast %6 : vector<4x8x2x32xf32> to vector<4x16x32xf32>
    %c0_3 = arith.constant 0 : index
    %c0_4 = arith.constant 0 : index
    %c0_5 = arith.constant 0 : index
    %c0_6 = arith.constant 0 : index
    %8 = vector.load %arg3[%c0_3, %c0_4, %c0_5, %c0_6] : memref<1x4x16x32xf32, #tpu.memory_space<vmem>>, vector<1x4x16x32xf32>
    %9 = vector.shape_cast %8 : vector<1x4x16x32xf32> to vector<4x16x32xf32>
    %10 = vector.shape_cast %7 : vector<4x16x32xf32> to vector<1x4x16x32xf32>
    tpu.vector_store %arg3[%c0_3, %c0_4, %c0_5, %c0_6], %10 {strides = array<i32>} : memref<1x4x16x32xf32, #tpu.memory_space<vmem>>, vector<1x4x16x32xf32>,
    return
  }
  func.func @transform_0(%arg0: i32, %arg1: i32) -> (i32, i32, i32, i32) {
    %c0_i32 = arith.constant 0 : i32
    %c0_i32_0 = arith.constant 0 : i32
    %c0_i32_1 = arith.constant 0 : i32
    return %arg0, %c0_i32, %arg1, %c0_i32_0 : i32, i32, i32, i32
  }
  func.func @transform_1(%arg0: i32, %arg1: i32) -> (i32, i32, i32, i32) {
    %c0_i32 = arith.constant 0 : i32
    %c0_i32_0 = arith.constant 0 : i32
    %c0_i32_1 = arith.constant 0 : i32
    return %arg0, %c0_i32, %arg1, %c0_i32_0 : i32, i32, i32, i32
  }
}

</mosaic_0001>

<bundles_post_ra>
// kernel: resolution_scaling.1
= control target key start
LH: loop header
LB: loop body
LE: loop exit
PB: predicated region body
PF: predicated region fallthrough
CT: control target
= control target key end

     0   :  { %6 = vsyncpa [#allocation3], 0  ;;  %s12135_s0 = inlined_call_operand.hbm [shape: f32[2,4,16,16], index: 0, kind: input, shape index: {}]   ;;  %s12136_s1 = inlined_call_operand.hbm [shape: f32[2,4,32,32], index: 1, kind: output, shape index: {}]  }
   0x1   :  { %8 = vsyncpa [#allocation3 + $0x1], 0 }
   0x2   :  { %9 = vsyncpa [#allocation4], 0 }
   0x3   :  { %11 = vsyncpa [#allocation4 + $0x1], 0  ;;  %s6768_s6 = smov 0   ;;  %s6770_s7 = smov 0  }
   0x4   :  { %s6772_s8 = smov 0   ;;  %s6774_s9 = smov 0  }
   0x5   :  { %s6776_s10 = smov 0   ;;  %s6778_s11 = smov 0  }
   0x6   :  { %s6780_s12 = smov 0   ;;  %s6782_s13 = smov 0  }
   0x7 LB: > { %s6501_s14 = sadd.s32 4294967295, %s6727_s13   ;;  %s6502_s15 = sadd.s32 4294967294, %s6727_s13   ;;  %s6727_s13 = sphi %s6782_s13, %s17_s13   ;;  %s6723_s12 = sphi %s6780_s12, %s13275_s12   ;;  %s6719_s11 = sphi %s6778_s11, %s13274_s11   ;;  %s6715_s10 = sphi %s6776_s10, %s13273_s10   ;;  %s6711_s9 = sphi %s6774_s9, %s13272_s9   ;;  %s6707_s8 = sphi %s6772_s8, %s13271_s8   ;;  %s6703_s7 = sphi %s6770_s7, %s13270_s7   ;;  %s6699_s6 = sphi %s6768_s6, %s13269_s6  }
   0x8   : > { %s26_s16 = sadd.s32 1, %s6719_s11  ;;  %s29_s17 = sadd.s32 1, %s6723_s12 }
   0x9   : > { %p27_p0 = scmp.ge.s32.totalorder %s26_s16, 2  ;;  %s38_s18 = sadd.s32 1, %s6707_s8 }
   0xa   : > { %p45_p1 = scmp.ne.s32.totalorder %s6707_s8, %s6703_s7  ;;  %p46_p2 = scmp.eq.s32.totalorder %s6727_s13, 0 }
   0xb   : > { %s13277_s16 = smov (%p27_p0, %s26_s16), 0  ;;  %s13279_s17 = smov (!%p27_p0, %s29_s17), %s6723_s12 }
   0xc   : > { %s34_s19 = ssub.s32 %s6719_s11, %s13277_s16  ;;  %p6821_p3 = por %p46_p2, %p45_p1 }
   0xd   : > { %p31_p4 = scmp.ge.s32.totalorder %s13279_s17, 2  ;;  %p51_p5 = scmp.ne.s32.totalorder %s6703_s7, %s6699_s6 }
   0xe   : > { %p52_p6 = scmp.eq.s32.totalorder %s6501_s14, 0  ;;  %p77_p7 = scmp.eq.s32.totalorder %s6501_s14, 3 }
   0xf   : > { %s13281_s17 = smov (%p31_p4, %s13279_s17), 0  ;;  %p83_p10 = scmp.eq.s32.totalorder %s6502_s15, 3 }
  0x10   : > { %p6829_p8 = por %p52_p6, %p51_p5  ;;  %p6833_p9 = por %p77_p7, %p45_p1 }
  0x11   : > { %s33_s23 = ssub.s32 %s6723_s12, %s13281_s17  ;;  %p6839_p12 = por %p83_p10, %p51_p5 }
  0x12   : > { %s35_s24 = sor.u32 %s34_s19, %s33_s23  ;;  %p6535_p13 = scmp.lt.s32.totalorder %s6727_s13, 4 }
  0x13   : > { %p36_p11 = scmp.eq.s32.totalorder %s35_s24, 0  ;;  %s103_s26 = sand.u32 1, %s6707_s8  }
  0x14   : > { %s6505_s28 = sshll.u32 %s103_s26, 5  ;;  %s6506_s29 = sshll.u32 %s6723_s12, 3 }
  0x15   : > { %s6846_s27 = scalar_select %p36_p11, %s6707_s8, %s38_s18  }
  0x16   : > { %s112_s30 = sadd.s32 %s6719_s11, %s6506_s29  ;;  %s107_s2 = scalar_lea.vmem [#allocation2], %s6505_s28 }
  0x17   : > { %s115_s3 = sshll.u32 %s107_s2, 4  ;;  %s6507_s4 = sshll.u32 %s112_s30, 7  ;;  %s116_s3 = int_to_ptr.vmem [resolvable:$true] %s115_s3 }
  0x18   : > { %s114_s15 = scalar_lea.hbm %s12135_s0, %s6507_s4  ;;  %p6855_p0 = pnand %p6535_p13, %p6821_p3 }
  0x19   : > { %s104_s23 = scalar_lea.sflag [#allocation3], %s103_s26  ;;  %s6642_s18 = scalar_lea.vmem %s116_s3, 512 }
  0x1a   : > { %p6631_p1 = pneg %p6855_p0  ;;  %p6643_p2 = scmp.ne.s32.totalorder %s116_s3, %s6642_s18 }
  0x1b   : > { %s6729_s24 = smov [#allocation2]  }
  0x1c   : > { %p6645_p4 = pnand %p6643_p2, %p6631_p1  ;;  %s6647_s28 = sshll.u32 %s6729_s24, 4  ;;  %s6648_s28 = int_to_ptr.vmem [resolvable:$false] %s6647_s28 }
  0x1d   : > { %s6649_s29 = scalar_lea.vmem %s6648_s28, 1024  ;;  %p6650_p6 = scmp.lt.s32.totalorder %s116_s3, %s6648_s28 }
  0x1e   : > { %p6646_p5 = pneg %p6645_p4  ;;  %p6651_p7 = scmp.lt.s32.totalorder %s6649_s29, %s6642_s18 }
  0x20   : > { %p6652_p10 = por %p6651_p7, %p6650_p6 }
  0x22   : > { %p6653_p11 = pnand %p6652_p10, %p6646_p5 }
  0x24   : > { %6656 = shalt.err (!%p6653_p11)
}
  0x25   : > { %s6730_s20 = smov 256   ;;  %s6731_s26 = smov 128  }
  0x26   : > { %s6732_s30 = smov 8   ;;  %p6508_p3 = scmp.ge.s32.totalorder %s6727_s13, 1 }
  0x27   : > { %6530 = dma.hbm_to_vmem [thread:$0]  (!%p6855_p0), %s114_s15, 512, %s116_s3, %s104_s23, %s6730_s20, %s6731_s26, %s6732_s30  }
  0x28   : > { %p123_p13 = scmp.lt.s32.totalorder %s6727_s13, 5 }
  0x2a   : > { %p124_p1 = pnand %p6508_p3, %p123_p13 }
  0x2c   : > { %127 = sbr.rel (%p124_p1) target bundleno = 1361 (0x551), region = 24 }
  0x31   : > { %s6866_s2 = sand.u32 1, %s6703_s7  }
  0x32   : > { %s6509_s4 = sshll.u32 %s6866_s2, 5  ;;  %s130_s5 = scalar_lea.sflag [#allocation3], %s6866_s2 }
  0x33   : > { %s6870_s14 = scalar_lea.vmem [#allocation2], %s6509_s4 }
  0x34   : > { %6690 = dma.done.wait (%p6829_p8), %s130_s5, 512  }
  0x35   : > { %6692 = vsyncadd (%p6829_p8), %s130_s5, 4294966784  ;;  %v157_v0 = vlaneseq  ;;  %v153_v4 = vld [vmem:[%s6870_s14] sm:$0xff]  ;;  %v154_v19 = vld [vmem:[%s6870_s14 + $0x8] sm:$0xff]  ;;  %v6733_v42 = vmov 1983009808   ;;  %s6736_s21 = smov 2  }
  0x36   : > { %v155_v28 = vld [vmem:[%s6870_s14 + $0x10] sm:$0xff]  ;;  %v156_v37 = vld [vmem:[%s6870_s14 + $0x18] sm:$0xff]  ;;  %v511_v43 = vunpack.c.l.s4 %v6733_v42  ;;  %v6734_v46 = vmov 1934713408   ;;  %s6737_s3 = smov 4   ;;  %s6738_s15 = smov 6  }
  0x37   : > { %v6876_v1 = vshrl.u32 %v157_v0, 7  ;;  %v526_v47 = vunpack.c.l.s4 %v6734_v46  ;;  %s6739_s19 = smov 8   ;;  %s6740_s23 = smov 10   ;;  %vm5565_vm0 = vcmask 15360   ;;  %vm5598_vm1 = vcmask 31744  }
  0x38   : > { %v512_v45 = vunpack.c.0.s8 %v511_v43  ;;  %s6741_s18 = smov 12   ;;  %s6742_s24 = smov 14   ;;  %vm5631_vm2 = vcmask 48128   ;;  %vm5664_vm3 = vcmask 64512   ;;  %vm5697_vm4 = vcmask 80896  }
  0x39   : > { %v6879_v2 = vsub.s32 0, %v6876_v1  ;;  %v6882_v3 = vsub.s32 1, %v6876_v1  ;;  %v6888_v7 = vsub.s32 2, %v6876_v1  ;;  %v6892_v9 = vsub.s32 3, %v6876_v1  ;;  %s6743_s28 = smov 16   ;;  %s6744_s29 = smov 18  }
  0x3a   : > { %v6896_v11 = vsub.s32 4, %v6876_v1  ;;  %v6900_v13 = vsub.s32 5, %v6876_v1  ;;  %v6904_v15 = vsub.s32 6, %v6876_v1  ;;  %v6908_v17 = vsub.s32 7, %v6876_v1  ;;  %s6745_s20 = smov 20   ;;  %s6746_s26 = smov 22  }
  0x3b   : > { %12248 = vst [vmem:[#allocation10_spill] sm:$0xff] %v6879_v2  ;;  %v171_v5 = vrot.slane %v153_v4, %v6882_v3  ;;  %v160_v6 = vrot.slane %v153_v4, %v6879_v2  ;;  %v182_v8 = vrot.slane %v153_v4, %v6888_v7  ;;  %v193_v10 = vrot.slane %v153_v4, %v6892_v9  ;;  %s6747_s30 = smov 24   ;;  %s6748_s4 = smov 26  }
  0x3c   : > { %v204_v12 = vrot.slane %v153_v4, %v6896_v11  ;;  %v215_v14 = vrot.slane %v153_v4, %v6900_v13  ;;  %v226_v16 = vrot.slane %v153_v4, %v6904_v15  ;;  %v237_v18 = vrot.slane %v153_v4, %v6908_v17  ;;  %s6749_s5 = smov 28   ;;  %s6750_s14 = smov 30  }
  0x3d   : > { %173 = vbcast.lane.b32.xlu1 %v171_v5, 256  ;;  %162 = vbcast.lane.b32.xlu0 %v160_v6, 256  ;;  %v248_v20 = vrot.slane %v154_v19, %v6879_v2  ;;  %v259_v21 = vrot.slane %v154_v19, %v6882_v3  ;;  %v270_v22 = vrot.slane %v154_v19, %v6888_v7  ;;  %v527_v50 = vunpack.c.0.s8 %v526_v47 }
  0x3e   : > { %v281_v23 = vrot.slane %v154_v19, %v6892_v9  ;;  %v292_v24 = vrot.slane %v154_v19, %v6896_v11  ;;  %v303_v25 = vrot.slane %v154_v19, %v6900_v13  ;;  %v314_v26 = vrot.slane %v154_v19, %v6904_v15 }
  0x3f   : > { %v325_v27 = vrot.slane %v154_v19, %v6908_v17  ;;  %v336_v29 = vrot.slane %v155_v28, %v6879_v2  ;;  %v347_v30 = vrot.slane %v155_v28, %v6882_v3  ;;  %v358_v31 = vrot.slane %v155_v28, %v6888_v7 }
  0x40   : > { %v369_v32 = vrot.slane %v155_v28, %v6892_v9  ;;  %v380_v33 = vrot.slane %v155_v28, %v6896_v11  ;;  %v391_v34 = vrot.slane %v155_v28, %v6900_v13  ;;  %v402_v35 = vrot.slane %v155_v28, %v6904_v15 }
  0x41   : > { %177 = vbcast.lane.b32.xlu1 %v171_v5, 264  ;;  %166 = vbcast.lane.b32.xlu0 %v160_v6, 264  ;;  %v413_v36 = vrot.slane %v155_v28, %v6908_v17  ;;  %v424_v38 = vrot.slane %v156_v37, %v6879_v2  ;;  %v435_v39 = vrot.slane %v156_v37, %v6882_v3  ;;  %vm5730_vm5 = vcmask 97280  }
  0x42   : > { %v446_v40 = vrot.slane %v156_v37, %v6888_v7  ;;  %v457_v41 = vrot.slane %v156_v37, %v6892_v9  ;;  %v468_v44 = vrot.slane %v156_v37, %v6896_v11  ;;  %v479_v48 = vrot.slane %v156_v37, %v6900_v13 }
  0x43   : > { %v6937_v49 = vsub.s32 %v512_v45, %v6876_v1  ;;  %v490_v54 = vrot.slane %v156_v37, %v6904_v15  ;;  %v6949_v55 = vsub.s32 %v527_v50, %v6876_v1  ;;  %v501_v60 = vrot.slane %v156_v37, %v6908_v17 }
  0x44   : > { %v12218_v1 = vmov 0.0   ;;  %vm5763_vm6 = vcmask 113664   ;;  %vm5796_vm7 = vcmask 130048   ;;  %vm5829_vm8 = vcmask 146432  }
  0x45   : > { %188 = vbcast.lane.b32.xlu1 %v182_v8, 264  ;;  %184 = vbcast.lane.b32.xlu0 %v182_v8, 256  ;;  %12249 = vst [vmem:[#allocation11_spill] sm:$0xff] %v6937_v49  ;;  %vm5862_vm9 = vcmask 162816   ;;  %vm5895_vm10 = vcmask 179200   ;;  %vm5928_vm11 = vcmask 195584  }
  0x46   : > { %vm5961_vm12 = vcmask 211968   ;;  %vm5994_vm13 = vcmask 228352   ;;  %vm6027_vm14 = vcmask 244736   ;;  %vm6364_vm15 = vcmask 261120  }
  0x49   : > { %199 = vbcast.lane.b32.xlu1 %v193_v10, 264  ;;  %195 = vbcast.lane.b32.xlu0 %v193_v10, 256 }
  0x4d   : > { %210 = vbcast.lane.b32.xlu1 %v204_v12, 264  ;;  %206 = vbcast.lane.b32.xlu0 %v204_v12, 256 }
  0x51   : > { %221 = vbcast.lane.b32.xlu1 %v215_v14, 264  ;;  %217 = vbcast.lane.b32.xlu0 %v215_v14, 256 }
  0x55   : > { %232 = vbcast.lane.b32.xlu1 %v226_v16, 264  ;;  %228 = vbcast.lane.b32.xlu0 %v226_v16, 256 }
  0x59   : > { %243 = vbcast.lane.b32.xlu1 %v237_v18, 264  ;;  %239 = vbcast.lane.b32.xlu0 %v237_v18, 256 }
  0x5d   : > { %254 = vbcast.lane.b32.xlu1 %v248_v20, 264  ;;  %250 = vbcast.lane.b32.xlu0 %v248_v20, 256 }
  0x61   : > { %265 = vbcast.lane.b32.xlu1 %v259_v21, 264  ;;  %261 = vbcast.lane.b32.xlu0 %v259_v21, 256 }
  0x65   : > { %276 = vbcast.lane.b32.xlu1 %v270_v22, 264  ;;  %272 = vbcast.lane.b32.xlu0 %v270_v22, 256 }
  0x69   : > { %287 = vbcast.lane.b32.xlu1 %v281_v23, 264  ;;  %283 = vbcast.lane.b32.xlu0 %v281_v23, 256 }
  0x6d   : > { %298 = vbcast.lane.b32.xlu1 %v292_v24, 264  ;;  %294 = vbcast.lane.b32.xlu0 %v292_v24, 256 }
  0x71   : > { %309 = vbcast.lane.b32.xlu1 %v303_v25, 264  ;;  %305 = vbcast.lane.b32.xlu0 %v303_v25, 256 }
  0x75   : > { %320 = vbcast.lane.b32.xlu1 %v314_v26, 264  ;;  %316 = vbcast.lane.b32.xlu0 %v314_v26, 256 }
  0x79   : > { %331 = vbcast.lane.b32.xlu1 %v325_v27, 264  ;;  %327 = vbcast.lane.b32.xlu0 %v325_v27, 256 }
  0x7d   : > { %342 = vbcast.lane.b32.xlu1 %v336_v29, 264  ;;  %338 = vbcast.lane.b32.xlu0 %v336_v29, 256 }
  0x81   : > { %353 = vbcast.lane.b32.xlu1 %v347_v30, 264  ;;  %349 = vbcast.lane.b32.xlu0 %v347_v30, 256 }
  0x85   : > { %364 = vbcast.lane.b32.xlu1 %v358_v31, 264  ;;  %360 = vbcast.lane.b32.xlu0 %v358_v31, 256 }
  0x89   : > { %375 = vbcast.lane.b32.xlu1 %v369_v32, 264  ;;  %371 = vbcast.lane.b32.xlu0 %v369_v32, 256 }
  0x8d   : > { %386 = vbcast.lane.b32.xlu1 %v380_v33, 264  ;;  %382 = vbcast.lane.b32.xlu0 %v380_v33, 256 }
  0x91   : > { %397 = vbcast.lane.b32.xlu1 %v391_v34, 264  ;;  %393 = vbcast.lane.b32.xlu0 %v391_v34, 256 }
  0x95   : > { %408 = vbcast.lane.b32.xlu1 %v402_v35, 264  ;;  %404 = vbcast.lane.b32.xlu0 %v402_v35, 256 }
  0x99   : > { %419 = vbcast.lane.b32.xlu1 %v413_v36, 264  ;;  %415 = vbcast.lane.b32.xlu0 %v413_v36, 256 }
  0x9d   : > { %430 = vbcast.lane.b32.xlu1 %v424_v38, 264  ;;  %426 = vbcast.lane.b32.xlu0 %v424_v38, 256 }
  0xa1   : > { %441 = vbcast.lane.b32.xlu1 %v435_v39, 264  ;;  %437 = vbcast.lane.b32.xlu0 %v435_v39, 256 }
  0xa5   : > { %452 = vbcast.lane.b32.xlu1 %v446_v40, 264  ;;  %448 = vbcast.lane.b32.xlu0 %v446_v40, 256 }
  0xa9   : > { %463 = vbcast.lane.b32.xlu1 %v457_v41, 264  ;;  %459 = vbcast.lane.b32.xlu0 %v457_v41, 256 }
  0xad   : > { %474 = vbcast.lane.b32.xlu1 %v468_v44, 264  ;;  %470 = vbcast.lane.b32.xlu0 %v468_v44, 256 }
  0xaf   : > { %v6939_v51 = vpop.permute.xlu1 %173  ;;  %v6941_v52 = vpop.permute.xlu0 %162 }
  0xb0   : > { %v6945_v53 = vrot.slane %v6939_v51, %v6937_v49  ;;  %v6953_v56 = vrot.slane %v6941_v52, %v6937_v49 }
  0xb1   : > { %485 = vbcast.lane.b32.xlu1 %v479_v48, 264  ;;  %481 = vbcast.lane.b32.xlu0 %v479_v48, 256 }
  0xb2   : > { %v6961_v59 = vrot.slane %v6945_v53, %v6949_v55  ;;  %v6966_v61 = vrot.slane %v6953_v56, %v6949_v55 }
  0xb3   : > { %v6955_v57 = vpop.permute.xlu1 %177  ;;  %v6957_v58 = vpop.permute.xlu0 %166 }
  0xb4   : > { %12250 = vst [vmem:[#allocation12_spill] sm:$0xff] %v6955_v57  ;;  %12251 = vst [vmem:[#allocation13_spill] sm:$0xff] %v6957_v58  ;;  %v652_v3 = vcombine.high %v6961_v59, %v12218_v1  ;;  %v554_v7 = vcombine.high %v6966_v61, %v12218_v1 }
  0xb5   : > { %12252 = vst [vmem:[#allocation14_spill] sm:$0xff] %v6961_v59  ;;  %496 = vbcast.lane.b32.xlu1 %v490_v54, 264  ;;  %492 = vbcast.lane.b32.xlu0 %v490_v54, 256  ;;  %12253 = vst [vmem:[#allocation15_spill] sm:$0xff] %v6966_v61 }
  0xb7   : > { %v6968_v62 = vpop.permute.xlu1 %188  ;;  %v6970_v63 = vpop.permute.xlu0 %184 }
  0xb8   : > { %12254 = vst [vmem:[#allocation16_spill] sm:$0xff] %v6968_v62  ;;  %v6974_v0 = vrot.slane %v6970_v63, %v6937_v49 }
  0xb9   : > { %507 = vbcast.lane.b32.xlu1 %v501_v60, 264  ;;  %503 = vbcast.lane.b32.xlu0 %v501_v60, 256 }
  0xba   : > { %v6980_v4 = vrot.slane %v6974_v0, %v6949_v55 }
  0xbb   : > { %v6982_v5 = vpop.permute.xlu1 %199  ;;  %v6984_v6 = vpop.permute.xlu0 %195 }
  0xbc   : > { %12255 = vst [vmem:[#allocation17_spill] sm:$0xff] %v6980_v4  ;;  %12256 = vst [vmem:[#allocation18_spill] sm:$0xff] %v6982_v5  ;;  %v6990_v8 = vrot.slane %v6984_v6, %v6937_v49  ;;  %v750_v12 = vcombine.high %v6980_v4, %v12218_v1 }
  0xbd   : > { %3679 = vrot.lane.b32.xlu1 %v652_v3, %s6736_s21  ;;  %3677 = vrot.lane.b32.xlu0 %v554_v7, %s6736_s21 }
  0xbe   : > { %v6996_v9 = vrot.slane %v6990_v8, %v6949_v55 }
  0xbf   : > { %v6998_v10 = vpop.permute.xlu1 %210  ;;  %v7000_v11 = vpop.permute.xlu0 %206 }
  0xc0   : > { %12257 = vst [vmem:[#allocation19_spill] sm:$0xff] %v6996_v9  ;;  %12258 = vst [vmem:[#allocation20_spill] sm:$0xff] %v6998_v10  ;;  %v7006_v13 = vrot.slane %v7000_v11, %v6937_v49  ;;  %v848_v14 = vcombine.high %v6996_v9, %v12218_v1 }
  0xc1   : > { %3681 = vrot.lane.b32.xlu0 %v750_v12, %s6736_s21 }
  0xc2   : > { %v7013_v15 = vrot.slane %v7006_v13, %v6949_v55  ;;  %3683 = vrot.lane.b32.xlu1 %v848_v14, %s6736_s21 }
  0xc3   : > { %v7016_v16 = vpop.permute.xlu0 %217  ;;  %v7018_v17 = vpop.permute.xlu1 %221 }
  0xc4   : > { %12259 = vst [vmem:[#allocation21_spill] sm:$0xff] %v7013_v15  ;;  %12260 = vst [vmem:[#allocation22_spill] sm:$0xff] %v7018_v17  ;;  %v7022_v18 = vrot.slane %v7016_v16, %v6937_v49  ;;  %v946_v19 = vcombine.high %v7013_v15, %v12218_v1 }
  0xc6   : > { %v7028_v20 = vrot.slane %v7022_v18, %v6949_v55  ;;  %3685 = vrot.lane.b32.xlu0 %v946_v19, %s6736_s21 }
  0xc7   : > { %v7031_v21 = vpop.permute.xlu0 %228  ;;  %v7039_v24 = vpop.permute.xlu1 %232 }
  0xc8   : > { %12261 = vst [vmem:[#allocation23_spill] sm:$0xff] %v7028_v20  ;;  %v7035_v22 = vrot.slane %v7031_v21, %v6937_v49  ;;  %v1044_v23 = vcombine.high %v7028_v20, %v12218_v1  ;;  %12262 = vst [vmem:[#allocation24_spill] sm:$0xff] %v7039_v24 }
  0xca   : > { %v7043_v25 = vrot.slane %v7035_v22, %v6949_v55  ;;  %3687 = vrot.lane.b32.xlu1 %v1044_v23, %s6736_s21 }
  0xcb   : > { %v7046_v26 = vpop.permute.xlu0 %239  ;;  %v7061_v31 = vpop.permute.xlu1 %243 }
  0xcc   : > { %12263 = vst [vmem:[#allocation25_spill] sm:$0xff] %v7043_v25  ;;  %v7050_v27 = vrot.slane %v7046_v26, %v6937_v49  ;;  %v1142_v28 = vcombine.high %v7043_v25, %v12218_v1  ;;  %12265 = vst [vmem:[#allocation27_spill] sm:$0xff] %v7061_v31 }
  0xce   : > { %v7056_v29 = vrot.slane %v7050_v27, %v6949_v55  ;;  %3689 = vrot.lane.b32.xlu0 %v1142_v28, %s6736_s21 }
  0xcf   : > { %v7059_v30 = vpop.permute.xlu0 %250  ;;  %v7082_v38 = vpop.permute.xlu1 %254 }
  0xd0   : > { %12264 = vst [vmem:[#allocation26_spill] sm:$0xff] %v7056_v29  ;;  %v7065_v32 = vrot.slane %v7059_v30, %v6937_v49  ;;  %v1240_v33 = vcombine.high %v7056_v29, %v12218_v1  ;;  %12267 = vst [vmem:[#allocation29_spill] sm:$0xff] %v7082_v38 }
  0xd2   : > { %v7071_v34 = vrot.slane %v7065_v32, %v6949_v55  ;;  %3691 = vrot.lane.b32.xlu1 %v1240_v33, %s6736_s21 }
  0xd3   : > { %v7074_v35 = vpop.permute.xlu0 %261  ;;  %v7104_v45 = vpop.permute.xlu1 %265 }
  0xd4   : > { %12266 = vst [vmem:[#allocation28_spill] sm:$0xff] %v7071_v34  ;;  %v7078_v36 = vrot.slane %v7074_v35, %v6937_v49  ;;  %v1338_v37 = vcombine.high %v7071_v34, %v12218_v1  ;;  %12270 = vst [vmem:[#allocation32_spill] sm:$0xff] %v7104_v45 }
  0xd6   : > { %v7086_v39 = vrot.slane %v7078_v36, %v6949_v55  ;;  %3693 = vrot.lane.b32.xlu0 %v1338_v37, %s6736_s21 }
  0xd7   : > { %v7089_v40 = vpop.permute.xlu0 %272  ;;  %v7125_v3 = vpop.permute.xlu1 %276 }
  0xd8   : > { %12268 = vst [vmem:[#allocation30_spill] sm:$0xff] %v7086_v39  ;;  %v7093_v41 = vrot.slane %v7089_v40, %v6937_v49  ;;  %v1436_v42 = vcombine.high %v7086_v39, %v12218_v1  ;;  %12272 = vst [vmem:[#allocation34_spill] sm:$0xff] %v7125_v3 }
  0xda   : > { %v7099_v43 = vrot.slane %v7093_v41, %v6949_v55  ;;  %3695 = vrot.lane.b32.xlu1 %v1436_v42, %s6736_s21 }
  0xdb   : > { %v7102_v44 = vpop.permute.xlu0 %283  ;;  %v7147_v33 = vpop.permute.xlu1 %287 }
  0xdc   : > { %12269 = vst [vmem:[#allocation31_spill] sm:$0xff] %v7099_v43  ;;  %v7108_v46 = vrot.slane %v7102_v44, %v6937_v49  ;;  %v1534_v47 = vcombine.high %v7099_v43, %v12218_v1  ;;  %12275 = vst [vmem:[#allocation37_spill] sm:$0xff] %v7147_v33 }
  0xde   : > { %v7114_v48 = vrot.slane %v7108_v46, %v6949_v55  ;;  %3697 = vrot.lane.b32.xlu0 %v1534_v47, %s6736_s21 }
  0xdf   : > { %v7117_v50 = vpop.permute.xlu0 %294 }
  0xe0   : > { %12271 = vst [vmem:[#allocation33_spill] sm:$0xff] %v7114_v48  ;;  %v7121_v54 = vrot.slane %v7117_v50, %v6937_v49  ;;  %v1632_v60 = vcombine.high %v7114_v48, %v12218_v1 }
  0xe2   : > { %v7129_v7 = vrot.slane %v7121_v54, %v6949_v55  ;;  %3699 = vrot.lane.b32.xlu1 %v1632_v60, %s6736_s21 }
  0xe3   : > { %v7132_v12 = vpop.permute.xlu0 %305 }
  0xe4   : > { %12273 = vst [vmem:[#allocation35_spill] sm:$0xff] %v7129_v7  ;;  %v7136_v14 = vrot.slane %v7132_v12, %v6937_v49  ;;  %v1730_v19 = vcombine.high %v7129_v7, %v12218_v1  ;;  %v7168_v7 = vpop.permute.xlu1 %298 }
  0xe5   : > { %12277 = vst [vmem:[#allocation39_spill] sm:$0xff] %v7168_v7 }
  0xe6   : > { %v7142_v23 = vrot.slane %v7136_v14, %v6949_v55  ;;  %3701 = vrot.lane.b32.xlu0 %v1730_v19, %s6736_s21 }
  0xe7   : > { %v7145_v28 = vpop.permute.xlu0 %316 }
  0xe8   : > { %12274 = vst [vmem:[#allocation36_spill] sm:$0xff] %v7142_v23  ;;  %v7151_v37 = vrot.slane %v7145_v28, %v6937_v49  ;;  %v1828_v42 = vcombine.high %v7142_v23, %v12218_v1  ;;  %v7190_v34 = vpop.permute.xlu1 %309 }
  0xe9   : > { %12280 = vst [vmem:[#allocation42_spill] sm:$0xff] %v7190_v34 }
  0xea   : > { %v7157_v47 = vrot.slane %v7151_v37, %v6949_v55  ;;  %3703 = vrot.lane.b32.xlu1 %v1828_v42, %s6736_s21 }
  0xeb   : > { %v7160_v60 = vpop.permute.xlu0 %327 }
  0xec   : > { %12276 = vst [vmem:[#allocation38_spill] sm:$0xff] %v7157_v47  ;;  %v7164_v19 = vrot.slane %v7160_v60, %v6937_v49  ;;  %v1926_v2 = vcombine.high %v7157_v47, %v12218_v1  ;;  %v7211_v15 = vpop.permute.xlu1 %320 }
  0xed   : > { %12282 = vst [vmem:[#allocation44_spill] sm:$0xff] %v7211_v15 }
  0xee   : > { %v7172_v23 = vrot.slane %v7164_v19, %v6949_v55  ;;  %3705 = vrot.lane.b32.xlu0 %v1926_v2, %s6736_s21 }
  0xef   : > { %v7175_v48 = vpop.permute.xlu0 %338 }
  0xf0   : > { %12278 = vst [vmem:[#allocation40_spill] sm:$0xff] %v7172_v23  ;;  %v7179_v42 = vrot.slane %v7175_v48, %v6937_v49  ;;  %v2024_v43 = vcombine.high %v7172_v23, %v12218_v1  ;;  %v7233_v59 = vpop.permute.xlu1 %331 }
  0xf1   : > { %12285 = vst [vmem:[#allocation47_spill] sm:$0xff] %v7233_v59 }
  0xf2   : > { %v7185_v47 = vrot.slane %v7179_v42, %v6949_v55  ;;  %3707 = vrot.lane.b32.xlu1 %v2024_v43, %s6736_s21 }
  0xf3   : > { %v7188_v39 = vpop.permute.xlu0 %349 }
  0xf4   : > { %12279 = vst [vmem:[#allocation41_spill] sm:$0xff] %v7185_v47  ;;  %v7194_v2 = vrot.slane %v7188_v39, %v6937_v49  ;;  %v2122_v29 = vcombine.high %v7185_v47, %v12218_v1  ;;  %v7254_v7 = vpop.permute.xlu1 %342 }
  0xf5   : > { %12287 = vst [vmem:[#allocation49_spill] sm:$0xff] %v7254_v7 }
  0xf6   : > { %v7200_v23 = vrot.slane %v7194_v2, %v6949_v55  ;;  %3709 = vrot.lane.b32.xlu0 %v2122_v29, %s6736_s21 }
  0xf7   : > { %v7203_v25 = vpop.permute.xlu0 %360 }
  0xf8   : > { %12281 = vst [vmem:[#allocation43_spill] sm:$0xff] %v7200_v23  ;;  %v7207_v43 = vrot.slane %v7203_v25, %v6937_v49  ;;  %v2220_v20 = vcombine.high %v7200_v23, %v12218_v1  ;;  %v7276_v45 = vpop.permute.xlu1 %353 }
  0xf9   : > { %12292 = vst [vmem:[#allocation54_spill] sm:$0xff] %v7276_v45 }
  0xfa   : > { %v7215_v47 = vrot.slane %v7207_v43, %v6949_v55  ;;  %3711 = vrot.lane.b32.xlu1 %v2220_v20, %s6736_s21 }
  0xfb   : > { %v7218_v9 = vpop.permute.xlu0 %371 }
  0xfc   : > { %12283 = vst [vmem:[#allocation45_spill] sm:$0xff] %v7215_v47  ;;  %v7222_v29 = vrot.slane %v7218_v9, %v6937_v49  ;;  %v2318_v4 = vcombine.high %v7215_v47, %v12218_v1  ;;  %v7297_v24 = vpop.permute.xlu1 %364 }
  0xfd   : > { %12295 = vst [vmem:[#allocation57_spill] sm:$0xff] %v7297_v24 }
  0xfe   : > { %v7228_v23 = vrot.slane %v7222_v29, %v6949_v55  ;;  %3713 = vrot.lane.b32.xlu0 %v2318_v4, %s6736_s21 }
  0xff   : > { %v7231_v61 = vpop.permute.xlu0 %382 }
 0x100   : > { %12284 = vst [vmem:[#allocation46_spill] sm:$0xff] %v7228_v23  ;;  %v7237_v20 = vrot.slane %v7231_v61, %v6937_v49  ;;  %v2416_v15 = vcombine.high %v7228_v23, %v12218_v1  ;;  %v7319_v5 = vpop.permute.xlu1 %375 }
 0x101   : > { %12300 = vst [vmem:[#allocation62_spill] sm:$0xff] %v7319_v5 }
 0x102   : > { %v7243_v47 = vrot.slane %v7237_v20, %v6949_v55  ;;  %3715 = vrot.lane.b32.xlu1 %v2416_v15, %s6736_s21 }
 0x103   : > { %v7246_v34 = vpop.permute.xlu0 %393 }
 0x104   : > { %12286 = vst [vmem:[#allocation48_spill] sm:$0xff] %v7243_v47  ;;  %v7250_v4 = vrot.slane %v7246_v34, %v6937_v49  ;;  %v2514_v59 = vcombine.high %v7243_v47, %v12218_v1  ;;  %v7340_v58 = vpop.permute.xlu1 %386 }
 0x105   : > { %12303 = vst [vmem:[#allocation65_spill] sm:$0xff] %v7340_v58 }
 0x106   : > { %v7258_v23 = vrot.slane %v7250_v4, %v6949_v55  ;;  %3717 = vrot.lane.b32.xlu0 %v2514_v59, %s6736_s21 }
 0x107   : > { %v7261_v33 = vpop.permute.xlu0 %404 }
 0x108   : > { %12288 = vst [vmem:[#allocation50_spill] sm:$0xff] %v7258_v23  ;;  %12289 = vst [vmem:[#allocation51_spill] sm:$0xff] %v7261_v33  ;;  %v7265_v15 = vrot.slane %v7261_v33, %v6937_v49  ;;  %v2612_v3 = vcombine.high %v7258_v23, %v12218_v1  ;;  %v720_v33 = vcombine.high %v6974_v0, %v12218_v1 }
 0x109   : > { %v916_v0 = vcombine.high %v7006_v13, %v12218_v1  ;;  %v1112_v13 = vcombine.high %v7035_v22, %v12218_v1 }
 0x10a   : > { %v7271_v47 = vrot.slane %v7265_v15, %v6949_v55  ;;  %3719 = vrot.lane.b32.xlu1 %v2612_v3, %s6736_s21 }
 0x10b   : > { %v7274_v7 = vpop.permute.xlu0 %415  ;;  %v7456_v22 = vrot.slane %v1112_v13, %v6949_v55 }
 0x10c   : > { %12290 = vst [vmem:[#allocation52_spill] sm:$0xff] %v7271_v47  ;;  %12291 = vst [vmem:[#allocation53_spill] sm:$0xff] %v7274_v7  ;;  %v7280_v59 = vrot.slane %v7274_v7, %v6937_v49  ;;  %v2710_v38 = vcombine.high %v7271_v47, %v12218_v1 }
 0x10e   : > { %v7286_v23 = vrot.slane %v7280_v59, %v6949_v55  ;;  %3721 = vrot.lane.b32.xlu0 %v2710_v38, %s6736_s21 }
 0x10f   : > { %v7289_v31 = vpop.permute.xlu0 %426 }
 0x110   : > { %12293 = vst [vmem:[#allocation55_spill] sm:$0xff] %v7286_v23  ;;  %12294 = vst [vmem:[#allocation56_spill] sm:$0xff] %v7289_v31  ;;  %v7293_v3 = vrot.slane %v7289_v31, %v6937_v49  ;;  %v2808_v45 = vcombine.high %v7286_v23, %v12218_v1 }
 0x112   : > { %v7301_v47 = vrot.slane %v7293_v3, %v6949_v55  ;;  %3723 = vrot.lane.b32.xlu1 %v2808_v45, %s6736_s21 }
 0x113   : > { %v7304_v17 = vpop.permute.xlu0 %437 }
 0x114   : > { %12296 = vst [vmem:[#allocation58_spill] sm:$0xff] %v7301_v47  ;;  %12297 = vst [vmem:[#allocation59_spill] sm:$0xff] %v7304_v17  ;;  %v7308_v38 = vrot.slane %v7304_v17, %v6937_v49  ;;  %v2906_v10 = vcombine.high %v7301_v47, %v12218_v1  ;;  %v7362_v17 = vpop.permute.xlu1 %397 }
 0x115   : > { %12308 = vst [vmem:[#allocation70_spill] sm:$0xff] %v7362_v17 }
 0x116   : > { %v7314_v23 = vrot.slane %v7308_v38, %v6949_v55  ;;  %3725 = vrot.lane.b32.xlu0 %v2906_v10, %s6736_s21 }
 0x117   : > { %v7317_v24 = vpop.permute.xlu0 %448 }
 0x118   : > { %12298 = vst [vmem:[#allocation60_spill] sm:$0xff] %v7314_v23  ;;  %12299 = vst [vmem:[#allocation61_spill] sm:$0xff] %v7317_v24  ;;  %v7323_v45 = vrot.slane %v7317_v24, %v6937_v49  ;;  %v3004_v62 = vcombine.high %v7314_v23, %v12218_v1 }
 0x11a   : > { %v7329_v47 = vrot.slane %v7323_v45, %v6949_v55  ;;  %3727 = vrot.lane.b32.xlu1 %v3004_v62, %s6736_s21 }
 0x11b   : > { %v7332_v57 = vpop.permute.xlu0 %459 }
 0x11c   : > { %12301 = vst [vmem:[#allocation63_spill] sm:$0xff] %v7329_v47  ;;  %12302 = vst [vmem:[#allocation64_spill] sm:$0xff] %v7332_v57  ;;  %v7336_v10 = vrot.slane %v7332_v57, %v6937_v49  ;;  %v3102_v5 = vcombine.high %v7329_v47, %v12218_v1 }
 0x11e   : > { %v7344_v23 = vrot.slane %v7336_v10, %v6949_v55  ;;  %3729 = vrot.lane.b32.xlu0 %v3102_v5, %s6736_s21 }
 0x11f   : > { %v7347_v24 = vpop.permute.xlu0 %470 }
 0x120   : > { %12304 = vst [vmem:[#allocation66_spill] sm:$0xff] %v7344_v23  ;;  %12305 = vst [vmem:[#allocation67_spill] sm:$0xff] %v7347_v24  ;;  %v7351_v62 = vrot.slane %v7347_v24, %v6937_v49  ;;  %v3200_v57 = vcombine.high %v7344_v23, %v12218_v1 }
 0x122   : > { %v7357_v47 = vrot.slane %v7351_v62, %v6949_v55  ;;  %3731 = vrot.lane.b32.xlu1 %v3200_v57, %s6736_s21 }
 0x123   : > { %v7360_v58 = vpop.permute.xlu0 %481 }
 0x124   : > { %12306 = vst [vmem:[#allocation68_spill] sm:$0xff] %v7357_v47  ;;  %12307 = vst [vmem:[#allocation69_spill] sm:$0xff] %v7360_v58  ;;  %v7366_v5 = vrot.slane %v7360_v58, %v6937_v49  ;;  %v3298_v24 = vcombine.high %v7357_v47, %v12218_v1  ;;  %v7383_v58 = vpop.permute.xlu1 %408 }
 0x125   : > { %12311 = vst [vmem:[#allocation73_spill] sm:$0xff] %v7383_v58 }
 0x126   : > { %v7372_v23 = vrot.slane %v7366_v5, %v6949_v55  ;;  %3733 = vrot.lane.b32.xlu0 %v3298_v24, %s6736_s21  ;;  %v524_v24 = vcombine.high %v6953_v56, %v12218_v1 }
 0x127   : > { %v7375_v31 = vpop.permute.xlu0 %492 }
 0x128   : > { %12309 = vst [vmem:[#allocation71_spill] sm:$0xff] %v7372_v23  ;;  %12310 = vst [vmem:[#allocation72_spill] sm:$0xff] %v7375_v31  ;;  %v7379_v57 = vrot.slane %v7375_v31, %v6937_v49  ;;  %v3396_v17 = vcombine.high %v7372_v23, %v12218_v1  ;;  %v7409_v56 = vpop.permute.xlu1 %419 }
 0x129   : > { %12315 = vst [vmem:[#allocation77_spill] sm:$0xff] %v7409_v56 }
 0x12a   : > { %v7387_v47 = vrot.slane %v7379_v57, %v6949_v55  ;;  %3735 = vrot.lane.b32.xlu1 %v3396_v17, %s6736_s21  ;;  %v622_v17 = vcombine.high %v6945_v53, %v12218_v1  ;;  %v818_v53 = vcombine.high %v6990_v8, %v12218_v1  ;;  %v1014_v8 = vcombine.high %v7022_v18, %v12218_v1 }
 0x12b   : > { %v7390_v7 = vpop.permute.xlu0 %503  ;;  %v1308_v18 = vcombine.high %v7065_v32, %v12218_v1  ;;  %v1504_v32 = vcombine.high %v7093_v41, %v12218_v1  ;;  %v1700_v41 = vcombine.high %v7121_v54, %v12218_v1 }
 0x12c   : > { %12312 = vst [vmem:[#allocation74_spill] sm:$0xff] %v7387_v47  ;;  %12313 = vst [vmem:[#allocation75_spill] sm:$0xff] %v7390_v7  ;;  %v7396_v31 = vrot.slane %v7390_v7, %v6937_v49  ;;  %v3494_v23 = vcombine.high %v7387_v47, %v12218_v1  ;;  %v7412_v7 = vrot.slane %v524_v24, %v6949_v55  ;;  %v7429_v56 = vpop.permute.xlu1 %430 }
 0x12d   : > { %v7427_v24 = vrot.slane %v622_v17, %v6949_v55  ;;  %12316 = vst [vmem:[#allocation78_spill] sm:$0xff] %v7429_v56  ;;  %v1210_v17 = vcombine.high %v7050_v27, %v12218_v1  ;;  %v1406_v27 = vcombine.high %v7078_v36, %v12218_v1  ;;  %v1602_v36 = vcombine.high %v7108_v46, %v12218_v1 }
 0x12e   : > { %v7402_v58 = vrot.slane %v7396_v31, %v6949_v55  ;;  %3737 = vrot.lane.b32.xlu0 %v3494_v23, %s6736_s21  ;;  %v7424_v23 = vrot.slane %v720_v33, %v6949_v55  ;;  %v7440_v33 = vrot.slane %v916_v0, %v6949_v55  ;;  %v7470_v0 = vrot.slane %v1308_v18, %v6949_v55 }
 0x12f   : > { %v7473_v13 = vrot.slane %v1210_v17, %v6949_v55  ;;  %v7486_v18 = vrot.slane %v1504_v32, %v6949_v55  ;;  %v7489_v17 = vrot.slane %v1406_v27, %v6949_v55  ;;  %v1896_v46 = vcombine.high %v7151_v37, %v12218_v1 }
 0x130   : > { %12314 = vst [vmem:[#allocation76_spill] sm:$0xff] %v7402_v58  ;;  %v3592_v47 = vcombine.high %v7402_v58, %v12218_v1  ;;  %v7453_v58 = vpop.permute.xlu1 %441  ;;  %v7502_v54 = vrot.slane %v1700_v41, %v6949_v55  ;;  %v7505_v27 = vrot.slane %v1602_v36, %v6949_v55  ;;  %v2092_v37 = vcombine.high %v7179_v42, %v12218_v1 }
 0x131   : > { %12317 = vst [vmem:[#allocation79_spill] sm:$0xff] %v7453_v58  ;;  %v7516_v32 = vrot.slane %v1896_v46, %v6949_v55  ;;  %v2288_v42 = vcombine.high %v7207_v43, %v12218_v1 }
 0x132   : > { %3805 = vrot.lane.b32.xlu0 %v7412_v7, %s6737_s3  ;;  %3739 = vrot.lane.b32.xlu1 %v3592_v47, %s6736_s21  ;;  %v7443_v47 = vrot.slane %v818_v53, %v6949_v55  ;;  %v7459_v53 = vrot.slane %v1014_v8, %v6949_v55  ;;  %v7532_v46 = vrot.slane %v2092_v37, %v6949_v55  ;;  %s6510_s21 = sshll.u32 %s6866_s2, 6 }
 0x133   : > { %v7548_v43 = vrot.slane %v2288_v42, %v6949_v55 }
 0x134   : > { %v7475_v8 = vpop.permute.xlu1 %452 }
 0x135   : > { %12318 = vst [vmem:[#allocation80_spill] sm:$0xff] %v7475_v8  ;;  %v1798_v8 = vcombine.high %v7136_v14, %v12218_v1  ;;  %v1994_v14 = vcombine.high %v7164_v19, %v12218_v1  ;;  %v2190_v19 = vcombine.high %v7194_v2, %v12218_v1  ;;  %v2484_v2 = vcombine.high %v7237_v20, %v12218_v1 }
 0x136   : > { %3809 = vrot.lane.b32.xlu0 %v7424_v23, %s6737_s3  ;;  %3807 = vrot.lane.b32.xlu1 %v7427_v24, %s6737_s3  ;;  %v2680_v20 = vcombine.high %v7265_v15, %v12218_v1  ;;  %v2876_v15 = vcombine.high %v7293_v3, %v12218_v1  ;;  %v7593_v3 = vpop.permute.xlu0 %3677 }
 0x137   : > { %v7519_v41 = vrot.slane %v1798_v8, %v6949_v55  ;;  %v7535_v8 = vrot.slane %v1994_v14, %v6949_v55  ;;  %v7551_v14 = vrot.slane %v2190_v19, %v6949_v55  ;;  %v7562_v37 = vrot.slane %v2484_v2, %v6949_v55  ;;  %12324 = vst [vmem:[#allocation86_spill] sm:$0xff] %v7593_v3 }
 0x138   : > { %v7499_v58 = vpop.permute.xlu1 %463  ;;  %v7578_v2 = vrot.slane %v2680_v20, %v6949_v55  ;;  %v7596_v20 = vrot.slane %v2876_v15, %v6949_v55 }
 0x139   : > { %12319 = vst [vmem:[#allocation81_spill] sm:$0xff] %v7499_v58 }
 0x13a   : > { %3813 = vrot.lane.b32.xlu0 %v7440_v33, %s6737_s3  ;;  %3811 = vrot.lane.b32.xlu1 %v7443_v47, %s6737_s3 }
 0x13c   : > { %v7521_v36 = vpop.permute.xlu1 %474 }
 0x13d   : > { %12320 = vst [vmem:[#allocation82_spill] sm:$0xff] %v7521_v36  ;;  %v2386_v36 = vcombine.high %v7222_v29, %v12218_v1  ;;  %v2582_v29 = vcombine.high %v7250_v4, %v12218_v1  ;;  %v2778_v4 = vcombine.high %v7280_v59, %v12218_v1  ;;  %v3072_v59 = vcombine.high %v7323_v45, %v12218_v1 }
 0x13e   : > { %3817 = vrot.lane.b32.xlu0 %v7456_v22, %s6737_s3  ;;  %3815 = vrot.lane.b32.xlu1 %v7459_v53, %s6737_s3  ;;  %v3268_v45 = vcombine.high %v7351_v62, %v12218_v1  ;;  %v3464_v62 = vcombine.high %v7379_v57, %v12218_v1 }
 0x13f   : > { %v7565_v42 = vrot.slane %v2386_v36, %v6949_v55  ;;  %v7581_v36 = vrot.slane %v2582_v29, %v6949_v55  ;;  %v7599_v29 = vrot.slane %v2778_v4, %v6949_v55  ;;  %v7610_v3 = vrot.slane %v3072_v59, %v6949_v55 }
 0x140   : > { %v7545_v58 = vpop.permute.xlu1 %485  ;;  %v7628_v59 = vrot.slane %v3268_v45, %v6949_v55  ;;  %v7644_v57 = vrot.slane %v3464_v62, %v6949_v55 }
 0x141   : > { %12321 = vst [vmem:[#allocation83_spill] sm:$0xff] %v7545_v58 }
 0x142   : > { %3821 = vrot.lane.b32.xlu0 %v7470_v0, %s6737_s3  ;;  %3819 = vrot.lane.b32.xlu1 %v7473_v13, %s6737_s3 }
 0x144   : > { %v7567_v19 = vpop.permute.xlu1 %496 }
 0x145   : > { %12322 = vst [vmem:[#allocation84_spill] sm:$0xff] %v7567_v19  ;;  %v2974_v19 = vcombine.high %v7308_v38, %v12218_v1  ;;  %v3170_v38 = vcombine.high %v7336_v10, %v12218_v1  ;;  %v3366_v10 = vcombine.high %v7366_v5, %v12218_v1 }
 0x146   : > { %3825 = vrot.lane.b32.xlu0 %v7486_v18, %s6737_s3  ;;  %3823 = vrot.lane.b32.xlu1 %v7489_v17, %s6737_s3 }
 0x147   : > { %v7613_v15 = vrot.slane %v2974_v19, %v6949_v55  ;;  %v7631_v19 = vrot.slane %v3170_v38, %v6949_v55  ;;  %v7647_v45 = vrot.slane %v3366_v10, %v6949_v55  ;;  %v555_v38 = vcombine.high %v7412_v7, %v12218_v1 }
 0x148   : > { %v7591_v58 = vpop.permute.xlu1 %507  ;;  %v653_v10 = vcombine.high %v7427_v24, %v12218_v1  ;;  %v751_v7 = vcombine.high %v7424_v23, %v12218_v1  ;;  %v849_v24 = vcombine.high %v7443_v47, %v12218_v1 }
 0x149   : > { %12323 = vst [vmem:[#allocation85_spill] sm:$0xff] %v7591_v58  ;;  %v7617_v58 = vpop.permute.xlu0 %3681 }
 0x14a   : > { %3829 = vrot.lane.b32.xlu0 %v7502_v54, %s6737_s3  ;;  %3827 = vrot.lane.b32.xlu1 %v7505_v27, %s6737_s3  ;;  %12326 = vst [vmem:[#allocation88_spill] sm:$0xff] %v7617_v58  ;;  %v3562_v58 = vcombine.high %v7396_v31, %v12218_v1 }
 0x14c   : > { %v7615_v4 = vpop.permute.xlu1 %3679 }
 0x14d   : > { %12325 = vst [vmem:[#allocation87_spill] sm:$0xff] %v7615_v4  ;;  %v7641_v5 = vpop.permute.xlu0 %3685 }
 0x14e   : > { %3833 = vrot.lane.b32.xlu0 %v7516_v32, %s6737_s3  ;;  %3831 = vrot.lane.b32.xlu1 %v7519_v41, %s6737_s3  ;;  %12328 = vst [vmem:[#allocation90_spill] sm:$0xff] %v7641_v5  ;;  %v7660_v5 = vrot.slane %v3562_v58, %v6949_v55 }
 0x150   : > { %v7639_v4 = vpop.permute.xlu1 %3683 }
 0x151   : > { %12327 = vst [vmem:[#allocation89_spill] sm:$0xff] %v7639_v4  ;;  %v7657_v4 = vpop.permute.xlu0 %3689 }
 0x152   : > { %3837 = vrot.lane.b32.xlu0 %v7532_v46, %s6737_s3  ;;  %3835 = vrot.lane.b32.xlu1 %v7535_v8, %s6737_s3  ;;  %12330 = vst [vmem:[#allocation92_spill] sm:$0xff] %v7657_v4  ;;  %v947_v4 = vcombine.high %v7440_v33, %v12218_v1 }
 0x154   : > { %v7655_v31 = vpop.permute.xlu1 %3687 }
 0x155   : > { %12329 = vst [vmem:[#allocation91_spill] sm:$0xff] %v7655_v31  ;;  %v7669_v56 = vpop.permute.xlu0 %3693 }
 0x156   : > { %3841 = vrot.lane.b32.xlu0 %v7548_v43, %s6737_s3  ;;  %3839 = vrot.lane.b32.xlu1 %v7551_v14, %s6737_s3  ;;  %12332 = vst [vmem:[#allocation94_spill] sm:$0xff] %v7669_v56 }
 0x158   : > { %v7667_v62 = vpop.permute.xlu1 %3691 }
 0x159   : > { %12331 = vst [vmem:[#allocation93_spill] sm:$0xff] %v7667_v62 }
 0x15a   : > { %3845 = vrot.lane.b32.xlu0 %v7562_v37, %s6737_s3  ;;  %3843 = vrot.lane.b32.xlu1 %v7565_v42, %s6737_s3 }
 0x15c   : > { %v7675_v58 = vpop.permute.xlu1 %3695 }
 0x15d   : > { %12333 = vst [vmem:[#allocation95_spill] sm:$0xff] %v7675_v58 }
 0x15e   : > { %3849 = vrot.lane.b32.xlu0 %v7578_v2, %s6737_s3  ;;  %3847 = vrot.lane.b32.xlu1 %v7581_v36, %s6737_s3 }
 0x160   : > { %v7685_v56 = vpop.permute.xlu1 %3699 }
 0x161   : > { %12335 = vst [vmem:[#allocation97_spill] sm:$0xff] %v7685_v56 }
 0x162   : > { %3853 = vrot.lane.b32.xlu0 %v7596_v20, %s6737_s3  ;;  %3851 = vrot.lane.b32.xlu1 %v7599_v29, %s6737_s3 }
 0x164   : > { %v7695_v33 = vpop.permute.xlu1 %3703 }
 0x165   : > { %12337 = vst [vmem:[#allocation99_spill] sm:$0xff] %v7695_v33 }
 0x166   : > { %3857 = vrot.lane.b32.xlu0 %v7610_v3, %s6737_s3  ;;  %3855 = vrot.lane.b32.xlu1 %v7613_v15, %s6737_s3 }
 0x16a   : > { %3861 = vrot.lane.b32.xlu0 %v7628_v59, %s6737_s3  ;;  %3859 = vrot.lane.b32.xlu1 %v7631_v19, %s6737_s3 }
 0x16e   : > { %3865 = vrot.lane.b32.xlu0 %v7644_v57, %s6737_s3  ;;  %3863 = vrot.lane.b32.xlu1 %v7647_v45, %s6737_s3 }
 0x172   : > { %3933 = vrot.lane.b32.xlu0 %v555_v38, %s6738_s15  ;;  %3867 = vrot.lane.b32.xlu1 %v7660_v5, %s6737_s3  ;;  %v7677_v38 = vpop.permute.xlu0 %3697  ;;  %s11812_s3 = scalar_lea.vmem [#allocation5], %s6510_s21 }
 0x173   : > { %12334 = vst [vmem:[#allocation96_spill] sm:$0xff] %v7677_v38 }
 0x176   : > { %3937 = vrot.lane.b32.xlu0 %v751_v7, %s6738_s15  ;;  %3935 = vrot.lane.b32.xlu1 %v653_v10, %s6738_s15  ;;  %v7687_v23 = vpop.permute.xlu0 %3701  ;;  %v1143_v10 = vcombine.high %v7456_v22, %v12218_v1  ;;  %v1045_v7 = vcombine.high %v7459_v53, %v12218_v1  ;;  %v7705_v22 = vpop.permute.xlu1 %3707 }
 0x177   : > { %12336 = vst [vmem:[#allocation98_spill] sm:$0xff] %v7687_v23  ;;  %12339 = vst [vmem:[#allocation101_spill] sm:$0xff] %v7705_v22 }
 0x17a   : > { %3941 = vrot.lane.b32.xlu0 %v947_v4, %s6738_s15  ;;  %3939 = vrot.lane.b32.xlu1 %v849_v24, %s6738_s15  ;;  %v7697_v47 = vpop.permute.xlu0 %3705  ;;  %v1339_v4 = vcombine.high %v7470_v0, %v12218_v1  ;;  %v1241_v24 = vcombine.high %v7473_v13, %v12218_v1  ;;  %v7715_v0 = vpop.permute.xlu1 %3711 }
 0x17b   : > { %12338 = vst [vmem:[#allocation100_spill] sm:$0xff] %v7697_v47  ;;  %12341 = vst [vmem:[#allocation103_spill] sm:$0xff] %v7715_v0 }
 0x17e   : > { %3945 = vrot.lane.b32.xlu0 %v1143_v10, %s6738_s15  ;;  %3943 = vrot.lane.b32.xlu1 %v1045_v7, %s6738_s15  ;;  %v7707_v53 = vpop.permute.xlu0 %3709  ;;  %v1535_v10 = vcombine.high %v7486_v18, %v12218_v1  ;;  %v1437_v7 = vcombine.high %v7489_v17, %v12218_v1  ;;  %v7725_v18 = vpop.permute.xlu1 %3715 }
 0x17f   : > { %12340 = vst [vmem:[#allocation102_spill] sm:$0xff] %v7707_v53  ;;  %12343 = vst [vmem:[#allocation105_spill] sm:$0xff] %v7725_v18 }
 0x182   : > { %3949 = vrot.lane.b32.xlu0 %v1339_v4, %s6738_s15  ;;  %3947 = vrot.lane.b32.xlu1 %v1241_v24, %s6738_s15  ;;  %v7717_v13 = vpop.permute.xlu0 %3713  ;;  %v1731_v4 = vcombine.high %v7502_v54, %v12218_v1  ;;  %v1633_v24 = vcombine.high %v7505_v27, %v12218_v1  ;;  %v7735_v54 = vpop.permute.xlu1 %3719 }
 0x183   : > { %12342 = vst [vmem:[#allocation104_spill] sm:$0xff] %v7717_v13  ;;  %12345 = vst [vmem:[#allocation107_spill] sm:$0xff] %v7735_v54 }
 0x186   : > { %3953 = vrot.lane.b32.xlu0 %v1535_v10, %s6738_s15  ;;  %3951 = vrot.lane.b32.xlu1 %v1437_v7, %s6738_s15  ;;  %v7727_v17 = vpop.permute.xlu0 %3717  ;;  %v1927_v10 = vcombine.high %v7516_v32, %v12218_v1  ;;  %v1829_v7 = vcombine.high %v7519_v41, %v12218_v1  ;;  %v7745_v32 = vpop.permute.xlu1 %3723 }
 0x187   : > { %12344 = vst [vmem:[#allocation106_spill] sm:$0xff] %v7727_v17  ;;  %12347 = vst [vmem:[#allocation109_spill] sm:$0xff] %v7745_v32 }
 0x18a   : > { %3957 = vrot.lane.b32.xlu0 %v1731_v4, %s6738_s15  ;;  %3955 = vrot.lane.b32.xlu1 %v1633_v24, %s6738_s15  ;;  %v7737_v27 = vpop.permute.xlu0 %3721  ;;  %v2123_v4 = vcombine.high %v7532_v46, %v12218_v1  ;;  %v2025_v24 = vcombine.high %v7535_v8, %v12218_v1 }
 0x18b   : > { %12346 = vst [vmem:[#allocation108_spill] sm:$0xff] %v7737_v27 }
 0x18c   : > { %v7755_v46 = vpop.permute.xlu1 %3727 }
 0x18d   : > { %12349 = vst [vmem:[#allocation111_spill] sm:$0xff] %v7755_v46 }
 0x18e   : > { %3961 = vrot.lane.b32.xlu0 %v1927_v10, %s6738_s15  ;;  %3959 = vrot.lane.b32.xlu1 %v1829_v7, %s6738_s15  ;;  %v7747_v41 = vpop.permute.xlu0 %3725  ;;  %v2319_v10 = vcombine.high %v7548_v43, %v12218_v1  ;;  %v2221_v7 = vcombine.high %v7551_v14, %v12218_v1 }
 0x18f   : > { %12348 = vst [vmem:[#allocation110_spill] sm:$0xff] %v7747_v41 }
 0x192   : > { %3965 = vrot.lane.b32.xlu0 %v2123_v4, %s6738_s15  ;;  %3963 = vrot.lane.b32.xlu1 %v2025_v24, %s6738_s15  ;;  %v7757_v8 = vpop.permute.xlu0 %3729  ;;  %v2515_v4 = vcombine.high %v7562_v37, %v12218_v1  ;;  %v2417_v24 = vcombine.high %v7565_v42, %v12218_v1 }
 0x193   : > { %12350 = vst [vmem:[#allocation112_spill] sm:$0xff] %v7757_v8 }
 0x194   : > { %v7765_v43 = vpop.permute.xlu1 %3731 }
 0x195   : > { %12351 = vst [vmem:[#allocation113_spill] sm:$0xff] %v7765_v43 }
 0x196   : > { %3969 = vrot.lane.b32.xlu0 %v2319_v10, %s6738_s15  ;;  %3967 = vrot.lane.b32.xlu1 %v2221_v7, %s6738_s15  ;;  %v2711_v10 = vcombine.high %v7578_v2, %v12218_v1  ;;  %v2613_v7 = vcombine.high %v7581_v36, %v12218_v1 }
 0x198   : > { %v7767_v14 = vpop.permute.xlu0 %3733 }
 0x199   : > { %12352 = vst [vmem:[#allocation114_spill] sm:$0xff] %v7767_v14 }
 0x19a   : > { %3973 = vrot.lane.b32.xlu0 %v2515_v4, %s6738_s15  ;;  %3971 = vrot.lane.b32.xlu1 %v2417_v24, %s6738_s15  ;;  %v2907_v4 = vcombine.high %v7596_v20, %v12218_v1  ;;  %v2809_v24 = vcombine.high %v7599_v29, %v12218_v1  ;;  %v509_v20 = vcombine.high %v6941_v52, %v12218_v1 }
 0x19b   : > { %v705_v52 = vcombine.high %v6970_v63, %v12218_v1  ;;  %v803_v63 = vcombine.high %v6984_v6, %v12218_v1 }
 0x19c   : > { %v7775_v37 = vpop.permute.xlu1 %3735 }
 0x19d   : > { %12353 = vst [vmem:[#allocation115_spill] sm:$0xff] %v7775_v37  ;;  %v7848_v6 = vrot.slane %v803_v63, %v6937_v49 }
 0x19e   : > { %3977 = vrot.lane.b32.xlu0 %v2711_v10, %s6738_s15  ;;  %3975 = vrot.lane.b32.xlu1 %v2613_v7, %s6738_s15  ;;  %v3103_v10 = vcombine.high %v7610_v3, %v12218_v1  ;;  %v3005_v7 = vcombine.high %v7613_v15, %v12218_v1  ;;  %v3201_v3 = vcombine.high %v7631_v19, %v12218_v1 }
 0x19f   : > { %v607_v15 = vcombine.high %v6939_v51, %v12218_v1  ;;  %v3397_v19 = vcombine.high %v7647_v45, %v12218_v1  ;;  %v3593_v45 = vcombine.high %v7660_v5, %v12218_v1  ;;  %v1097_v5 = vcombine.high %v7031_v21, %v12218_v1 }
 0x1a0   : > { %v7777_v42 = vpop.permute.xlu0 %3737  ;;  %v1195_v21 = vcombine.high %v7046_v26, %v12218_v1  ;;  %v7889_v37 = vrot.slane %v7848_v6, %v6949_v55 }
 0x1a1   : > { %12354 = vst [vmem:[#allocation116_spill] sm:$0xff] %v7777_v42  ;;  %v7825_v51 = vrot.slane %v607_v15, %v6937_v49 }
 0x1a2   : > { %3981 = vrot.lane.b32.xlu0 %v2907_v4, %s6738_s15  ;;  %3979 = vrot.lane.b32.xlu1 %v2809_v24, %s6738_s15  ;;  %v3299_v24 = vcombine.high %v7628_v59, %v12218_v1  ;;  %v3495_v59 = vcombine.high %v7644_v57, %v12218_v1  ;;  %v7900_v26 = vrot.slane %v1195_v21, %v6937_v49 }
 0x1a4   : > { %v7785_v2 = vpop.permute.xlu1 %3739  ;;  %v7787_v36 = vpop.permute.xlu0 %3805  ;;  %v7941_v32 = vrot.slane %v7900_v26, %v6949_v55 }
 0x1a5   : > { %12355 = vst [vmem:[#allocation117_spill] sm:$0xff] %v7785_v2  ;;  %12356 = vst [vmem:[#allocation118_spill] sm:$0xff] %v7787_v36 }
 0x1a6   : > { %3985 = vrot.lane.b32.xlu0 %v3103_v10, %s6738_s15  ;;  %3983 = vrot.lane.b32.xlu1 %v3005_v7, %s6738_s15  ;;  %v7810_v10 = vrot.slane %v509_v20, %v6937_v49  ;;  %v7830_v20 = vrot.slane %v705_v52, %v6937_v49 }
 0x1a8   : > { %v7797_v29 = vpop.permute.xlu1 %3807  ;;  %v7799_v4 = vpop.permute.xlu0 %3809  ;;  %v7842_v15 = vrot.slane %v7810_v10, %v6949_v55  ;;  %v7867_v63 = vrot.slane %v7830_v20, %v6949_v55 }
 0x1a9   : > { %12357 = vst [vmem:[#allocation119_spill] sm:$0xff] %v7797_v29  ;;  %12358 = vst [vmem:[#allocation120_spill] sm:$0xff] %v7799_v4 }
 0x1aa   : > { %3989 = vrot.lane.b32.xlu0 %v3299_v24, %s6738_s15  ;;  %3987 = vrot.lane.b32.xlu1 %v3201_v3, %s6738_s15  ;;  %v901_v24 = vcombine.high %v7000_v11, %v12218_v1  ;;  %v999_v11 = vcombine.high %v7016_v16, %v12218_v1 }
 0x1ac   : > { %v7814_v7 = vpop.permute.xlu1 %3811  ;;  %v7816_v4 = vpop.permute.xlu0 %3813  ;;  %v7853_v52 = vrot.slane %v901_v24, %v6937_v49  ;;  %v7874_v16 = vrot.slane %v999_v11, %v6937_v49  ;;  %v7879_v24 = vrot.slane %v1097_v5, %v6937_v49 }
 0x1ad   : > { %12359 = vst [vmem:[#allocation121_spill] sm:$0xff] %v7814_v7  ;;  %12360 = vst [vmem:[#allocation122_spill] sm:$0xff] %v7816_v4 }
 0x1ae   : > { %3993 = vrot.lane.b32.xlu0 %v3495_v59, %s6738_s15  ;;  %3991 = vrot.lane.b32.xlu1 %v3397_v19, %s6738_s15  ;;  %v7893_v11 = vrot.slane %v7853_v52, %v6949_v55  ;;  %v7915_v8 = vrot.slane %v7874_v16, %v6949_v55  ;;  %v7919_v21 = vrot.slane %v7879_v24, %v6949_v55 }
 0x1b0   : > { %v7834_v57 = vpop.permute.xlu1 %3815  ;;  %v7836_v3 = vpop.permute.xlu0 %3817 }
 0x1b1   : > { %12361 = vst [vmem:[#allocation123_spill] sm:$0xff] %v7834_v57  ;;  %12362 = vst [vmem:[#allocation124_spill] sm:$0xff] %v7836_v3 }
 0x1b2   : > { %3995 = vrot.lane.b32.xlu1 %v3593_v45, %s6738_s15  ;;  %4061 = vrot.lane.b32.xlu0 %v7842_v15, %s6739_s19  ;;  %v7863_v45 = vrot.slane %v7825_v51, %v6949_v55  ;;  %s6374_s15 = scalar_lea.sflag [#allocation4], %s6866_s2 }
 0x1b4   : > { %v7857_v59 = vpop.permute.xlu1 %3819  ;;  %v7859_v19 = vpop.permute.xlu0 %3821 }
 0x1b5   : > { %12363 = vst [vmem:[#allocation125_spill] sm:$0xff] %v7857_v59  ;;  %12364 = vst [vmem:[#allocation126_spill] sm:$0xff] %v7859_v19  ;;  %v1293_v59 = vcombine.high %v7059_v30, %v12218_v1  ;;  %v1391_v30 = vcombine.high %v7074_v35, %v12218_v1 }
 0x1b6   : > { %4063 = vrot.lane.b32.xlu1 %v7863_v45, %s6739_s19  ;;  %4065 = vrot.lane.b32.xlu0 %v7867_v63, %s6739_s19 }
 0x1b7   : > { %v7905_v5 = vrot.slane %v1293_v59, %v6937_v49  ;;  %v7926_v35 = vrot.slane %v1391_v30, %v6937_v49 }
 0x1b8   : > { %v7883_v3 = vpop.permute.xlu1 %3823  ;;  %v7885_v7 = vpop.permute.xlu0 %3825 }
 0x1b9   : > { %12365 = vst [vmem:[#allocation127_spill] sm:$0xff] %v7883_v3  ;;  %12366 = vst [vmem:[#allocation128_spill] sm:$0xff] %v7885_v7  ;;  %v1489_v7 = vcombine.high %v7089_v40, %v12218_v1  ;;  %v1587_v40 = vcombine.high %v7102_v44, %v12218_v1  ;;  %v7945_v30 = vrot.slane %v7905_v5, %v6949_v55 }
 0x1ba   : > { %4067 = vrot.lane.b32.xlu1 %v7889_v37, %s6739_s19  ;;  %4069 = vrot.lane.b32.xlu0 %v7893_v11, %s6739_s19 }
 0x1bb   : > { %v7931_v59 = vrot.slane %v1489_v7, %v6937_v49  ;;  %v7952_v44 = vrot.slane %v1587_v40, %v6937_v49 }
 0x1bc   : > { %v7909_v14 = vpop.permute.xlu1 %3827  ;;  %v7911_v43 = vpop.permute.xlu0 %3829 }
 0x1bd   : > { %12367 = vst [vmem:[#allocation129_spill] sm:$0xff] %v7909_v14  ;;  %12368 = vst [vmem:[#allocation130_spill] sm:$0xff] %v7911_v43  ;;  %v1685_v14 = vcombine.high %v7117_v50, %v12218_v1  ;;  %v1783_v50 = vcombine.high %v7132_v12, %v12218_v1  ;;  %v7971_v40 = vrot.slane %v7931_v59, %v6949_v55 }
 0x1be   : > { %4071 = vrot.lane.b32.xlu1 %v7915_v8, %s6739_s19  ;;  %4073 = vrot.lane.b32.xlu0 %v7919_v21, %s6739_s19  ;;  %v7993_v18 = vrot.slane %v7952_v44, %v6949_v55 }
 0x1bf   : > { %v7957_v7 = vrot.slane %v1685_v14, %v6937_v49  ;;  %v7978_v12 = vrot.slane %v1783_v50, %v6937_v49 }
 0x1c0   : > { %v7935_v46 = vpop.permute.xlu1 %3831  ;;  %v7937_v41 = vpop.permute.xlu0 %3833 }
 0x1c1   : > { %12369 = vst [vmem:[#allocation131_spill] sm:$0xff] %v7935_v46  ;;  %12370 = vst [vmem:[#allocation132_spill] sm:$0xff] %v7937_v41  ;;  %v1881_v41 = vcombine.high %v7145_v28, %v12218_v1  ;;  %v7967_v46 = vrot.slane %v7926_v35, %v6949_v55  ;;  %v1979_v28 = vcombine.high %v7160_v60, %v12218_v1 }
 0x1c2   : > { %4075 = vrot.lane.b32.xlu1 %v7941_v32, %s6739_s19  ;;  %4077 = vrot.lane.b32.xlu0 %v7945_v30, %s6739_s19  ;;  %v7997_v50 = vrot.slane %v7957_v7, %v6949_v55  ;;  %v2175_v60 = vcombine.high %v7188_v39, %v12218_v1  ;;  %v8019_v43 = vrot.slane %v7978_v12, %v6949_v55 }
 0x1c3   : > { %v7983_v14 = vrot.slane %v1881_v41, %v6937_v49  ;;  %v2371_v39 = vcombine.high %v7218_v9, %v12218_v1  ;;  %v2567_v9 = vcombine.high %v7246_v34, %v12218_v1 }
 0x1c4   : > { %v7961_v27 = vpop.permute.xlu1 %3835  ;;  %v7963_v54 = vpop.permute.xlu0 %3837 }
 0x1c5   : > { %12371 = vst [vmem:[#allocation133_spill] sm:$0xff] %v7961_v27  ;;  %12372 = vst [vmem:[#allocation134_spill] sm:$0xff] %v7963_v54  ;;  %v2077_v27 = vcombine.high %v7175_v48, %v12218_v1  ;;  %v8004_v48 = vrot.slane %v1979_v28, %v6937_v49  ;;  %v8023_v28 = vrot.slane %v7983_v14, %v6949_v55 }
 0x1c6   : > { %4079 = vrot.lane.b32.xlu1 %v7967_v46, %s6739_s19  ;;  %4081 = vrot.lane.b32.xlu0 %v7971_v40, %s6739_s19  ;;  %v8082_v34 = vrot.slane %v2567_v9, %v6937_v49 }
 0x1c7   : > { %v8009_v41 = vrot.slane %v2077_v27, %v6937_v49  ;;  %v8045_v3 = vrot.slane %v8004_v48, %v6949_v55 }
 0x1c8   : > { %v7987_v54 = vpop.permute.xlu1 %3839  ;;  %v7989_v17 = vpop.permute.xlu0 %3841  ;;  %v8123_v33 = vrot.slane %v8082_v34, %v6949_v55 }
 0x1c9   : > { %12373 = vst [vmem:[#allocation135_spill] sm:$0xff] %v7987_v54  ;;  %12374 = vst [vmem:[#allocation136_spill] sm:$0xff] %v7989_v17  ;;  %v2273_v17 = vcombine.high %v7203_v25, %v12218_v1  ;;  %v8030_v25 = vrot.slane %v2175_v60, %v6937_v49  ;;  %v8049_v60 = vrot.slane %v8009_v41, %v6949_v55 }
 0x1ca   : > { %4083 = vrot.lane.b32.xlu1 %v7993_v18, %s6739_s19  ;;  %4085 = vrot.lane.b32.xlu0 %v7997_v50, %s6739_s19 }
 0x1cb   : > { %v8035_v27 = vrot.slane %v2273_v17, %v6937_v49  ;;  %v8071_v4 = vrot.slane %v8030_v25, %v6949_v55 }
 0x1cc   : > { %v8013_v54 = vpop.permute.xlu1 %3843  ;;  %v8015_v13 = vpop.permute.xlu0 %3845 }
 0x1cd   : > { %12375 = vst [vmem:[#allocation137_spill] sm:$0xff] %v8013_v54  ;;  %12376 = vst [vmem:[#allocation138_spill] sm:$0xff] %v8015_v13  ;;  %v2469_v54 = vcombine.high %v7231_v61, %v12218_v1  ;;  %v8056_v61 = vrot.slane %v2371_v39, %v6937_v49  ;;  %v8075_v39 = vrot.slane %v8035_v27, %v6949_v55 }
 0x1ce   : > { %4087 = vrot.lane.b32.xlu1 %v8019_v43, %s6739_s19  ;;  %4089 = vrot.lane.b32.xlu0 %v8023_v28, %s6739_s19 }
 0x1cf   : > { %v8061_v17 = vrot.slane %v2469_v54, %v6937_v49  ;;  %v8097_v42 = vrot.slane %v8056_v61, %v6949_v55 }
 0x1d0   : > { %v8039_v13 = vpop.permute.xlu1 %3847  ;;  %v8041_v0 = vpop.permute.xlu0 %3849 }
 0x1d1   : > { %12377 = vst [vmem:[#allocation139_spill] sm:$0xff] %v8039_v13  ;;  %12378 = vst [vmem:[#allocation140_spill] sm:$0xff] %v8041_v0  ;;  %v12379_v0 = vld [vmem:[#allocation51_spill] sm:$0xff]  ;;  %v8101_v9 = vrot.slane %v8061_v17, %v6949_v55 }
 0x1d2   : > { %4091 = vrot.lane.b32.xlu1 %v8045_v3, %s6739_s19  ;;  %4093 = vrot.lane.b32.xlu0 %v8049_v60, %s6739_s19  ;;  %v2665_v13 = vcombine.high %v12379_v0, %v12218_v1  ;;  %v12382_v0 = vld [vmem:[#allocation53_spill] sm:$0xff] }
 0x1d3   : > { %v2763_v54 = vcombine.high %v12382_v0, %v12218_v1 }
 0x1d4   : > { %v8065_v19 = vpop.permute.xlu1 %3851  ;;  %v8067_v57 = vpop.permute.xlu0 %3853 }
 0x1d5   : > { %12380 = vst [vmem:[#allocation51_spill] sm:$0xff] %v8065_v19  ;;  %12381 = vst [vmem:[#allocation141_spill] sm:$0xff] %v8067_v57  ;;  %v8087_v19 = vrot.slane %v2665_v13, %v6937_v49  ;;  %v12384_v57 = vld [vmem:[#allocation56_spill] sm:$0xff]  ;;  %v8108_v13 = vrot.slane %v2763_v54, %v6937_v49 }
 0x1d6   : > { %4095 = vrot.lane.b32.xlu1 %v8071_v4, %s6739_s19  ;;  %4097 = vrot.lane.b32.xlu0 %v8075_v39, %s6739_s19  ;;  %v2861_v29 = vcombine.high %v12384_v57, %v12218_v1  ;;  %v12388_v57 = vld [vmem:[#allocation59_spill] sm:$0xff] }
 0x1d7   : > { %12383 = vst [vmem:[#allocation53_spill] sm:$0xff] %v8087_v19  ;;  %12387 = vst [vmem:[#allocation143_spill] sm:$0xff] %v8108_v13  ;;  %v2959_v0 = vcombine.high %v12388_v57, %v12218_v1  ;;  %v8127_v54 = vrot.slane %v8087_v19, %v6949_v55  ;;  %v8149_v58 = vrot.slane %v8108_v13, %v6949_v55 }
 0x1d8   : > { %v8091_v36 = vpop.permute.xlu1 %3855  ;;  %v8093_v2 = vpop.permute.xlu0 %3857 }
 0x1d9   : > { %12385 = vst [vmem:[#allocation56_spill] sm:$0xff] %v8091_v36  ;;  %12386 = vst [vmem:[#allocation142_spill] sm:$0xff] %v8093_v2  ;;  %v8113_v2 = vrot.slane %v2861_v29, %v6937_v49  ;;  %v12390_v36 = vld [vmem:[#allocation61_spill] sm:$0xff]  ;;  %v12394_v29 = vld [vmem:[#allocation64_spill] sm:$0xff] }
 0x1da   : > { %4099 = vrot.lane.b32.xlu1 %v8097_v42, %s6739_s19  ;;  %4101 = vrot.lane.b32.xlu0 %v8101_v9, %s6739_s19  ;;  %v3057_v53 = vcombine.high %v12390_v36, %v12218_v1  ;;  %v8134_v36 = vrot.slane %v2959_v0, %v6937_v49  ;;  %v3155_v57 = vcombine.high %v12394_v29, %v12218_v1 }
 0x1db   : > { %12389 = vst [vmem:[#allocation59_spill] sm:$0xff] %v8113_v2  ;;  %v8153_v0 = vrot.slane %v8113_v2, %v6949_v55 }
 0x1dc   : > { %v8117_v22 = vpop.permute.xlu1 %3859  ;;  %v8119_v47 = vpop.permute.xlu0 %3861  ;;  %12393 = vst [vmem:[#allocation145_spill] sm:$0xff] %v8134_v36  ;;  %v8175_v13 = vrot.slane %v8134_v36, %v6949_v55 }
 0x1dd   : > { %12391 = vst [vmem:[#allocation61_spill] sm:$0xff] %v8117_v22  ;;  %12392 = vst [vmem:[#allocation144_spill] sm:$0xff] %v8119_v47  ;;  %v8139_v22 = vrot.slane %v3057_v53, %v6937_v49  ;;  %v12396_v47 = vld [vmem:[#allocation67_spill] sm:$0xff]  ;;  %v12399_v53 = vld [vmem:[#allocation69_spill] sm:$0xff] }
 0x1de   : > { %4103 = vrot.lane.b32.xlu1 %v8123_v33, %s6739_s19  ;;  %4105 = vrot.lane.b32.xlu0 %v8127_v54, %s6739_s19  ;;  %v3253_v23 = vcombine.high %v12396_v47, %v12218_v1  ;;  %v8160_v47 = vrot.slane %v3155_v57, %v6937_v49  ;;  %v3351_v29 = vcombine.high %v12399_v53, %v12218_v1  ;;  %v12405_v53 = vld [vmem:[#allocation75_spill] sm:$0xff] }
 0x1df   : > { %12395 = vst [vmem:[#allocation64_spill] sm:$0xff] %v8139_v22  ;;  %v8179_v57 = vrot.slane %v8139_v22, %v6949_v55 }
 0x1e0   : > { %v8143_v56 = vpop.permute.xlu1 %3863  ;;  %v8145_v38 = vpop.permute.xlu0 %3865  ;;  %v8199_v22 = vrot.slane %v8160_v47, %v6949_v55 }
 0x1e1   : > { %12397 = vst [vmem:[#allocation67_spill] sm:$0xff] %v8143_v56  ;;  %12398 = vst [vmem:[#allocation146_spill] sm:$0xff] %v8145_v38  ;;  %v8165_v56 = vrot.slane %v3253_v23, %v6937_v49  ;;  %v12400_v38 = vld [vmem:[#allocation72_spill] sm:$0xff] }
 0x1e2   : > { %4107 = vrot.lane.b32.xlu1 %v8149_v58, %s6739_s19  ;;  %4109 = vrot.lane.b32.xlu0 %v8153_v0, %s6739_s19  ;;  %v3449_v62 = vcombine.high %v12400_v38, %v12218_v1  ;;  %v8186_v38 = vrot.slane %v3351_v29, %v6937_v49 }
 0x1e3   : > { %v8203_v19 = vrot.slane %v8165_v56, %v6949_v55 }
 0x1e4   : > { %v8169_v31 = vpop.permute.xlu1 %3867  ;;  %v8171_v2 = vpop.permute.xlu0 %3933  ;;  %12403 = vst [vmem:[#allocation147_spill] sm:$0xff] %v8186_v38  ;;  %v8189_v23 = vrot.slane %v3449_v62, %v6937_v49 }
 0x1e5   : > { %12401 = vst [vmem:[#allocation69_spill] sm:$0xff] %v8169_v31  ;;  %12402 = vst [vmem:[#allocation72_spill] sm:$0xff] %v8171_v2  ;;  %v3547_v2 = vcombine.high %v12405_v53, %v12218_v1  ;;  %v8218_v1 = vrot.slane %v8186_v38, %v6949_v55 }
 0x1e6   : > { %4111 = vrot.lane.b32.xlu1 %v8175_v13, %s6739_s19  ;;  %4113 = vrot.lane.b32.xlu0 %v8179_v57, %s6739_s19  ;;  %12404 = vst [vmem:[#allocation148_spill] sm:$0xff] %v8189_v23 }
 0x1e7   : > { %v8210_v62 = vrot.slane %v3547_v2, %v6937_v49 }
 0x1e8   : > { %v8193_v31 = vpop.permute.xlu1 %3935  ;;  %v8195_v36 = vpop.permute.xlu0 %3937 }
 0x1e9   : > { %12406 = vst [vmem:[#allocation75_spill] sm:$0xff] %v8193_v31  ;;  %12407 = vst [vmem:[#allocation149_spill] sm:$0xff] %v8195_v36  ;;  %v8222_v36 = vrot.slane %v8189_v23, %v6949_v55 }
 0x1ea   : > { %4115 = vrot.lane.b32.xlu1 %v8199_v22, %s6739_s19  ;;  %4117 = vrot.lane.b32.xlu0 %v8203_v19, %s6739_s19  ;;  %12408 = vst [vmem:[#allocation150_spill] sm:$0xff] %v8210_v62 }
 0x1ec   : > { %v8212_v29 = vpop.permute.xlu1 %3939  ;;  %v8214_v53 = vpop.permute.xlu0 %3941 }
 0x1ed   : > { %12409 = vst [vmem:[#allocation151_spill] sm:$0xff] %v8212_v29  ;;  %12410 = vst [vmem:[#allocation152_spill] sm:$0xff] %v8214_v53  ;;  %v8234_v29 = vrot.slane %v8210_v62, %v6949_v55  ;;  %v12413_v53 = vmov 0.0  }
 0x1ee   : > { %4119 = vrot.lane.b32.xlu1 %v8218_v1, %s6739_s19  ;;  %4121 = vrot.lane.b32.xlu0 %v8222_v36, %s6739_s19  ;;  %v556_v49 = vcombine.high %v7842_v15, %v12413_v53 }
 0x1f0   : > { %v8228_v2 = vpop.permute.xlu1 %3943  ;;  %v8230_v31 = vpop.permute.xlu0 %3945 }
 0x1f1   : > { %12411 = vst [vmem:[#allocation153_spill] sm:$0xff] %v8228_v2  ;;  %12412 = vst [vmem:[#allocation154_spill] sm:$0xff] %v8230_v31  ;;  %v654_v31 = vcombine.high %v7863_v45, %v12413_v53  ;;  %v752_v2 = vcombine.high %v7867_v63, %v12413_v53 }
 0x1f2   : > { %4123 = vrot.lane.b32.xlu1 %v8234_v29, %s6739_s19  ;;  %4189 = vrot.lane.b32.xlu0 %v556_v49, %s6740_s23  ;;  %v850_v49 = vcombine.high %v7889_v37, %v12413_v53 }
 0x1f4   : > { %v8241_v23 = vpop.permute.xlu1 %3947  ;;  %v8243_v38 = vpop.permute.xlu0 %3949 }
 0x1f5   : > { %12414 = vst [vmem:[#allocation155_spill] sm:$0xff] %v8241_v23  ;;  %12415 = vst [vmem:[#allocation156_spill] sm:$0xff] %v8243_v38  ;;  %v948_v23 = vcombine.high %v7893_v11, %v12413_v53 }
 0x1f6   : > { %4191 = vrot.lane.b32.xlu1 %v654_v31, %s6740_s23  ;;  %4193 = vrot.lane.b32.xlu0 %v752_v2, %s6740_s23  ;;  %v1046_v31 = vcombine.high %v7915_v8, %v12413_v53  ;;  %v1144_v2 = vcombine.high %v7919_v21, %v12413_v53 }
 0x1f8   : > { %v8251_v15 = vpop.permute.xlu1 %3951  ;;  %v8253_v62 = vpop.permute.xlu0 %3953 }
 0x1f9   : > { %12416 = vst [vmem:[#allocation157_spill] sm:$0xff] %v8251_v15  ;;  %12417 = vst [vmem:[#allocation158_spill] sm:$0xff] %v8253_v62 }
 0x1fa   : > { %4195 = vrot.lane.b32.xlu1 %v850_v49, %s6740_s23  ;;  %4197 = vrot.lane.b32.xlu0 %v948_v23, %s6740_s23  ;;  %v1242_v23 = vcombine.high %v7941_v32, %v12413_v53  ;;  %v1340_v49 = vcombine.high %v7945_v30, %v12413_v53 }
 0x1fc   : > { %v8261_v45 = vpop.permute.xlu1 %3955  ;;  %v8263_v63 = vpop.permute.xlu0 %3957 }
 0x1fd   : > { %12418 = vst [vmem:[#allocation159_spill] sm:$0xff] %v8261_v45  ;;  %12419 = vst [vmem:[#allocation160_spill] sm:$0xff] %v8263_v63 }
 0x1fe   : > { %4199 = vrot.lane.b32.xlu1 %v1046_v31, %s6740_s23  ;;  %4201 = vrot.lane.b32.xlu0 %v1144_v2, %s6740_s23  ;;  %v1438_v31 = vcombine.high %v7967_v46, %v12413_v53  ;;  %v1536_v2 = vcombine.high %v7971_v40, %v12413_v53 }
 0x200   : > { %v8271_v37 = vpop.permute.xlu1 %3959  ;;  %v8273_v11 = vpop.permute.xlu0 %3961 }
 0x201   : > { %12420 = vst [vmem:[#allocation161_spill] sm:$0xff] %v8271_v37  ;;  %12421 = vst [vmem:[#allocation162_spill] sm:$0xff] %v8273_v11 }
 0x202   : > { %4203 = vrot.lane.b32.xlu1 %v1242_v23, %s6740_s23  ;;  %4205 = vrot.lane.b32.xlu0 %v1340_v49, %s6740_s23  ;;  %v1634_v23 = vcombine.high %v7993_v18, %v12413_v53  ;;  %v1732_v49 = vcombine.high %v7997_v50, %v12413_v53 }
 0x204   : > { %v8281_v8 = vpop.permute.xlu1 %3963  ;;  %v8283_v21 = vpop.permute.xlu0 %3965 }
 0x205   : > { %12422 = vst [vmem:[#allocation163_spill] sm:$0xff] %v8281_v8  ;;  %12423 = vst [vmem:[#allocation164_spill] sm:$0xff] %v8283_v21 }
 0x206   : > { %4207 = vrot.lane.b32.xlu1 %v1438_v31, %s6740_s23  ;;  %4209 = vrot.lane.b32.xlu0 %v1536_v2, %s6740_s23  ;;  %v1830_v31 = vcombine.high %v8019_v43, %v12413_v53  ;;  %v1928_v2 = vcombine.high %v8023_v28, %v12413_v53 }
 0x208   : > { %v8291_v32 = vpop.permute.xlu1 %3967  ;;  %v8293_v30 = vpop.permute.xlu0 %3969 }
 0x209   : > { %12424 = vst [vmem:[#allocation165_spill] sm:$0xff] %v8291_v32  ;;  %12425 = vst [vmem:[#allocation166_spill] sm:$0xff] %v8293_v30 }
 0x20a   : > { %4211 = vrot.lane.b32.xlu1 %v1634_v23, %s6740_s23  ;;  %4213 = vrot.lane.b32.xlu0 %v1732_v49, %s6740_s23  ;;  %v2026_v23 = vcombine.high %v8045_v3, %v12413_v53  ;;  %v2124_v49 = vcombine.high %v8049_v60, %v12413_v53 }
 0x20c   : > { %v8301_v46 = vpop.permute.xlu1 %3971  ;;  %v8303_v40 = vpop.permute.xlu0 %3973 }
 0x20d   : > { %12426 = vst [vmem:[#allocation167_spill] sm:$0xff] %v8301_v46  ;;  %12427 = vst [vmem:[#allocation168_spill] sm:$0xff] %v8303_v40 }
 0x20e   : > { %4215 = vrot.lane.b32.xlu1 %v1830_v31, %s6740_s23  ;;  %4217 = vrot.lane.b32.xlu0 %v1928_v2, %s6740_s23  ;;  %v2222_v31 = vcombine.high %v8071_v4, %v12413_v53  ;;  %v2320_v2 = vcombine.high %v8075_v39, %v12413_v53 }
 0x210   : > { %v8311_v18 = vpop.permute.xlu1 %3975  ;;  %v8313_v50 = vpop.permute.xlu0 %3977 }
 0x211   : > { %12428 = vst [vmem:[#allocation169_spill] sm:$0xff] %v8311_v18  ;;  %12429 = vst [vmem:[#allocation170_spill] sm:$0xff] %v8313_v50 }
 0x212   : > { %4219 = vrot.lane.b32.xlu1 %v2026_v23, %s6740_s23  ;;  %4221 = vrot.lane.b32.xlu0 %v2124_v49, %s6740_s23  ;;  %v2418_v23 = vcombine.high %v8097_v42, %v12413_v53  ;;  %v2516_v49 = vcombine.high %v8101_v9, %v12413_v53 }
 0x214   : > { %v8321_v43 = vpop.permute.xlu1 %3979  ;;  %v8323_v28 = vpop.permute.xlu0 %3981 }
 0x215   : > { %12430 = vst [vmem:[#allocation171_spill] sm:$0xff] %v8321_v43  ;;  %12431 = vst [vmem:[#allocation172_spill] sm:$0xff] %v8323_v28 }
 0x216   : > { %4223 = vrot.lane.b32.xlu1 %v2222_v31, %s6740_s23  ;;  %4225 = vrot.lane.b32.xlu0 %v2320_v2, %s6740_s23  ;;  %v2614_v31 = vcombine.high %v8123_v33, %v12413_v53  ;;  %v2712_v2 = vcombine.high %v8127_v54, %v12413_v53 }
 0x218   : > { %v8331_v3 = vpop.permute.xlu1 %3983  ;;  %v8333_v60 = vpop.permute.xlu0 %3985 }
 0x219   : > { %12432 = vst [vmem:[#allocation173_spill] sm:$0xff] %v8331_v3  ;;  %12433 = vst [vmem:[#allocation174_spill] sm:$0xff] %v8333_v60 }
 0x21a   : > { %4227 = vrot.lane.b32.xlu1 %v2418_v23, %s6740_s23  ;;  %4229 = vrot.lane.b32.xlu0 %v2516_v49, %s6740_s23  ;;  %v2810_v23 = vcombine.high %v8149_v58, %v12413_v53  ;;  %v2908_v49 = vcombine.high %v8153_v0, %v12413_v53 }
 0x21c   : > { %v8341_v4 = vpop.permute.xlu1 %3987  ;;  %v8343_v39 = vpop.permute.xlu0 %3989 }
 0x21d   : > { %12434 = vst [vmem:[#allocation175_spill] sm:$0xff] %v8341_v4  ;;  %12435 = vst [vmem:[#allocation176_spill] sm:$0xff] %v8343_v39 }
 0x21e   : > { %4231 = vrot.lane.b32.xlu1 %v2614_v31, %s6740_s23  ;;  %4233 = vrot.lane.b32.xlu0 %v2712_v2, %s6740_s23  ;;  %v3006_v31 = vcombine.high %v8175_v13, %v12413_v53  ;;  %v3104_v2 = vcombine.high %v8179_v57, %v12413_v53  ;;  %v539_v13 = vcombine.high %v7810_v10, %v12413_v53 }
 0x21f   : > { %v735_v10 = vcombine.high %v7830_v20, %v12413_v53  ;;  %v931_v20 = vcombine.high %v7853_v52, %v12413_v53  ;;  %v1127_v52 = vcombine.high %v7879_v24, %v12413_v53  ;;  %v1323_v24 = vcombine.high %v7905_v5, %v12413_v53 }
 0x220   : > { %v8351_v42 = vpop.permute.xlu1 %3991  ;;  %v8353_v9 = vpop.permute.xlu0 %3993  ;;  %v1519_v5 = vcombine.high %v7931_v59, %v12413_v53  ;;  %v1715_v59 = vcombine.high %v7957_v7, %v12413_v53  ;;  %v1911_v7 = vcombine.high %v7983_v14, %v12413_v53  ;;  %v2107_v14 = vcombine.high %v8009_v41, %v12413_v53 }
 0x221   : > { %12436 = vst [vmem:[#allocation177_spill] sm:$0xff] %v8351_v42  ;;  %12437 = vst [vmem:[#allocation178_spill] sm:$0xff] %v8353_v9  ;;  %v2303_v41 = vcombine.high %v8035_v27, %v12413_v53  ;;  %v2499_v27 = vcombine.high %v8061_v17, %v12413_v53  ;;  %v12464_v17 = vld [vmem:[#allocation53_spill] sm:$0xff] }
 0x222   : > { %4235 = vrot.lane.b32.xlu1 %v2810_v23, %s6740_s23  ;;  %4237 = vrot.lane.b32.xlu0 %v2908_v49, %s6740_s23  ;;  %v3202_v23 = vcombine.high %v8199_v22, %v12413_v53  ;;  %v3300_v49 = vcombine.high %v8203_v19, %v12413_v53  ;;  %v3496_v22 = vcombine.high %v8222_v36, %v12413_v53 }
 0x223   : > { %v637_v19 = vcombine.high %v7825_v51, %v12413_v53  ;;  %v833_v51 = vcombine.high %v7848_v6, %v12413_v53  ;;  %v1029_v6 = vcombine.high %v7874_v16, %v12413_v53  ;;  %v1225_v16 = vcombine.high %v7900_v26, %v12413_v53 }
 0x224   : > { %v8361_v33 = vpop.permute.xlu1 %3995  ;;  %v8363_v54 = vpop.permute.xlu0 %4061  ;;  %v1421_v26 = vcombine.high %v7926_v35, %v12413_v53  ;;  %v1617_v35 = vcombine.high %v7952_v44, %v12413_v53  ;;  %v1813_v44 = vcombine.high %v7978_v12, %v12413_v53  ;;  %v2009_v12 = vcombine.high %v8004_v48, %v12413_v53 }
 0x225   : > { %12438 = vst [vmem:[#allocation179_spill] sm:$0xff] %v8361_v33  ;;  %12439 = vst [vmem:[#allocation180_spill] sm:$0xff] %v8363_v54  ;;  %v2205_v48 = vcombine.high %v8030_v25, %v12413_v53  ;;  %v2401_v25 = vcombine.high %v8056_v61, %v12413_v53  ;;  %v2597_v61 = vcombine.high %v8082_v34, %v12413_v53  ;;  %v12467_v34 = vld [vmem:[#allocation143_spill] sm:$0xff] }
 0x226   : > { %4239 = vrot.lane.b32.xlu1 %v3006_v31, %s6740_s23  ;;  %4241 = vrot.lane.b32.xlu0 %v3104_v2, %s6740_s23  ;;  %v3398_v2 = vcombine.high %v8218_v1, %v12413_v53  ;;  %v3594_v1 = vcombine.high %v8234_v29, %v12413_v53  ;;  %v8418_v29 = vrot.slane %v637_v19, %v6949_v55 }
 0x227   : > { %v8436_v19 = vrot.slane %v833_v51, %v6949_v55  ;;  %v8454_v51 = vrot.slane %v1029_v6, %v6949_v55  ;;  %v8472_v6 = vrot.slane %v1225_v16, %v6949_v55  ;;  %v8490_v16 = vrot.slane %v1421_v26, %v6949_v55 }
 0x228   : > { %v8371_v58 = vpop.permute.xlu1 %4063  ;;  %v8373_v0 = vpop.permute.xlu0 %4065  ;;  %v8508_v26 = vrot.slane %v1617_v35, %v6949_v55  ;;  %v8526_v35 = vrot.slane %v1813_v44, %v6949_v55  ;;  %v8544_v44 = vrot.slane %v2009_v12, %v6949_v55  ;;  %v8562_v12 = vrot.slane %v2205_v48, %v6949_v55 }
 0x229   : > { %12440 = vst [vmem:[#allocation181_spill] sm:$0xff] %v8371_v58  ;;  %12441 = vst [vmem:[#allocation182_spill] sm:$0xff] %v8373_v0  ;;  %v8580_v48 = vrot.slane %v2401_v25, %v6949_v55  ;;  %v2793_v8 = vcombine.high %v12467_v34, %v12413_v53  ;;  %v8598_v25 = vrot.slane %v2597_v61, %v6949_v55  ;;  %v12471_v34 = vld [vmem:[#allocation145_spill] sm:$0xff] }
 0x22a   : > { %4243 = vrot.lane.b32.xlu1 %v3202_v23, %s6740_s23  ;;  %4245 = vrot.lane.b32.xlu0 %v3300_v49, %s6740_s23  ;;  %v2989_v62 = vcombine.high %v12471_v34, %v12413_v53  ;;  %v3185_v34 = vcombine.high %v8160_v47, %v12413_v53  ;;  %v12477_v47 = vld [vmem:[#allocation147_spill] sm:$0xff]  ;;  %v655_v40 = vcombine.high %v8418_v29, %v12413_v53 }
 0x22b   : > { %v8616_v61 = vrot.slane %v2793_v8, %v6949_v55 }
 0x22c   : > { %v8383_v57 = vpop.permute.xlu1 %4067  ;;  %v8385_v31 = vpop.permute.xlu0 %4069  ;;  %v8634_v8 = vrot.slane %v2989_v62, %v6949_v55  ;;  %v8652_v62 = vrot.slane %v3185_v34, %v6949_v55 }
 0x22d   : > { %12442 = vst [vmem:[#allocation183_spill] sm:$0xff] %v8383_v57  ;;  %12443 = vst [vmem:[#allocation184_spill] sm:$0xff] %v8385_v31  ;;  %v8404_v57 = vrot.slane %v539_v13, %v6949_v55  ;;  %v8421_v13 = vrot.slane %v735_v10, %v6949_v55  ;;  %v8439_v10 = vrot.slane %v931_v20, %v6949_v55 }
 0x22e   : > { %4247 = vrot.lane.b32.xlu1 %v3398_v2, %s6740_s23  ;;  %4249 = vrot.lane.b32.xlu0 %v3496_v22, %s6740_s23  ;;  %v8457_v20 = vrot.slane %v1127_v52, %v6949_v55  ;;  %v8475_v52 = vrot.slane %v1323_v24, %v6949_v55  ;;  %v8493_v24 = vrot.slane %v1519_v5, %v6949_v55 }
 0x22f   : > { %v8511_v5 = vrot.slane %v1715_v59, %v6949_v55  ;;  %v8529_v59 = vrot.slane %v1911_v7, %v6949_v55  ;;  %v8547_v7 = vrot.slane %v2107_v14, %v6949_v55  ;;  %v8565_v14 = vrot.slane %v2303_v41, %v6949_v55 }
 0x230   : > { %v8397_v23 = vpop.permute.xlu1 %4071  ;;  %v8399_v49 = vpop.permute.xlu0 %4073  ;;  %v8583_v41 = vrot.slane %v2499_v27, %v6949_v55 }
 0x231   : > { %12444 = vst [vmem:[#allocation185_spill] sm:$0xff] %v8397_v23  ;;  %12445 = vst [vmem:[#allocation186_spill] sm:$0xff] %v8399_v49 }
 0x232   : > { %4251 = vrot.lane.b32.xlu1 %v3594_v1, %s6740_s23  ;;  %4317 = vrot.lane.b32.xlu0 %v8404_v57, %s6741_s18 }
 0x234   : > { %v8413_v36 = vpop.permute.xlu1 %4075  ;;  %v8415_v2 = vpop.permute.xlu0 %4077 }
 0x235   : > { %12446 = vst [vmem:[#allocation187_spill] sm:$0xff] %v8413_v36  ;;  %12447 = vst [vmem:[#allocation188_spill] sm:$0xff] %v8415_v2  ;;  %v12542_v2 = vld [vmem:[#allocation42_spill] sm:$0xff] }
 0x236   : > { %4319 = vrot.lane.b32.xlu1 %v8418_v29, %s6741_s18  ;;  %4321 = vrot.lane.b32.xlu0 %v8421_v13, %s6741_s18 }
 0x238   : > { %v8431_v22 = vpop.permute.xlu1 %4079  ;;  %v8433_v1 = vpop.permute.xlu0 %4081 }
 0x239   : > { %12448 = vst [vmem:[#allocation189_spill] sm:$0xff] %v8431_v22  ;;  %12449 = vst [vmem:[#allocation190_spill] sm:$0xff] %v8433_v1 }
 0x23a   : > { %4323 = vrot.lane.b32.xlu1 %v8436_v19, %s6741_s18  ;;  %4325 = vrot.lane.b32.xlu0 %v8439_v10, %s6741_s18 }
 0x23c   : > { %v8449_v36 = vpop.permute.xlu1 %4083  ;;  %v8451_v1 = vpop.permute.xlu0 %4085 }
 0x23d   : > { %12450 = vst [vmem:[#allocation191_spill] sm:$0xff] %v8449_v36  ;;  %12451 = vst [vmem:[#allocation192_spill] sm:$0xff] %v8451_v1 }
 0x23e   : > { %4327 = vrot.lane.b32.xlu1 %v8454_v51, %s6741_s18  ;;  %4329 = vrot.lane.b32.xlu0 %v8457_v20, %s6741_s18 }
 0x240   : > { %v8467_v36 = vpop.permute.xlu1 %4087  ;;  %v8469_v49 = vpop.permute.xlu0 %4089 }
 0x241   : > { %12452 = vst [vmem:[#allocation193_spill] sm:$0xff] %v8467_v36  ;;  %12453 = vst [vmem:[#allocation194_spill] sm:$0xff] %v8469_v49 }
 0x242   : > { %4331 = vrot.lane.b32.xlu1 %v8472_v6, %s6741_s18  ;;  %4333 = vrot.lane.b32.xlu0 %v8475_v52, %s6741_s18 }
 0x244   : > { %v8485_v0 = vpop.permute.xlu1 %4091  ;;  %v8487_v49 = vpop.permute.xlu0 %4093 }
 0x245   : > { %12454 = vst [vmem:[#allocation195_spill] sm:$0xff] %v8485_v0  ;;  %12455 = vst [vmem:[#allocation196_spill] sm:$0xff] %v8487_v49 }
 0x246   : > { %4335 = vrot.lane.b32.xlu1 %v8490_v16, %s6741_s18  ;;  %4337 = vrot.lane.b32.xlu0 %v8493_v24, %s6741_s18 }
 0x248   : > { %v8503_v0 = vpop.permute.xlu1 %4095  ;;  %v8505_v4 = vpop.permute.xlu0 %4097 }
 0x249   : > { %12456 = vst [vmem:[#allocation197_spill] sm:$0xff] %v8503_v0  ;;  %12457 = vst [vmem:[#allocation198_spill] sm:$0xff] %v8505_v4 }
 0x24a   : > { %4339 = vrot.lane.b32.xlu1 %v8508_v26, %s6741_s18  ;;  %4341 = vrot.lane.b32.xlu0 %v8511_v5, %s6741_s18 }
 0x24c   : > { %v8521_v60 = vpop.permute.xlu1 %4099  ;;  %v8523_v4 = vpop.permute.xlu0 %4101 }
 0x24d   : > { %12458 = vst [vmem:[#allocation199_spill] sm:$0xff] %v8521_v60  ;;  %12459 = vst [vmem:[#allocation200_spill] sm:$0xff] %v8523_v4 }
 0x24e   : > { %4343 = vrot.lane.b32.xlu1 %v8526_v35, %s6741_s18  ;;  %4345 = vrot.lane.b32.xlu0 %v8529_v59, %s6741_s18 }
 0x250   : > { %v8539_v60 = vpop.permute.xlu1 %4103  ;;  %v8541_v43 = vpop.permute.xlu0 %4105 }
 0x251   : > { %12460 = vst [vmem:[#allocation201_spill] sm:$0xff] %v8539_v60  ;;  %12461 = vst [vmem:[#allocation202_spill] sm:$0xff] %v8541_v43 }
 0x252   : > { %4347 = vrot.lane.b32.xlu1 %v8544_v44, %s6741_s18  ;;  %4349 = vrot.lane.b32.xlu0 %v8547_v7, %s6741_s18 }
 0x254   : > { %v8557_v50 = vpop.permute.xlu1 %4107  ;;  %v8559_v43 = vpop.permute.xlu0 %4109 }
 0x255   : > { %12462 = vst [vmem:[#allocation203_spill] sm:$0xff] %v8557_v50  ;;  %12463 = vst [vmem:[#allocation204_spill] sm:$0xff] %v8559_v43  ;;  %v2695_v50 = vcombine.high %v12464_v17, %v12413_v53  ;;  %v12468_v17 = vld [vmem:[#allocation59_spill] sm:$0xff] }
 0x256   : > { %4351 = vrot.lane.b32.xlu1 %v8562_v12, %s6741_s18  ;;  %4353 = vrot.lane.b32.xlu0 %v8565_v14, %s6741_s18  ;;  %v2891_v11 = vcombine.high %v12468_v17, %v12413_v53  ;;  %v12472_v17 = vld [vmem:[#allocation64_spill] sm:$0xff] }
 0x257   : > { %v8601_v27 = vrot.slane %v2695_v50, %v6949_v55 }
 0x258   : > { %v8575_v46 = vpop.permute.xlu1 %4111  ;;  %v8577_v30 = vpop.permute.xlu0 %4113  ;;  %v8619_v50 = vrot.slane %v2891_v11, %v6949_v55 }
 0x259   : > { %12465 = vst [vmem:[#allocation53_spill] sm:$0xff] %v8575_v46  ;;  %12466 = vst [vmem:[#allocation205_spill] sm:$0xff] %v8577_v30  ;;  %v3381_v46 = vcombine.high %v12477_v47, %v12413_v53  ;;  %v12481_v47 = vld [vmem:[#allocation150_spill] sm:$0xff] }
 0x25a   : > { %4355 = vrot.lane.b32.xlu1 %v8580_v48, %s6741_s18  ;;  %4357 = vrot.lane.b32.xlu0 %v8583_v41, %s6741_s18  ;;  %v3577_v60 = vcombine.high %v12481_v47, %v12413_v53 }
 0x25c   : > { %v8593_v45 = vpop.permute.xlu1 %4115  ;;  %v8595_v30 = vpop.permute.xlu0 %4117  ;;  %v8682_v47 = vrot.slane %v3577_v60, %v6949_v55  ;;  %v753_v60 = vcombine.high %v8421_v13, %v12413_v53 }
 0x25d   : > { %12469 = vst [vmem:[#allocation143_spill] sm:$0xff] %v8593_v45  ;;  %12470 = vst [vmem:[#allocation59_spill] sm:$0xff] %v8595_v30  ;;  %v3087_v45 = vcombine.high %v12472_v17, %v12413_v53  ;;  %v3283_v17 = vcombine.high %v8165_v56, %v12413_v53  ;;  %v12478_v56 = vld [vmem:[#allocation148_spill] sm:$0xff] }
 0x25e   : > { %4359 = vrot.lane.b32.xlu1 %v8598_v25, %s6741_s18  ;;  %4361 = vrot.lane.b32.xlu0 %v8601_v27, %s6741_s18  ;;  %v3479_v3 = vcombine.high %v12478_v56, %v12413_v53 }
 0x25f   : > { %v8637_v11 = vrot.slane %v3087_v45, %v6949_v55  ;;  %v8655_v45 = vrot.slane %v3283_v17, %v6949_v55 }
 0x260   : > { %v8611_v42 = vpop.permute.xlu1 %4119  ;;  %v8613_v30 = vpop.permute.xlu0 %4121  ;;  %v8671_v34 = vrot.slane %v3479_v3, %v6949_v55 }
 0x261   : > { %12473 = vst [vmem:[#allocation145_spill] sm:$0xff] %v8611_v42  ;;  %12474 = vst [vmem:[#allocation64_spill] sm:$0xff] %v8613_v30  ;;  %v12554_v30 = vld [vmem:[#allocation62_spill] sm:$0xff] }
 0x262   : > { %4363 = vrot.lane.b32.xlu1 %v8616_v61, %s6741_s18  ;;  %4365 = vrot.lane.b32.xlu0 %v8619_v50, %s6741_s18 }
 0x264   : > { %v8629_v42 = vpop.permute.xlu1 %4123  ;;  %v8631_v39 = vpop.permute.xlu0 %4189 }
 0x265   : > { %12475 = vst [vmem:[#allocation206_spill] sm:$0xff] %v8629_v42  ;;  %12476 = vst [vmem:[#allocation207_spill] sm:$0xff] %v8631_v39  ;;  %v12550_v39 = vld [vmem:[#allocation54_spill] sm:$0xff] }
 0x266   : > { %4367 = vrot.lane.b32.xlu1 %v8634_v8, %s6741_s18  ;;  %4369 = vrot.lane.b32.xlu0 %v8637_v11, %s6741_s18 }
 0x268   : > { %v8647_v43 = vpop.permute.xlu1 %4191  ;;  %v8649_v28 = vpop.permute.xlu0 %4193 }
 0x269   : > { %12479 = vst [vmem:[#allocation147_spill] sm:$0xff] %v8647_v43  ;;  %12480 = vst [vmem:[#allocation148_spill] sm:$0xff] %v8649_v28  ;;  %v8668_v28 = vrot.slane %v3381_v46, %v6949_v55  ;;  %v557_v46 = vcombine.high %v8404_v57, %v12413_v53 }
 0x26a   : > { %4371 = vrot.lane.b32.xlu1 %v8652_v62, %s6741_s18  ;;  %4373 = vrot.lane.b32.xlu0 %v8655_v45, %s6741_s18 }
 0x26c   : > { %v8663_v56 = vpop.permute.xlu1 %4195  ;;  %v8665_v18 = vpop.permute.xlu0 %4197 }
 0x26d   : > { %12482 = vst [vmem:[#allocation150_spill] sm:$0xff] %v8663_v56  ;;  %12483 = vst [vmem:[#allocation208_spill] sm:$0xff] %v8665_v18  ;;  %v12546_v18 = vld [vmem:[#allocation47_spill] sm:$0xff] }
 0x26e   : > { %4375 = vrot.lane.b32.xlu1 %v8668_v28, %s6741_s18  ;;  %4377 = vrot.lane.b32.xlu0 %v8671_v34, %s6741_s18 }
 0x270   : > { %v8677_v17 = vpop.permute.xlu1 %4199  ;;  %v8679_v4 = vpop.permute.xlu0 %4201 }
 0x271   : > { %12484 = vst [vmem:[#allocation209_spill] sm:$0xff] %v8677_v17  ;;  %12485 = vst [vmem:[#allocation210_spill] sm:$0xff] %v8679_v4 }
 0x272   : > { %4379 = vrot.lane.b32.xlu1 %v8682_v47, %s6741_s18  ;;  %4445 = vrot.lane.b32.xlu0 %v557_v46, %s6742_s24  ;;  %v851_v46 = vcombine.high %v8436_v19, %v12413_v53 }
 0x274   : > { %v8689_v3 = vpop.permute.xlu1 %4203  ;;  %v8691_v56 = vpop.permute.xlu0 %4205 }
 0x275   : > { %12486 = vst [vmem:[#allocation211_spill] sm:$0xff] %v8689_v3  ;;  %12487 = vst [vmem:[#allocation212_spill] sm:$0xff] %v8691_v56  ;;  %v949_v3 = vcombine.high %v8439_v10, %v12413_v53 }
 0x276   : > { %4447 = vrot.lane.b32.xlu1 %v655_v40, %s6742_s24  ;;  %4449 = vrot.lane.b32.xlu0 %v753_v60, %s6742_s24  ;;  %v1047_v40 = vcombine.high %v8454_v51, %v12413_v53  ;;  %v1145_v60 = vcombine.high %v8457_v20, %v12413_v53 }
 0x278   : > { %v8699_v57 = vpop.permute.xlu1 %4207  ;;  %v8701_v4 = vpop.permute.xlu0 %4209 }
 0x279   : > { %12488 = vst [vmem:[#allocation213_spill] sm:$0xff] %v8699_v57  ;;  %12489 = vst [vmem:[#allocation214_spill] sm:$0xff] %v8701_v4 }
 0x27a   : > { %4451 = vrot.lane.b32.xlu1 %v851_v46, %s6742_s24  ;;  %4453 = vrot.lane.b32.xlu0 %v949_v3, %s6742_s24  ;;  %v1243_v3 = vcombine.high %v8472_v6, %v12413_v53  ;;  %v1341_v46 = vcombine.high %v8475_v52, %v12413_v53 }
 0x27c   : > { %v8709_v29 = vpop.permute.xlu1 %4211  ;;  %v8711_v13 = vpop.permute.xlu0 %4213 }
 0x27d   : > { %12490 = vst [vmem:[#allocation215_spill] sm:$0xff] %v8709_v29  ;;  %12491 = vst [vmem:[#allocation216_spill] sm:$0xff] %v8711_v13 }
 0x27e   : > { %4455 = vrot.lane.b32.xlu1 %v1047_v40, %s6742_s24  ;;  %4457 = vrot.lane.b32.xlu0 %v1145_v60, %s6742_s24  ;;  %v1439_v40 = vcombine.high %v8490_v16, %v12413_v53  ;;  %v1537_v60 = vcombine.high %v8493_v24, %v12413_v53 }
 0x280   : > { %v8719_v19 = vpop.permute.xlu1 %4215  ;;  %v8721_v10 = vpop.permute.xlu0 %4217 }
 0x281   : > { %12492 = vst [vmem:[#allocation217_spill] sm:$0xff] %v8719_v19  ;;  %12493 = vst [vmem:[#allocation218_spill] sm:$0xff] %v8721_v10  ;;  %v12534_v19 = vld [vmem:[#allocation32_spill] sm:$0xff] }
 0x282   : > { %4459 = vrot.lane.b32.xlu1 %v1243_v3, %s6742_s24  ;;  %4461 = vrot.lane.b32.xlu0 %v1341_v46, %s6742_s24  ;;  %v1635_v3 = vcombine.high %v8508_v26, %v12413_v53  ;;  %v1733_v46 = vcombine.high %v8511_v5, %v12413_v53 }
 0x284   : > { %v8729_v51 = vpop.permute.xlu1 %4219  ;;  %v8731_v20 = vpop.permute.xlu0 %4221 }
 0x285   : > { %12494 = vst [vmem:[#allocation219_spill] sm:$0xff] %v8729_v51  ;;  %12495 = vst [vmem:[#allocation220_spill] sm:$0xff] %v8731_v20 }
 0x286   : > { %4463 = vrot.lane.b32.xlu1 %v1439_v40, %s6742_s24  ;;  %4465 = vrot.lane.b32.xlu0 %v1537_v60, %s6742_s24  ;;  %v1831_v40 = vcombine.high %v8526_v35, %v12413_v53  ;;  %v1929_v60 = vcombine.high %v8529_v59, %v12413_v53 }
 0x288   : > { %v8739_v6 = vpop.permute.xlu1 %4223  ;;  %v8741_v52 = vpop.permute.xlu0 %4225 }
 0x289   : > { %12496 = vst [vmem:[#allocation221_spill] sm:$0xff] %v8739_v6  ;;  %12497 = vst [vmem:[#allocation222_spill] sm:$0xff] %v8741_v52  ;;  %v12522_v52 = vld [vmem:[#allocation18_spill] sm:$0xff] }
 0x28a   : > { %4467 = vrot.lane.b32.xlu1 %v1635_v3, %s6742_s24  ;;  %4469 = vrot.lane.b32.xlu0 %v1733_v46, %s6742_s24  ;;  %v2027_v3 = vcombine.high %v8544_v44, %v12413_v53  ;;  %v2125_v46 = vcombine.high %v8547_v7, %v12413_v53 }
 0x28c   : > { %v8749_v16 = vpop.permute.xlu1 %4227  ;;  %v8751_v24 = vpop.permute.xlu0 %4229 }
 0x28d   : > { %12498 = vst [vmem:[#allocation223_spill] sm:$0xff] %v8749_v16  ;;  %12499 = vst [vmem:[#allocation224_spill] sm:$0xff] %v8751_v24  ;;  %v12530_v24 = vld [vmem:[#allocation27_spill] sm:$0xff] }
 0x28e   : > { %4471 = vrot.lane.b32.xlu1 %v1831_v40, %s6742_s24  ;;  %4473 = vrot.lane.b32.xlu0 %v1929_v60, %s6742_s24  ;;  %v2223_v40 = vcombine.high %v8562_v12, %v12413_v53  ;;  %v2321_v60 = vcombine.high %v8565_v14, %v12413_v53 }
 0x290   : > { %v8759_v26 = vpop.permute.xlu1 %4231  ;;  %v8761_v5 = vpop.permute.xlu0 %4233 }
 0x291   : > { %12500 = vst [vmem:[#allocation225_spill] sm:$0xff] %v8759_v26  ;;  %12501 = vst [vmem:[#allocation226_spill] sm:$0xff] %v8761_v5 }
 0x292   : > { %4475 = vrot.lane.b32.xlu1 %v2027_v3, %s6742_s24  ;;  %4477 = vrot.lane.b32.xlu0 %v2125_v46, %s6742_s24  ;;  %v2419_v3 = vcombine.high %v8580_v48, %v12413_v53  ;;  %v2517_v46 = vcombine.high %v8583_v41, %v12413_v53 }
 0x294   : > { %v8769_v35 = vpop.permute.xlu1 %4235  ;;  %v8771_v59 = vpop.permute.xlu0 %4237 }
 0x295   : > { %12502 = vst [vmem:[#allocation227_spill] sm:$0xff] %v8769_v35  ;;  %12503 = vst [vmem:[#allocation228_spill] sm:$0xff] %v8771_v59  ;;  %v12519_v35 = vld [vmem:[#allocation16_spill] sm:$0xff] }
 0x296   : > { %4479 = vrot.lane.b32.xlu1 %v2223_v40, %s6742_s24  ;;  %4481 = vrot.lane.b32.xlu0 %v2321_v60, %s6742_s24  ;;  %v2615_v40 = vcombine.high %v8598_v25, %v12413_v53  ;;  %v2713_v60 = vcombine.high %v8601_v27, %v12413_v53 }
 0x298   : > { %v8779_v44 = vpop.permute.xlu1 %4239  ;;  %v8781_v7 = vpop.permute.xlu0 %4241 }
 0x299   : > { %12504 = vst [vmem:[#allocation229_spill] sm:$0xff] %v8779_v44  ;;  %12505 = vst [vmem:[#allocation230_spill] sm:$0xff] %v8781_v7  ;;  %v3399_v7 = vcombine.high %v8668_v28, %v12413_v53 }
 0x29a   : > { %4483 = vrot.lane.b32.xlu1 %v2419_v3, %s6742_s24  ;;  %4485 = vrot.lane.b32.xlu0 %v2517_v46, %s6742_s24  ;;  %v2811_v3 = vcombine.high %v8616_v61, %v12413_v53  ;;  %v2909_v46 = vcombine.high %v8619_v50, %v12413_v53 }
 0x29c   : > { %v8789_v12 = vpop.permute.xlu1 %4243  ;;  %v8791_v14 = vpop.permute.xlu0 %4245 }
 0x29d   : > { %12506 = vst [vmem:[#allocation231_spill] sm:$0xff] %v8789_v12  ;;  %12507 = vst [vmem:[#allocation232_spill] sm:$0xff] %v8791_v14 }
 0x29e   : > { %4487 = vrot.lane.b32.xlu1 %v2615_v40, %s6742_s24  ;;  %4489 = vrot.lane.b32.xlu0 %v2713_v60, %s6742_s24  ;;  %v3007_v40 = vcombine.high %v8634_v8, %v12413_v53  ;;  %v3105_v60 = vcombine.high %v8637_v11, %v12413_v53  ;;  %v12514_v8 = vld [vmem:[#allocation11_spill] sm:$0xff]  ;;  %v12515_v11 = vld [vmem:[#allocation13_spill] sm:$0xff] }
 0x29f   : > { %v8831_v12 = vrot.slane %v12515_v11, %v12514_v8  ;;  %v8853_v5 = vrot.slane %v12519_v35, %v12514_v8  ;;  %v8922_v6 = vrot.slane %v12530_v24, %v12514_v8  ;;  %v8946_v36 = vrot.slane %v12534_v19, %v12514_v8 }
 0x2a0   : > { %v8799_v48 = vpop.permute.xlu1 %4247  ;;  %v8801_v41 = vpop.permute.xlu0 %4249  ;;  %v8994_v38 = vrot.slane %v12542_v2, %v12514_v8  ;;  %v9018_v31 = vrot.slane %v12546_v18, %v12514_v8  ;;  %v9042_v42 = vrot.slane %v12550_v39, %v12514_v8  ;;  %v9066_v9 = vrot.slane %v12554_v30, %v12514_v8 }
 0x2a1   : > { %12508 = vst [vmem:[#allocation233_spill] sm:$0xff] %v8799_v48  ;;  %12509 = vst [vmem:[#allocation234_spill] sm:$0xff] %v8801_v41  ;;  %v8938_v49 = vrot.slane %v8922_v6, %v6949_v55  ;;  %v8962_v1 = vrot.slane %v8946_v36, %v6949_v55 }
 0x2a2   : > { %4491 = vrot.lane.b32.xlu1 %v2811_v3, %s6742_s24  ;;  %4493 = vrot.lane.b32.xlu0 %v2909_v46, %s6742_s24  ;;  %v3203_v3 = vcombine.high %v8652_v62, %v12413_v53  ;;  %v3301_v46 = vcombine.high %v8655_v45, %v12413_v53  ;;  %v3497_v62 = vcombine.high %v8671_v34, %v12413_v53  ;;  %v12518_v45 = vld [vmem:[#allocation12_spill] sm:$0xff] }
 0x2a3   : > { %v3595_v34 = vcombine.high %v8682_v47, %v12413_v53  ;;  %v12523_v47 = vld [vmem:[#allocation20_spill] sm:$0xff]  ;;  %v9010_v23 = vrot.slane %v8994_v38, %v6949_v55  ;;  %v9058_v33 = vrot.slane %v9042_v42, %v6949_v55 }
 0x2a4   : > { %v8809_v25 = vpop.permute.xlu1 %4251  ;;  %v8811_v27 = vpop.permute.xlu0 %4317  ;;  %v8878_v51 = vrot.slane %v12523_v47, %v12514_v8 }
 0x2a5   : > { %12510 = vst [vmem:[#allocation235_spill] sm:$0xff] %v8809_v25  ;;  %12511 = vst [vmem:[#allocation236_spill] sm:$0xff] %v8811_v27  ;;  %v9034_v25 = vrot.slane %v9018_v31, %v6949_v55 }
 0x2a6   : > { %4495 = vrot.lane.b32.xlu1 %v3007_v40, %s6742_s24  ;;  %4497 = vrot.lane.b32.xlu0 %v3105_v60, %s6742_s24  ;;  %v8894_v4 = vrot.slane %v8878_v51, %v6949_v55 }
 0x2a8   : > { %v8819_v61 = vpop.permute.xlu1 %4319  ;;  %v8821_v50 = vpop.permute.xlu0 %4321 }
 0x2a9   : > { %12512 = vst [vmem:[#allocation237_spill] sm:$0xff] %v8819_v61  ;;  %12513 = vst [vmem:[#allocation238_spill] sm:$0xff] %v8821_v50 }
 0x2aa   : > { %4499 = vrot.lane.b32.xlu1 %v3203_v3, %s6742_s24  ;;  %4501 = vrot.lane.b32.xlu0 %v3301_v46, %s6742_s24  ;;  %v8845_v3 = vrot.slane %v12518_v45, %v12514_v8  ;;  %v8849_v46 = vrot.slane %v8831_v12, %v6949_v55 }
 0x2ac   : > { %v8833_v40 = vpop.permute.xlu1 %4323  ;;  %v8835_v60 = vpop.permute.xlu0 %4325 }
 0x2ad   : > { %12516 = vst [vmem:[#allocation239_spill] sm:$0xff] %v8833_v40  ;;  %12517 = vst [vmem:[#allocation240_spill] sm:$0xff] %v8835_v60  ;;  %v12526_v40 = vld [vmem:[#allocation22_spill] sm:$0xff] }
 0x2ae   : > { %4503 = vrot.lane.b32.xlu1 %v3399_v7, %s6742_s24  ;;  %4505 = vrot.lane.b32.xlu0 %v3497_v62, %s6742_s24  ;;  %v8866_v7 = vrot.slane %v8845_v3, %v6949_v55  ;;  %v8870_v62 = vrot.slane %v8853_v5, %v6949_v55  ;;  %v8898_v50 = vrot.slane %v12526_v40, %v12514_v8 }
 0x2b0   : > { %v8855_v28 = vpop.permute.xlu1 %4327  ;;  %v8857_v16 = vpop.permute.xlu0 %4329  ;;  %v8914_v59 = vrot.slane %v8898_v50, %v6949_v55 }
 0x2b1   : > { %12520 = vst [vmem:[#allocation241_spill] sm:$0xff] %v8855_v28  ;;  %12521 = vst [vmem:[#allocation242_spill] sm:$0xff] %v8857_v16  ;;  %v8874_v16 = vrot.slane %v12522_v52, %v12514_v8 }
 0x2b2   : > { %4507 = vrot.lane.b32.xlu1 %v3595_v34, %s6742_s24  ;;  %4573 = vrot.lane.b32.xlu0 %v8849_v46, %s6743_s28 }
 0x2b3   : > { %v8890_v29 = vrot.slane %v8874_v16, %v6949_v55 }
 0x2b4   : > { %v8880_v34 = vpop.permute.xlu1 %4331  ;;  %v8882_v10 = vpop.permute.xlu0 %4333 }
 0x2b5   : > { %12524 = vst [vmem:[#allocation243_spill] sm:$0xff] %v8880_v34  ;;  %12525 = vst [vmem:[#allocation244_spill] sm:$0xff] %v8882_v10  ;;  %v12527_v34 = vld [vmem:[#allocation24_spill] sm:$0xff] }
 0x2b6   : > { %4575 = vrot.lane.b32.xlu1 %v8866_v7, %s6743_s28  ;;  %4577 = vrot.lane.b32.xlu0 %v8870_v62, %s6743_s28  ;;  %v8902_v48 = vrot.slane %v12527_v34, %v12514_v8 }
 0x2b8   : > { %v8904_v14 = vpop.permute.xlu1 %4335  ;;  %v8906_v44 = vpop.permute.xlu0 %4337  ;;  %v8918_v26 = vrot.slane %v8902_v48, %v6949_v55 }
 0x2b9   : > { %12528 = vst [vmem:[#allocation245_spill] sm:$0xff] %v8904_v14  ;;  %12529 = vst [vmem:[#allocation246_spill] sm:$0xff] %v8906_v44  ;;  %v12531_v44 = vld [vmem:[#allocation29_spill] sm:$0xff] }
 0x2ba   : > { %4579 = vrot.lane.b32.xlu1 %v8890_v29, %s6743_s28  ;;  %4581 = vrot.lane.b32.xlu0 %v8894_v4, %s6743_s28  ;;  %v8926_v0 = vrot.slane %v12531_v44, %v12514_v8  ;;  %v12538_v14 = vld [vmem:[#allocation37_spill] sm:$0xff] }
 0x2bb   : > { %v8970_v57 = vrot.slane %v12538_v14, %v12514_v8 }
 0x2bc   : > { %v8928_v32 = vpop.permute.xlu1 %4339  ;;  %v8930_v20 = vpop.permute.xlu0 %4341  ;;  %v8942_v21 = vrot.slane %v8926_v0, %v6949_v55 }
 0x2bd   : > { %12532 = vst [vmem:[#allocation247_spill] sm:$0xff] %v8928_v32  ;;  %12533 = vst [vmem:[#allocation248_spill] sm:$0xff] %v8930_v20  ;;  %v12535_v32 = vld [vmem:[#allocation34_spill] sm:$0xff]  ;;  %v8986_v10 = vrot.slane %v8970_v57, %v6949_v55 }
 0x2be   : > { %4583 = vrot.lane.b32.xlu1 %v8914_v59, %s6743_s28  ;;  %4585 = vrot.lane.b32.xlu0 %v8918_v26, %s6743_s28  ;;  %v8950_v37 = vrot.slane %v12535_v32, %v12514_v8 }
 0x2c0   : > { %v8952_v20 = vpop.permute.xlu1 %4343  ;;  %v8954_v13 = vpop.permute.xlu0 %4345  ;;  %v8966_v63 = vrot.slane %v8950_v37, %v6949_v55 }
 0x2c1   : > { %12536 = vst [vmem:[#allocation249_spill] sm:$0xff] %v8952_v20  ;;  %12537 = vst [vmem:[#allocation250_spill] sm:$0xff] %v8954_v13  ;;  %v12539_v13 = vld [vmem:[#allocation39_spill] sm:$0xff] }
 0x2c2   : > { %4587 = vrot.lane.b32.xlu1 %v8938_v49, %s6743_s28  ;;  %4589 = vrot.lane.b32.xlu0 %v8942_v21, %s6743_s28  ;;  %v8974_v20 = vrot.slane %v12539_v13, %v12514_v8 }
 0x2c4   : > { %v8976_v22 = vpop.permute.xlu1 %4347  ;;  %v8978_v15 = vpop.permute.xlu0 %4349  ;;  %v8990_v56 = vrot.slane %v8974_v20, %v6949_v55 }
 0x2c5   : > { %12540 = vst [vmem:[#allocation251_spill] sm:$0xff] %v8976_v22  ;;  %12541 = vst [vmem:[#allocation252_spill] sm:$0xff] %v8978_v15  ;;  %v12543_v22 = vld [vmem:[#allocation44_spill] sm:$0xff] }
 0x2c6   : > { %4591 = vrot.lane.b32.xlu1 %v8962_v1, %s6743_s28  ;;  %4593 = vrot.lane.b32.xlu0 %v8966_v63, %s6743_s28  ;;  %v8998_v15 = vrot.slane %v12543_v22, %v12514_v8 }
 0x2c8   : > { %v9000_v28 = vpop.permute.xlu1 %4351  ;;  %v9002_v17 = vpop.permute.xlu0 %4353  ;;  %v9014_v60 = vrot.slane %v8998_v15, %v6949_v55 }
 0x2c9   : > { %12544 = vst [vmem:[#allocation253_spill] sm:$0xff] %v9000_v28  ;;  %12545 = vst [vmem:[#allocation254_spill] sm:$0xff] %v9002_v17  ;;  %v12547_v17 = vld [vmem:[#allocation49_spill] sm:$0xff] }
 0x2ca   : > { %4595 = vrot.lane.b32.xlu1 %v8986_v10, %s6743_s28  ;;  %4597 = vrot.lane.b32.xlu0 %v8990_v56, %s6743_s28  ;;  %v9022_v28 = vrot.slane %v12547_v17, %v12514_v8  ;;  %v9082_v17 = vrot.slane %v9066_v9, %v6949_v55 }
 0x2cc   : > { %v9024_v61 = vpop.permute.xlu1 %4355  ;;  %v9026_v27 = vpop.permute.xlu0 %4357  ;;  %v9038_v43 = vrot.slane %v9022_v28, %v6949_v55 }
 0x2cd   : > { %12548 = vst [vmem:[#allocation255_spill] sm:$0xff] %v9024_v61  ;;  %12549 = vst [vmem:[#allocation256_spill] sm:$0xff] %v9026_v27  ;;  %v12551_v61 = vld [vmem:[#allocation57_spill] sm:$0xff] }
 0x2ce   : > { %4599 = vrot.lane.b32.xlu1 %v9010_v23, %s6743_s28  ;;  %4601 = vrot.lane.b32.xlu0 %v9014_v60, %s6743_s28  ;;  %v9046_v27 = vrot.slane %v12551_v61, %v12514_v8 }
 0x2d0   : > { %v9048_v58 = vpop.permute.xlu1 %4359  ;;  %v9050_v54 = vpop.permute.xlu0 %4361  ;;  %v9062_v41 = vrot.slane %v9046_v27, %v6949_v55 }
 0x2d1   : > { %12552 = vst [vmem:[#allocation257_spill] sm:$0xff] %v9048_v58  ;;  %12553 = vst [vmem:[#allocation258_spill] sm:$0xff] %v9050_v54  ;;  %v12555_v54 = vld [vmem:[#allocation65_spill] sm:$0xff] }
 0x2d2   : > { %4603 = vrot.lane.b32.xlu1 %v9034_v25, %s6743_s28  ;;  %4605 = vrot.lane.b32.xlu0 %v9038_v43, %s6743_s28  ;;  %v9070_v58 = vrot.slane %v12555_v54, %v12514_v8  ;;  %v12558_v54 = vld [vmem:[#allocation70_spill] sm:$0xff] }
 0x2d3   : > { %v9090_v18 = vrot.slane %v12558_v54, %v12514_v8 }
 0x2d4   : > { %v9072_v61 = vpop.permute.xlu1 %4363  ;;  %v9074_v39 = vpop.permute.xlu0 %4365  ;;  %v9086_v30 = vrot.slane %v9070_v58, %v6949_v55 }
 0x2d5   : > { %12556 = vst [vmem:[#allocation259_spill] sm:$0xff] %v9072_v61  ;;  %12557 = vst [vmem:[#allocation260_spill] sm:$0xff] %v9074_v39  ;;  %v12559_v61 = vld [vmem:[#allocation73_spill] sm:$0xff]  ;;  %v9106_v13 = vrot.slane %v9090_v18, %v6949_v55 }
 0x2d6   : > { %4607 = vrot.lane.b32.xlu1 %v9058_v33, %s6743_s28  ;;  %4609 = vrot.lane.b32.xlu0 %v9062_v41, %s6743_s28  ;;  %v9094_v39 = vrot.slane %v12559_v61, %v12514_v8  ;;  %v12562_v61 = vld [vmem:[#allocation77_spill] sm:$0xff] }
 0x2d7   : > { %v9114_v14 = vrot.slane %v12562_v61, %v12514_v8 }
 0x2d8   : > { %v9096_v22 = vpop.permute.xlu1 %4367  ;;  %v9098_v2 = vpop.permute.xlu0 %4369  ;;  %v9110_v54 = vrot.slane %v9094_v39, %v6949_v55 }
 0x2d9   : > { %12560 = vst [vmem:[#allocation261_spill] sm:$0xff] %v9096_v22  ;;  %12561 = vst [vmem:[#allocation262_spill] sm:$0xff] %v9098_v2  ;;  %v12564_v2 = vld [vmem:[#allocation78_spill] sm:$0xff]  ;;  %v9130_v44 = vrot.slane %v9114_v14, %v6949_v55 }
 0x2da   : > { %4611 = vrot.lane.b32.xlu1 %v9082_v17, %s6743_s28  ;;  %4613 = vrot.lane.b32.xlu0 %v9086_v30, %s6743_s28  ;;  %12563 = vst [vmem:[#allocation263_spill] sm:$0xff] %v9114_v14  ;;  %v9118_v22 = vrot.slane %v12564_v2, %v12514_v8  ;;  %v12568_v2 = vld [vmem:[#allocation79_spill] sm:$0xff] }
 0x2db   : > { %v9138_v24 = vrot.slane %v12568_v2, %v12514_v8 }
 0x2dc   : > { %12565 = vst [vmem:[#allocation264_spill] sm:$0xff] %v9118_v22  ;;  %v9120_v32 = vpop.permute.xlu1 %4371  ;;  %v9122_v19 = vpop.permute.xlu0 %4373  ;;  %v9134_v61 = vrot.slane %v9118_v22, %v6949_v55 }
 0x2dd   : > { %12566 = vst [vmem:[#allocation265_spill] sm:$0xff] %v9120_v32  ;;  %12567 = vst [vmem:[#allocation266_spill] sm:$0xff] %v9122_v19  ;;  %v12570_v32 = vld [vmem:[#allocation80_spill] sm:$0xff]  ;;  %v9154_v47 = vrot.slane %v9138_v24, %v6949_v55 }
 0x2de   : > { %4615 = vrot.lane.b32.xlu1 %v9106_v13, %s6743_s28  ;;  %4617 = vrot.lane.b32.xlu0 %v9110_v54, %s6743_s28  ;;  %12569 = vst [vmem:[#allocation267_spill] sm:$0xff] %v9138_v24  ;;  %v9142_v19 = vrot.slane %v12570_v32, %v12514_v8  ;;  %v12574_v32 = vld [vmem:[#allocation81_spill] sm:$0xff] }
 0x2df   : > { %v9162_v52 = vrot.slane %v12574_v32, %v12514_v8 }
 0x2e0   : > { %12571 = vst [vmem:[#allocation268_spill] sm:$0xff] %v9142_v19  ;;  %v9144_v34 = vpop.permute.xlu1 %4375  ;;  %v9146_v40 = vpop.permute.xlu0 %4377  ;;  %v9158_v2 = vrot.slane %v9142_v19, %v6949_v55 }
 0x2e1   : > { %12572 = vst [vmem:[#allocation269_spill] sm:$0xff] %v9144_v34  ;;  %12573 = vst [vmem:[#allocation270_spill] sm:$0xff] %v9146_v40  ;;  %v12576_v34 = vld [vmem:[#allocation82_spill] sm:$0xff]  ;;  %v9178_v11 = vrot.slane %v9162_v52, %v6949_v55 }
 0x2e2   : > { %4619 = vrot.lane.b32.xlu1 %v9130_v44, %s6743_s28  ;;  %4621 = vrot.lane.b32.xlu0 %v9134_v61, %s6743_s28  ;;  %12575 = vst [vmem:[#allocation271_spill] sm:$0xff] %v9162_v52  ;;  %v9166_v40 = vrot.slane %v12576_v34, %v12514_v8  ;;  %v12580_v34 = vld [vmem:[#allocation83_spill] sm:$0xff] }
 0x2e3   : > { %v9186_v19 = vrot.slane %v12580_v34, %v12514_v8 }
 0x2e4   : > { %12577 = vst [vmem:[#allocation272_spill] sm:$0xff] %v9166_v40  ;;  %v9168_v35 = vpop.permute.xlu1 %4379  ;;  %v9170_v45 = vpop.permute.xlu0 %4445  ;;  %v9182_v32 = vrot.slane %v9166_v40, %v6949_v55 }
 0x2e5   : > { %12578 = vst [vmem:[#allocation273_spill] sm:$0xff] %v9168_v35  ;;  %12579 = vst [vmem:[#allocation274_spill] sm:$0xff] %v9170_v45  ;;  %v12582_v45 = vld [vmem:[#allocation84_spill] sm:$0xff]  ;;  %v9202_v40 = vrot.slane %v9186_v19, %v6949_v55 }
 0x2e6   : > { %4623 = vrot.lane.b32.xlu1 %v9154_v47, %s6743_s28  ;;  %4625 = vrot.lane.b32.xlu0 %v9158_v2, %s6743_s28  ;;  %12581 = vst [vmem:[#allocation275_spill] sm:$0xff] %v9186_v19  ;;  %v9190_v35 = vrot.slane %v12582_v45, %v12514_v8  ;;  %v12586_v45 = vld [vmem:[#allocation85_spill] sm:$0xff] }
 0x2e7   : > { %v9210_v52 = vrot.slane %v12586_v45, %v12514_v8  ;;  %v603_v45 = vcombine.high %v8849_v46, %v12413_v53  ;;  %v701_v8 = vcombine.high %v8866_v7, %v12413_v53 }
 0x2e8   : > { %12583 = vst [vmem:[#allocation276_spill] sm:$0xff] %v9190_v35  ;;  %v9192_v24 = vpop.permute.xlu1 %4447  ;;  %v9194_v22 = vpop.permute.xlu0 %4449  ;;  %v9206_v34 = vrot.slane %v9190_v35, %v6949_v55 }
 0x2e9   : > { %12584 = vst [vmem:[#allocation277_spill] sm:$0xff] %v9192_v24  ;;  %12585 = vst [vmem:[#allocation278_spill] sm:$0xff] %v9194_v22  ;;  %v9222_v19 = vrot.slane %v9210_v52, %v6949_v55 }
 0x2ea   : > { %4627 = vrot.lane.b32.xlu1 %v9178_v11, %s6743_s28  ;;  %4629 = vrot.lane.b32.xlu0 %v9182_v32, %s6743_s28 }
 0x2ec   : > { %v9212_v24 = vpop.permute.xlu1 %4451  ;;  %v9214_v22 = vpop.permute.xlu0 %4453 }
 0x2ed   : > { %12587 = vst [vmem:[#allocation279_spill] sm:$0xff] %v9212_v24  ;;  %12588 = vst [vmem:[#allocation280_spill] sm:$0xff] %v9214_v22 }
 0x2ee   : > { %4631 = vrot.lane.b32.xlu1 %v9202_v40, %s6743_s28  ;;  %4633 = vrot.lane.b32.xlu0 %v9206_v34, %s6743_s28 }
 0x2f0   : > { %v9224_v35 = vpop.permute.xlu1 %4455  ;;  %v9226_v14 = vpop.permute.xlu0 %4457 }
 0x2f1   : > { %12589 = vst [vmem:[#allocation281_spill] sm:$0xff] %v9224_v35  ;;  %12590 = vst [vmem:[#allocation282_spill] sm:$0xff] %v9226_v14  ;;  %v799_v35 = vcombine.high %v8870_v62, %v12413_v53 }
 0x2f2   : > { %4635 = vrot.lane.b32.xlu1 %v9222_v19, %s6743_s28  ;;  %4701 = vrot.lane.b32.xlu0 %v603_v45, %s6744_s29  ;;  %v897_v45 = vcombine.high %v8890_v29, %v12413_v53 }
 0x2f4   : > { %v9233_v24 = vpop.permute.xlu1 %4459  ;;  %v9235_v22 = vpop.permute.xlu0 %4461 }
 0x2f5   : > { %12591 = vst [vmem:[#allocation283_spill] sm:$0xff] %v9233_v24  ;;  %12592 = vst [vmem:[#allocation284_spill] sm:$0xff] %v9235_v22  ;;  %v995_v24 = vcombine.high %v8894_v4, %v12413_v53 }
 0x2f6   : > { %4703 = vrot.lane.b32.xlu1 %v701_v8, %s6744_s29  ;;  %4705 = vrot.lane.b32.xlu0 %v799_v35, %s6744_s29  ;;  %v1093_v35 = vcombine.high %v8914_v59, %v12413_v53  ;;  %v1191_v8 = vcombine.high %v8918_v26, %v12413_v53 }
 0x2f8   : > { %v9243_v46 = vpop.permute.xlu1 %4463  ;;  %v9245_v14 = vpop.permute.xlu0 %4465 }
 0x2f9   : > { %12593 = vst [vmem:[#allocation285_spill] sm:$0xff] %v9243_v46  ;;  %12594 = vst [vmem:[#allocation286_spill] sm:$0xff] %v9245_v14 }
 0x2fa   : > { %4707 = vrot.lane.b32.xlu1 %v897_v45, %s6744_s29  ;;  %4709 = vrot.lane.b32.xlu0 %v995_v24, %s6744_s29  ;;  %v1289_v24 = vcombine.high %v8938_v49, %v12413_v53  ;;  %v1387_v45 = vcombine.high %v8942_v21, %v12413_v53 }
 0x2fc   : > { %v9253_v7 = vpop.permute.xlu1 %4467  ;;  %v9255_v62 = vpop.permute.xlu0 %4469 }
 0x2fd   : > { %12595 = vst [vmem:[#allocation287_spill] sm:$0xff] %v9253_v7  ;;  %12596 = vst [vmem:[#allocation288_spill] sm:$0xff] %v9255_v62 }
 0x2fe   : > { %4711 = vrot.lane.b32.xlu1 %v1093_v35, %s6744_s29  ;;  %4713 = vrot.lane.b32.xlu0 %v1191_v8, %s6744_s29  ;;  %v1485_v35 = vcombine.high %v8962_v1, %v12413_v53  ;;  %v1583_v8 = vcombine.high %v8966_v63, %v12413_v53 }
 0x300   : > { %v9263_v29 = vpop.permute.xlu1 %4471  ;;  %v9265_v4 = vpop.permute.xlu0 %4473 }
 0x301   : > { %12597 = vst [vmem:[#allocation289_spill] sm:$0xff] %v9263_v29  ;;  %12598 = vst [vmem:[#allocation290_spill] sm:$0xff] %v9265_v4 }
 0x302   : > { %4715 = vrot.lane.b32.xlu1 %v1289_v24, %s6744_s29  ;;  %4717 = vrot.lane.b32.xlu0 %v1387_v45, %s6744_s29  ;;  %v1681_v24 = vcombine.high %v8986_v10, %v12413_v53  ;;  %v1779_v45 = vcombine.high %v8990_v56, %v12413_v53 }
 0x304   : > { %v9273_v59 = vpop.permute.xlu1 %4475  ;;  %v9275_v26 = vpop.permute.xlu0 %4477 }
 0x305   : > { %12599 = vst [vmem:[#allocation291_spill] sm:$0xff] %v9273_v59  ;;  %12600 = vst [vmem:[#allocation292_spill] sm:$0xff] %v9275_v26  ;;  %v12718_v26 = vld [vmem:[#allocation44_spill] sm:$0xff] }
 0x306   : > { %4719 = vrot.lane.b32.xlu1 %v1485_v35, %s6744_s29  ;;  %4721 = vrot.lane.b32.xlu0 %v1583_v8, %s6744_s29  ;;  %v1877_v35 = vcombine.high %v9010_v23, %v12413_v53  ;;  %v1975_v8 = vcombine.high %v9014_v60, %v12413_v53 }
 0x308   : > { %v9283_v49 = vpop.permute.xlu1 %4479  ;;  %v9285_v21 = vpop.permute.xlu0 %4481 }
 0x309   : > { %12601 = vst [vmem:[#allocation293_spill] sm:$0xff] %v9283_v49  ;;  %12602 = vst [vmem:[#allocation294_spill] sm:$0xff] %v9285_v21 }
 0x30a   : > { %4723 = vrot.lane.b32.xlu1 %v1681_v24, %s6744_s29  ;;  %4725 = vrot.lane.b32.xlu0 %v1779_v45, %s6744_s29  ;;  %v2073_v24 = vcombine.high %v9034_v25, %v12413_v53  ;;  %v2171_v45 = vcombine.high %v9038_v43, %v12413_v53 }
 0x30c   : > { %v9293_v1 = vpop.permute.xlu1 %4483  ;;  %v9295_v63 = vpop.permute.xlu0 %4485 }
 0x30d   : > { %12603 = vst [vmem:[#allocation295_spill] sm:$0xff] %v9293_v1  ;;  %12604 = vst [vmem:[#allocation296_spill] sm:$0xff] %v9295_v63 }
 0x30e   : > { %4727 = vrot.lane.b32.xlu1 %v1877_v35, %s6744_s29  ;;  %4729 = vrot.lane.b32.xlu0 %v1975_v8, %s6744_s29  ;;  %v2269_v35 = vcombine.high %v9058_v33, %v12413_v53  ;;  %v2367_v8 = vcombine.high %v9062_v41, %v12413_v53 }
 0x310   : > { %v9303_v10 = vpop.permute.xlu1 %4487  ;;  %v9305_v56 = vpop.permute.xlu0 %4489 }
 0x311   : > { %12605 = vst [vmem:[#allocation297_spill] sm:$0xff] %v9303_v10  ;;  %12606 = vst [vmem:[#allocation298_spill] sm:$0xff] %v9305_v56 }
 0x312   : > { %4731 = vrot.lane.b32.xlu1 %v2073_v24, %s6744_s29  ;;  %4733 = vrot.lane.b32.xlu0 %v2171_v45, %s6744_s29  ;;  %v2465_v24 = vcombine.high %v9082_v17, %v12413_v53  ;;  %v2563_v45 = vcombine.high %v9086_v30, %v12413_v53 }
 0x314   : > { %v9313_v23 = vpop.permute.xlu1 %4491  ;;  %v9315_v60 = vpop.permute.xlu0 %4493 }
 0x315   : > { %12607 = vst [vmem:[#allocation299_spill] sm:$0xff] %v9313_v23  ;;  %12608 = vst [vmem:[#allocation300_spill] sm:$0xff] %v9315_v60 }
 0x316   : > { %4735 = vrot.lane.b32.xlu1 %v2269_v35, %s6744_s29  ;;  %4737 = vrot.lane.b32.xlu0 %v2367_v8, %s6744_s29  ;;  %v2661_v35 = vcombine.high %v9106_v13, %v12413_v53  ;;  %v2759_v8 = vcombine.high %v9110_v54, %v12413_v53 }
 0x318   : > { %v9323_v25 = vpop.permute.xlu1 %4495  ;;  %v9325_v43 = vpop.permute.xlu0 %4497 }
 0x319   : > { %12609 = vst [vmem:[#allocation301_spill] sm:$0xff] %v9323_v25  ;;  %12610 = vst [vmem:[#allocation302_spill] sm:$0xff] %v9325_v43 }
 0x31a   : > { %4739 = vrot.lane.b32.xlu1 %v2465_v24, %s6744_s29  ;;  %4741 = vrot.lane.b32.xlu0 %v2563_v45, %s6744_s29  ;;  %v2857_v24 = vcombine.high %v9130_v44, %v12413_v53  ;;  %v2955_v45 = vcombine.high %v9134_v61, %v12413_v53 }
 0x31c   : > { %v9333_v33 = vpop.permute.xlu1 %4499  ;;  %v9335_v41 = vpop.permute.xlu0 %4501 }
 0x31d   : > { %12611 = vst [vmem:[#allocation303_spill] sm:$0xff] %v9333_v33  ;;  %12612 = vst [vmem:[#allocation304_spill] sm:$0xff] %v9335_v41 }
 0x31e   : > { %4743 = vrot.lane.b32.xlu1 %v2661_v35, %s6744_s29  ;;  %4745 = vrot.lane.b32.xlu0 %v2759_v8, %s6744_s29  ;;  %v3053_v35 = vcombine.high %v9154_v47, %v12413_v53  ;;  %v3151_v8 = vcombine.high %v9158_v2, %v12413_v53  ;;  %v573_v2 = vcombine.high %v8831_v12, %v12413_v53 }
 0x31f   : > { %v769_v12 = vcombine.high %v8853_v5, %v12413_v53  ;;  %v965_v5 = vcombine.high %v8878_v51, %v12413_v53  ;;  %v1161_v51 = vcombine.high %v8902_v48, %v12413_v53  ;;  %v1357_v48 = vcombine.high %v8926_v0, %v12413_v53 }
 0x320   : > { %v9343_v17 = vpop.permute.xlu1 %4503  ;;  %v9345_v30 = vpop.permute.xlu0 %4505  ;;  %v9396_v33 = vrot.slane %v573_v2, %v6949_v55  ;;  %v1553_v0 = vcombine.high %v8950_v37, %v12413_v53  ;;  %v1749_v37 = vcombine.high %v8974_v20, %v12413_v53  ;;  %v1945_v20 = vcombine.high %v8998_v15, %v12413_v53 }
 0x321   : > { %12613 = vst [vmem:[#allocation305_spill] sm:$0xff] %v9343_v17  ;;  %12614 = vst [vmem:[#allocation306_spill] sm:$0xff] %v9345_v30  ;;  %v9413_v2 = vrot.slane %v769_v12, %v6949_v55  ;;  %v9431_v12 = vrot.slane %v965_v5, %v6949_v55  ;;  %v9449_v5 = vrot.slane %v1161_v51, %v6949_v55 }
 0x322   : > { %4747 = vrot.lane.b32.xlu1 %v2857_v24, %s6744_s29  ;;  %4749 = vrot.lane.b32.xlu0 %v2955_v45, %s6744_s29  ;;  %v3249_v24 = vcombine.high %v9178_v11, %v12413_v53  ;;  %v3347_v45 = vcombine.high %v9182_v32, %v12413_v53  ;;  %v3543_v11 = vcombine.high %v9206_v34, %v12413_v53 }
 0x323   : > { %v671_v32 = vcombine.high %v8845_v3, %v12413_v53  ;;  %v867_v3 = vcombine.high %v8874_v16, %v12413_v53  ;;  %v1063_v16 = vcombine.high %v8898_v50, %v12413_v53  ;;  %v1259_v50 = vcombine.high %v8922_v6, %v12413_v53 }
 0x324   : > { %v9353_v13 = vpop.permute.xlu1 %4507  ;;  %v9355_v54 = vpop.permute.xlu0 %4573  ;;  %v1455_v6 = vcombine.high %v8946_v36, %v12413_v53  ;;  %v9467_v51 = vrot.slane %v1357_v48, %v6949_v55  ;;  %v1651_v36 = vcombine.high %v8970_v57, %v12413_v53  ;;  %v9485_v48 = vrot.slane %v1553_v0, %v6949_v55 }
 0x325   : > { %12615 = vst [vmem:[#allocation307_spill] sm:$0xff] %v9353_v13  ;;  %12616 = vst [vmem:[#allocation308_spill] sm:$0xff] %v9355_v54  ;;  %v1847_v57 = vcombine.high %v8994_v38, %v12413_v53  ;;  %v9503_v0 = vrot.slane %v1749_v37, %v6949_v55  ;;  %v2043_v38 = vcombine.high %v9018_v31, %v12413_v53 }
 0x326   : > { %4751 = vrot.lane.b32.xlu1 %v3053_v35, %s6744_s29  ;;  %4753 = vrot.lane.b32.xlu0 %v3151_v8, %s6744_s29  ;;  %v3445_v8 = vcombine.high %v9202_v40, %v12413_v53  ;;  %v3641_v40 = vcombine.high %v9222_v19, %v12413_v53  ;;  %v9410_v19 = vrot.slane %v671_v32, %v6949_v55 }
 0x327   : > { %v9428_v32 = vrot.slane %v867_v3, %v6949_v55  ;;  %v9446_v3 = vrot.slane %v1063_v16, %v6949_v55  ;;  %v9464_v16 = vrot.slane %v1259_v50, %v6949_v55  ;;  %v9482_v50 = vrot.slane %v1455_v6, %v6949_v55 }
 0x328   : > { %v9363_v44 = vpop.permute.xlu1 %4575  ;;  %v9365_v61 = vpop.permute.xlu0 %4577  ;;  %v9500_v6 = vrot.slane %v1651_v36, %v6949_v55  ;;  %v2141_v15 = vcombine.high %v9022_v28, %v12413_v53  ;;  %v9518_v36 = vrot.slane %v1847_v57, %v6949_v55  ;;  %v9521_v37 = vrot.slane %v1945_v20, %v6949_v55 }
 0x329   : > { %12617 = vst [vmem:[#allocation309_spill] sm:$0xff] %v9363_v44  ;;  %12618 = vst [vmem:[#allocation310_spill] sm:$0xff] %v9365_v61  ;;  %v2239_v31 = vcombine.high %v9042_v42, %v12413_v53  ;;  %v2337_v28 = vcombine.high %v9046_v27, %v12413_v53  ;;  %v9536_v57 = vrot.slane %v2043_v38, %v6949_v55 }
 0x32a   : > { %4755 = vrot.lane.b32.xlu1 %v3249_v24, %s6744_s29  ;;  %4757 = vrot.lane.b32.xlu0 %v3347_v45, %s6744_s29  ;;  %v9539_v20 = vrot.slane %v2141_v15, %v6949_v55  ;;  %v2435_v42 = vcombine.high %v9066_v9, %v12413_v53  ;;  %v2533_v27 = vcombine.high %v9070_v58, %v12413_v53 }
 0x32b   : > { %v9554_v38 = vrot.slane %v2239_v31, %v6949_v55  ;;  %v9557_v15 = vrot.slane %v2337_v28, %v6949_v55  ;;  %v2631_v9 = vcombine.high %v9090_v18, %v12413_v53  ;;  %v2729_v58 = vcombine.high %v9094_v39, %v12413_v53  ;;  %v12643_v18 = vld [vmem:[#allocation263_spill] sm:$0xff]  ;;  %v12644_v39 = vld [vmem:[#allocation264_spill] sm:$0xff] }
 0x32c   : > { %v9375_v47 = vpop.permute.xlu1 %4579  ;;  %v9377_v35 = vpop.permute.xlu0 %4581  ;;  %v9572_v31 = vrot.slane %v2435_v42, %v6949_v55  ;;  %v9575_v28 = vrot.slane %v2533_v27, %v6949_v55  ;;  %v2827_v14 = vcombine.high %v12643_v18, %v12413_v53  ;;  %v12647_v18 = vld [vmem:[#allocation267_spill] sm:$0xff]  ;;  %v702_v63 = vcombine.high %v9410_v19, %v12413_v53 }
 0x32d   : > { %12619 = vst [vmem:[#allocation311_spill] sm:$0xff] %v9375_v47  ;;  %12620 = vst [vmem:[#allocation312_spill] sm:$0xff] %v9377_v35  ;;  %v9590_v42 = vrot.slane %v2631_v9, %v6949_v55  ;;  %v9593_v27 = vrot.slane %v2729_v58, %v6949_v55  ;;  %v3023_v47 = vcombine.high %v12647_v18, %v12413_v53  ;;  %v12651_v18 = vld [vmem:[#allocation271_spill] sm:$0xff] }
 0x32e   : > { %4759 = vrot.lane.b32.xlu1 %v3445_v8, %s6744_s29  ;;  %4761 = vrot.lane.b32.xlu0 %v3543_v11, %s6744_s29  ;;  %v9608_v9 = vrot.slane %v2827_v14, %v6949_v55 }
 0x32f   : > { %v9626_v14 = vrot.slane %v3023_v47, %v6949_v55 }
 0x330   : > { %v9389_v24 = vpop.permute.xlu1 %4583  ;;  %v9391_v45 = vpop.permute.xlu0 %4585 }
 0x331   : > { %12621 = vst [vmem:[#allocation313_spill] sm:$0xff] %v9389_v24  ;;  %12622 = vst [vmem:[#allocation314_spill] sm:$0xff] %v9391_v45 }
 0x332   : > { %4763 = vrot.lane.b32.xlu1 %v3641_v40, %s6744_s29  ;;  %4829 = vrot.lane.b32.xlu0 %v9396_v33, %s6745_s20 }
 0x334   : > { %v9405_v34 = vpop.permute.xlu1 %4587  ;;  %v9407_v8 = vpop.permute.xlu0 %4589 }
 0x335   : > { %12623 = vst [vmem:[#allocation315_spill] sm:$0xff] %v9405_v34  ;;  %12624 = vst [vmem:[#allocation316_spill] sm:$0xff] %v9407_v8  ;;  %v2925_v34 = vcombine.high %v12644_v39, %v12413_v53  ;;  %v12648_v39 = vld [vmem:[#allocation268_spill] sm:$0xff] }
 0x336   : > { %4831 = vrot.lane.b32.xlu1 %v9410_v19, %s6745_s20  ;;  %4833 = vrot.lane.b32.xlu0 %v9413_v2, %s6745_s20 }
 0x337   : > { %v9611_v58 = vrot.slane %v2925_v34, %v6949_v55 }
 0x338   : > { %v9423_v11 = vpop.permute.xlu1 %4591  ;;  %v9425_v40 = vpop.permute.xlu0 %4593 }
 0x339   : > { %12625 = vst [vmem:[#allocation317_spill] sm:$0xff] %v9423_v11  ;;  %12626 = vst [vmem:[#allocation318_spill] sm:$0xff] %v9425_v40 }
 0x33a   : > { %4835 = vrot.lane.b32.xlu1 %v9428_v32, %s6745_s20  ;;  %4837 = vrot.lane.b32.xlu0 %v9431_v12, %s6745_s20 }
 0x33c   : > { %v9441_v43 = vpop.permute.xlu1 %4595  ;;  %v9443_v23 = vpop.permute.xlu0 %4597 }
 0x33d   : > { %12627 = vst [vmem:[#allocation319_spill] sm:$0xff] %v9441_v43  ;;  %12628 = vst [vmem:[#allocation320_spill] sm:$0xff] %v9443_v23 }
 0x33e   : > { %4839 = vrot.lane.b32.xlu1 %v9446_v3, %s6745_s20  ;;  %4841 = vrot.lane.b32.xlu0 %v9449_v5, %s6745_s20 }
 0x340   : > { %v9459_v56 = vpop.permute.xlu1 %4599  ;;  %v9461_v1 = vpop.permute.xlu0 %4601 }
 0x341   : > { %12629 = vst [vmem:[#allocation321_spill] sm:$0xff] %v9459_v56  ;;  %12630 = vst [vmem:[#allocation322_spill] sm:$0xff] %v9461_v1 }
 0x342   : > { %4843 = vrot.lane.b32.xlu1 %v9464_v16, %s6745_s20  ;;  %4845 = vrot.lane.b32.xlu0 %v9467_v51, %s6745_s20 }
 0x344   : > { %v9477_v21 = vpop.permute.xlu1 %4603  ;;  %v9479_v1 = vpop.permute.xlu0 %4605 }
 0x345   : > { %12631 = vst [vmem:[#allocation323_spill] sm:$0xff] %v9477_v21  ;;  %12632 = vst [vmem:[#allocation324_spill] sm:$0xff] %v9479_v1 }
 0x346   : > { %4847 = vrot.lane.b32.xlu1 %v9482_v50, %s6745_s20  ;;  %4849 = vrot.lane.b32.xlu0 %v9485_v48, %s6745_s20 }
 0x348   : > { %v9495_v21 = vpop.permute.xlu1 %4607  ;;  %v9497_v59 = vpop.permute.xlu0 %4609 }
 0x349   : > { %12633 = vst [vmem:[#allocation325_spill] sm:$0xff] %v9495_v21  ;;  %12634 = vst [vmem:[#allocation326_spill] sm:$0xff] %v9497_v59 }
 0x34a   : > { %4851 = vrot.lane.b32.xlu1 %v9500_v6, %s6745_s20  ;;  %4853 = vrot.lane.b32.xlu0 %v9503_v0, %s6745_s20 }
 0x34c   : > { %v9513_v4 = vpop.permute.xlu1 %4611  ;;  %v9515_v59 = vpop.permute.xlu0 %4613 }
 0x34d   : > { %12635 = vst [vmem:[#allocation327_spill] sm:$0xff] %v9513_v4  ;;  %12636 = vst [vmem:[#allocation328_spill] sm:$0xff] %v9515_v59 }
 0x34e   : > { %4855 = vrot.lane.b32.xlu1 %v9518_v36, %s6745_s20  ;;  %4857 = vrot.lane.b32.xlu0 %v9521_v37, %s6745_s20 }
 0x350   : > { %v9531_v4 = vpop.permute.xlu1 %4615  ;;  %v9533_v43 = vpop.permute.xlu0 %4617 }
 0x351   : > { %12637 = vst [vmem:[#allocation329_spill] sm:$0xff] %v9531_v4  ;;  %12638 = vst [vmem:[#allocation330_spill] sm:$0xff] %v9533_v43 }
 0x352   : > { %4859 = vrot.lane.b32.xlu1 %v9536_v57, %s6745_s20  ;;  %4861 = vrot.lane.b32.xlu0 %v9539_v20, %s6745_s20 }
 0x354   : > { %v9549_v40 = vpop.permute.xlu1 %4619  ;;  %v9551_v43 = vpop.permute.xlu0 %4621 }
 0x355   : > { %12639 = vst [vmem:[#allocation331_spill] sm:$0xff] %v9549_v40  ;;  %12640 = vst [vmem:[#allocation332_spill] sm:$0xff] %v9551_v43 }
 0x356   : > { %4863 = vrot.lane.b32.xlu1 %v9554_v38, %s6745_s20  ;;  %4865 = vrot.lane.b32.xlu0 %v9557_v15, %s6745_s20 }
 0x358   : > { %v9567_v40 = vpop.permute.xlu1 %4623  ;;  %v9569_v7 = vpop.permute.xlu0 %4625 }
 0x359   : > { %12641 = vst [vmem:[#allocation333_spill] sm:$0xff] %v9567_v40  ;;  %12642 = vst [vmem:[#allocation334_spill] sm:$0xff] %v9569_v7 }
 0x35a   : > { %4867 = vrot.lane.b32.xlu1 %v9572_v31, %s6745_s20  ;;  %4869 = vrot.lane.b32.xlu0 %v9575_v28, %s6745_s20 }
 0x35c   : > { %v9585_v45 = vpop.permute.xlu1 %4627  ;;  %v9587_v7 = vpop.permute.xlu0 %4629 }
 0x35d   : > { %12645 = vst [vmem:[#allocation263_spill] sm:$0xff] %v9585_v45  ;;  %12646 = vst [vmem:[#allocation264_spill] sm:$0xff] %v9587_v7  ;;  %v3121_v45 = vcombine.high %v12648_v39, %v12413_v53  ;;  %v3219_v7 = vcombine.high %v12651_v18, %v12413_v53  ;;  %v12652_v39 = vld [vmem:[#allocation272_spill] sm:$0xff]  ;;  %v12655_v18 = vld [vmem:[#allocation275_spill] sm:$0xff] }
 0x35e   : > { %4871 = vrot.lane.b32.xlu1 %v9590_v42, %s6745_s20  ;;  %4873 = vrot.lane.b32.xlu0 %v9593_v27, %s6745_s20  ;;  %v3415_v25 = vcombine.high %v12655_v18, %v12413_v53  ;;  %v3611_v18 = vcombine.high %v9210_v52, %v12413_v53 }
 0x35f   : > { %v9629_v34 = vrot.slane %v3121_v45, %v6949_v55  ;;  %v9644_v47 = vrot.slane %v3219_v7, %v6949_v55 }
 0x360   : > { %v9603_v61 = vpop.permute.xlu1 %4631  ;;  %v9605_v17 = vpop.permute.xlu0 %4633  ;;  %v9674_v52 = vrot.slane %v3611_v18, %v6949_v55  ;;  %v800_v18 = vcombine.high %v9413_v2, %v12413_v53 }
 0x361   : > { %12649 = vst [vmem:[#allocation267_spill] sm:$0xff] %v9603_v61  ;;  %12650 = vst [vmem:[#allocation268_spill] sm:$0xff] %v9605_v17  ;;  %v3317_v61 = vcombine.high %v12652_v39, %v12413_v53  ;;  %v12656_v39 = vld [vmem:[#allocation276_spill] sm:$0xff] }
 0x362   : > { %4875 = vrot.lane.b32.xlu1 %v9608_v9, %s6745_s20  ;;  %4877 = vrot.lane.b32.xlu0 %v9611_v58, %s6745_s20  ;;  %v3513_v43 = vcombine.high %v12656_v39, %v12413_v53 }
 0x363   : > { %v9647_v45 = vrot.slane %v3317_v61, %v6949_v55 }
 0x364   : > { %v9621_v41 = vpop.permute.xlu1 %4635  ;;  %v9623_v40 = vpop.permute.xlu0 %4701  ;;  %v9663_v7 = vrot.slane %v3513_v43, %v6949_v55 }
 0x365   : > { %12653 = vst [vmem:[#allocation271_spill] sm:$0xff] %v9621_v41  ;;  %12654 = vst [vmem:[#allocation272_spill] sm:$0xff] %v9623_v40 }
 0x366   : > { %4879 = vrot.lane.b32.xlu1 %v9626_v14, %s6745_s20  ;;  %4881 = vrot.lane.b32.xlu0 %v9629_v34, %s6745_s20 }
 0x368   : > { %v9639_v60 = vpop.permute.xlu1 %4703  ;;  %v9641_v4 = vpop.permute.xlu0 %4705 }
 0x369   : > { %12657 = vst [vmem:[#allocation275_spill] sm:$0xff] %v9639_v60  ;;  %12658 = vst [vmem:[#allocation276_spill] sm:$0xff] %v9641_v4  ;;  %v9660_v4 = vrot.slane %v3415_v25, %v6949_v55  ;;  %v604_v25 = vcombine.high %v9396_v33, %v12413_v53 }
 0x36a   : > { %4883 = vrot.lane.b32.xlu1 %v9644_v47, %s6745_s20  ;;  %4885 = vrot.lane.b32.xlu0 %v9647_v45, %s6745_s20 }
 0x36c   : > { %v9655_v39 = vpop.permute.xlu1 %4707  ;;  %v9657_v10 = vpop.permute.xlu0 %4709 }
 0x36d   : > { %12659 = vst [vmem:[#allocation335_spill] sm:$0xff] %v9655_v39  ;;  %12660 = vst [vmem:[#allocation336_spill] sm:$0xff] %v9657_v10 }
 0x36e   : > { %4887 = vrot.lane.b32.xlu1 %v9660_v4, %s6745_s20  ;;  %4889 = vrot.lane.b32.xlu0 %v9663_v7, %s6745_s20 }
 0x370   : > { %v9669_v61 = vpop.permute.xlu1 %4711  ;;  %v9671_v59 = vpop.permute.xlu0 %4713 }
 0x371   : > { %12661 = vst [vmem:[#allocation337_spill] sm:$0xff] %v9669_v61  ;;  %12662 = vst [vmem:[#allocation338_spill] sm:$0xff] %v9671_v59 }
 0x372   : > { %4891 = vrot.lane.b32.xlu1 %v9674_v52, %s6745_s20  ;;  %4957 = vrot.lane.b32.xlu0 %v604_v25, %s6746_s26  ;;  %v898_v25 = vcombine.high %v9428_v32, %v12413_v53 }
 0x374   : > { %v9681_v43 = vpop.permute.xlu1 %4715  ;;  %v9683_v39 = vpop.permute.xlu0 %4717 }
 0x375   : > { %12663 = vst [vmem:[#allocation339_spill] sm:$0xff] %v9681_v43  ;;  %12664 = vst [vmem:[#allocation340_spill] sm:$0xff] %v9683_v39  ;;  %v996_v43 = vcombine.high %v9431_v12, %v12413_v53 }
 0x376   : > { %4959 = vrot.lane.b32.xlu1 %v702_v63, %s6746_s26  ;;  %4961 = vrot.lane.b32.xlu0 %v800_v18, %s6746_s26  ;;  %v1094_v63 = vcombine.high %v9446_v3, %v12413_v53  ;;  %v1192_v18 = vcombine.high %v9449_v5, %v12413_v53 }
 0x378   : > { %v9691_v33 = vpop.permute.xlu1 %4719  ;;  %v9693_v59 = vpop.permute.xlu0 %4721 }
 0x379   : > { %12665 = vst [vmem:[#allocation341_spill] sm:$0xff] %v9691_v33  ;;  %12666 = vst [vmem:[#allocation342_spill] sm:$0xff] %v9693_v59 }
 0x37a   : > { %4963 = vrot.lane.b32.xlu1 %v898_v25, %s6746_s26  ;;  %4965 = vrot.lane.b32.xlu0 %v996_v43, %s6746_s26  ;;  %v1290_v43 = vcombine.high %v9464_v16, %v12413_v53  ;;  %v1388_v25 = vcombine.high %v9467_v51, %v12413_v53 }
 0x37c   : > { %v9701_v19 = vpop.permute.xlu1 %4723  ;;  %v9703_v2 = vpop.permute.xlu0 %4725 }
 0x37d   : > { %12667 = vst [vmem:[#allocation343_spill] sm:$0xff] %v9701_v19  ;;  %12668 = vst [vmem:[#allocation344_spill] sm:$0xff] %v9703_v2 }
 0x37e   : > { %4967 = vrot.lane.b32.xlu1 %v1094_v63, %s6746_s26  ;;  %4969 = vrot.lane.b32.xlu0 %v1192_v18, %s6746_s26  ;;  %v1486_v63 = vcombine.high %v9482_v50, %v12413_v53  ;;  %v1584_v18 = vcombine.high %v9485_v48, %v12413_v53 }
 0x380   : > { %v9711_v32 = vpop.permute.xlu1 %4727  ;;  %v9713_v12 = vpop.permute.xlu0 %4729 }
 0x381   : > { %12669 = vst [vmem:[#allocation345_spill] sm:$0xff] %v9711_v32  ;;  %12670 = vst [vmem:[#allocation346_spill] sm:$0xff] %v9713_v12 }
 0x382   : > { %4971 = vrot.lane.b32.xlu1 %v1290_v43, %s6746_s26  ;;  %4973 = vrot.lane.b32.xlu0 %v1388_v25, %s6746_s26  ;;  %v1682_v43 = vcombine.high %v9500_v6, %v12413_v53  ;;  %v1780_v25 = vcombine.high %v9503_v0, %v12413_v53 }
 0x384   : > { %v9721_v3 = vpop.permute.xlu1 %4731  ;;  %v9723_v5 = vpop.permute.xlu0 %4733 }
 0x385   : > { %12671 = vst [vmem:[#allocation347_spill] sm:$0xff] %v9721_v3  ;;  %12672 = vst [vmem:[#allocation348_spill] sm:$0xff] %v9723_v5 }
 0x386   : > { %4975 = vrot.lane.b32.xlu1 %v1486_v63, %s6746_s26  ;;  %4977 = vrot.lane.b32.xlu0 %v1584_v18, %s6746_s26  ;;  %v1878_v63 = vcombine.high %v9518_v36, %v12413_v53  ;;  %v1976_v18 = vcombine.high %v9521_v37, %v12413_v53 }
 0x388   : > { %v9731_v16 = vpop.permute.xlu1 %4735  ;;  %v9733_v51 = vpop.permute.xlu0 %4737 }
 0x389   : > { %12673 = vst [vmem:[#allocation349_spill] sm:$0xff] %v9731_v16  ;;  %12674 = vst [vmem:[#allocation350_spill] sm:$0xff] %v9733_v51  ;;  %v12714_v16 = vld [vmem:[#allocation39_spill] sm:$0xff] }
 0x38a   : > { %4979 = vrot.lane.b32.xlu1 %v1682_v43, %s6746_s26  ;;  %4981 = vrot.lane.b32.xlu0 %v1780_v25, %s6746_s26  ;;  %v2074_v43 = vcombine.high %v9536_v57, %v12413_v53  ;;  %v2172_v25 = vcombine.high %v9539_v20, %v12413_v53  ;;  %v1734_v21 = vcombine.high %v12714_v16, %v12413_v53 }
 0x38c   : > { %v9741_v50 = vpop.permute.xlu1 %4739  ;;  %v9743_v48 = vpop.permute.xlu0 %4741 }
 0x38d   : > { %12675 = vst [vmem:[#allocation351_spill] sm:$0xff] %v9741_v50  ;;  %12676 = vst [vmem:[#allocation352_spill] sm:$0xff] %v9743_v48 }
 0x38e   : > { %4983 = vrot.lane.b32.xlu1 %v1878_v63, %s6746_s26  ;;  %4985 = vrot.lane.b32.xlu0 %v1976_v18, %s6746_s26  ;;  %v2270_v63 = vcombine.high %v9554_v38, %v12413_v53  ;;  %v2368_v18 = vcombine.high %v9557_v15, %v12413_v53 }
 0x390   : > { %v9751_v6 = vpop.permute.xlu1 %4743  ;;  %v9753_v0 = vpop.permute.xlu0 %4745 }
 0x391   : > { %12677 = vst [vmem:[#allocation353_spill] sm:$0xff] %v9751_v6  ;;  %12678 = vst [vmem:[#allocation354_spill] sm:$0xff] %v9753_v0 }
 0x392   : > { %4987 = vrot.lane.b32.xlu1 %v2074_v43, %s6746_s26  ;;  %4989 = vrot.lane.b32.xlu0 %v2172_v25, %s6746_s26  ;;  %v2466_v43 = vcombine.high %v9572_v31, %v12413_v53  ;;  %v2564_v25 = vcombine.high %v9575_v28, %v12413_v53 }
 0x394   : > { %v9761_v36 = vpop.permute.xlu1 %4747  ;;  %v9763_v37 = vpop.permute.xlu0 %4749 }
 0x395   : > { %12679 = vst [vmem:[#allocation355_spill] sm:$0xff] %v9761_v36  ;;  %12680 = vst [vmem:[#allocation356_spill] sm:$0xff] %v9763_v37 }
 0x396   : > { %4991 = vrot.lane.b32.xlu1 %v2270_v63, %s6746_s26  ;;  %4993 = vrot.lane.b32.xlu0 %v2368_v18, %s6746_s26  ;;  %v2662_v63 = vcombine.high %v9590_v42, %v12413_v53  ;;  %v2760_v18 = vcombine.high %v9593_v27, %v12413_v53 }
 0x398   : > { %v9771_v57 = vpop.permute.xlu1 %4751  ;;  %v9773_v20 = vpop.permute.xlu0 %4753 }
 0x399   : > { %12681 = vst [vmem:[#allocation357_spill] sm:$0xff] %v9771_v57  ;;  %12682 = vst [vmem:[#allocation358_spill] sm:$0xff] %v9773_v20 }
 0x39a   : > { %4995 = vrot.lane.b32.xlu1 %v2466_v43, %s6746_s26  ;;  %4997 = vrot.lane.b32.xlu0 %v2564_v25, %s6746_s26  ;;  %v2858_v43 = vcombine.high %v9608_v9, %v12413_v53  ;;  %v2956_v25 = vcombine.high %v9611_v58, %v12413_v53  ;;  %v12689_v9 = vld [vmem:[#allocation13_spill] sm:$0xff] }
 0x39b   : > { %v558_v58 = vcombine.high %v12689_v9, %v12413_v53  ;;  %v12694_v9 = vld [vmem:[#allocation16_spill] sm:$0xff] }
 0x39c   : > { %v9781_v38 = vpop.permute.xlu1 %4755  ;;  %v9783_v15 = vpop.permute.xlu0 %4757  ;;  %v754_v36 = vcombine.high %v12694_v9, %v12413_v53  ;;  %v12698_v9 = vld [vmem:[#allocation20_spill] sm:$0xff] }
 0x39d   : > { %12683 = vst [vmem:[#allocation359_spill] sm:$0xff] %v9781_v38  ;;  %12684 = vst [vmem:[#allocation360_spill] sm:$0xff] %v9783_v15  ;;  %v3250_v38 = vcombine.high %v9644_v47, %v12413_v53  ;;  %v3446_v47 = vcombine.high %v9660_v4, %v12413_v53  ;;  %v950_v51 = vcombine.high %v12698_v9, %v12413_v53  ;;  %v12710_v15 = vld [vmem:[#allocation34_spill] sm:$0xff] }
 0x39e   : > { %4999 = vrot.lane.b32.xlu1 %v2662_v63, %s6746_s26  ;;  %5001 = vrot.lane.b32.xlu0 %v2760_v18, %s6746_s26  ;;  %v3054_v63 = vcombine.high %v9626_v14, %v12413_v53  ;;  %v3152_v18 = vcombine.high %v9629_v34, %v12413_v53  ;;  %v3348_v14 = vcombine.high %v9647_v45, %v12413_v53  ;;  %v12692_v34 = vld [vmem:[#allocation12_spill] sm:$0xff] }
 0x39f   : > { %v3544_v45 = vcombine.high %v9663_v7, %v12413_v53  ;;  %v3642_v7 = vcombine.high %v9674_v52, %v12413_v53  ;;  %v12702_v52 = vld [vmem:[#allocation24_spill] sm:$0xff]  ;;  %v1538_v57 = vcombine.high %v12710_v15, %v12413_v53  ;;  %v12713_v15 = vld [vmem:[#allocation37_spill] sm:$0xff] }
 0x3a0   : > { %v9791_v31 = vpop.permute.xlu1 %4759  ;;  %v9793_v28 = vpop.permute.xlu0 %4761  ;;  %v1146_v9 = vcombine.high %v12702_v52, %v12413_v53 }
 0x3a1   : > { %12685 = vst [vmem:[#allocation361_spill] sm:$0xff] %v9791_v31  ;;  %12686 = vst [vmem:[#allocation362_spill] sm:$0xff] %v9793_v28 }
 0x3a2   : > { %5003 = vrot.lane.b32.xlu1 %v2858_v43, %s6746_s26  ;;  %5005 = vrot.lane.b32.xlu0 %v2956_v25, %s6746_s26 }
 0x3a4   : > { %v9801_v42 = vpop.permute.xlu1 %4763  ;;  %v9803_v27 = vpop.permute.xlu0 %4829 }
 0x3a5   : > { %12687 = vst [vmem:[#allocation363_spill] sm:$0xff] %v9801_v42  ;;  %12688 = vst [vmem:[#allocation364_spill] sm:$0xff] %v9803_v27 }
 0x3a6   : > { %5007 = vrot.lane.b32.xlu1 %v3054_v63, %s6746_s26  ;;  %5009 = vrot.lane.b32.xlu0 %v3152_v18, %s6746_s26  ;;  %v656_v63 = vcombine.high %v12692_v34, %v12413_v53  ;;  %v12693_v18 = vld [vmem:[#allocation11_spill] sm:$0xff] }
 0x3a7   : > { %v9826_v20 = vrot.slane %v558_v58, %v12693_v18  ;;  %v12697_v58 = vld [vmem:[#allocation18_spill] sm:$0xff]  ;;  %v9846_v34 = vrot.slane %v754_v36, %v12693_v18  ;;  %v9895_v59 = vrot.slane %v1146_v9, %v12693_v18  ;;  %v12709_v9 = vld [vmem:[#allocation32_spill] sm:$0xff] }
 0x3a8   : > { %v9813_v43 = vpop.permute.xlu1 %4831  ;;  %v9815_v25 = vpop.permute.xlu0 %4833 }
 0x3a9   : > { %12690 = vst [vmem:[#allocation13_spill] sm:$0xff] %v9813_v43  ;;  %12691 = vst [vmem:[#allocation365_spill] sm:$0xff] %v9815_v25 }
 0x3aa   : > { %5011 = vrot.lane.b32.xlu1 %v3250_v38, %s6746_s26  ;;  %5013 = vrot.lane.b32.xlu0 %v3348_v14, %s6746_s26  ;;  %v9841_v38 = vrot.slane %v656_v63, %v12693_v18  ;;  %v852_v14 = vcombine.high %v12697_v58, %v12413_v53  ;;  %v9858_v63 = vrot.slane %v9826_v20, %v6949_v55 }
 0x3ab   : > { %v9869_v58 = vrot.slane %v950_v51, %v12693_v18 }
 0x3ac   : > { %v9830_v0 = vpop.permute.xlu1 %4835  ;;  %v9832_v50 = vpop.permute.xlu0 %4837  ;;  %v9864_v36 = vrot.slane %v852_v14, %v12693_v18  ;;  %v9883_v14 = vrot.slane %v9846_v34, %v6949_v55 }
 0x3ad   : > { %12695 = vst [vmem:[#allocation12_spill] sm:$0xff] %v9830_v0  ;;  %12696 = vst [vmem:[#allocation16_spill] sm:$0xff] %v9832_v50 }
 0x3ae   : > { %5015 = vrot.lane.b32.xlu1 %v3446_v47, %s6746_s26  ;;  %5017 = vrot.lane.b32.xlu0 %v3544_v45, %s6746_s26  ;;  %v12701_v47 = vld [vmem:[#allocation22_spill] sm:$0xff]  ;;  %v9905_v31 = vrot.slane %v9864_v36, %v6949_v55 }
 0x3af   : > { %v1048_v45 = vcombine.high %v12701_v47, %v12413_v53  ;;  %v12705_v47 = vld [vmem:[#allocation27_spill] sm:$0xff] }
 0x3b0   : > { %v9850_v4 = vpop.permute.xlu1 %4839  ;;  %v9852_v3 = vpop.permute.xlu0 %4841  ;;  %v1244_v52 = vcombine.high %v12705_v47, %v12413_v53  ;;  %v1440_v47 = vcombine.high %v12709_v9, %v12413_v53  ;;  %v1636_v9 = vcombine.high %v12713_v15, %v12413_v53 }
 0x3b1   : > { %12699 = vst [vmem:[#allocation18_spill] sm:$0xff] %v9850_v4  ;;  %12700 = vst [vmem:[#allocation20_spill] sm:$0xff] %v9852_v3  ;;  %v9890_v51 = vrot.slane %v1048_v45, %v12693_v18  ;;  %v9909_v45 = vrot.slane %v9869_v58, %v6949_v55 }
 0x3b2   : > { %5019 = vrot.lane.b32.xlu1 %v3642_v7, %s6746_s26  ;;  %5085 = vrot.lane.b32.xlu0 %v9858_v63, %s6747_s30  ;;  %v9879_v7 = vrot.slane %v9841_v38, %v6949_v55  ;;  %v9968_v16 = vrot.slane %v1636_v9, %v12693_v18 }
 0x3b3   : > { %v9931_v48 = vrot.slane %v9890_v51, %v6949_v55 }
 0x3b4   : > { %v9873_v12 = vpop.permute.xlu1 %4843  ;;  %v9875_v19 = vpop.permute.xlu0 %4845  ;;  %v10009_v62 = vrot.slane %v9968_v16, %v6949_v55 }
 0x3b5   : > { %12703 = vst [vmem:[#allocation22_spill] sm:$0xff] %v9873_v12  ;;  %12704 = vst [vmem:[#allocation24_spill] sm:$0xff] %v9875_v19  ;;  %v12706_v12 = vld [vmem:[#allocation29_spill] sm:$0xff] }
 0x3b6   : > { %5087 = vrot.lane.b32.xlu1 %v9879_v7, %s6747_s30  ;;  %5089 = vrot.lane.b32.xlu0 %v9883_v14, %s6747_s30  ;;  %v1342_v3 = vcombine.high %v12706_v12, %v12413_v53  ;;  %v9916_v12 = vrot.slane %v1244_v52, %v12693_v18  ;;  %v9935_v52 = vrot.slane %v9895_v59, %v6949_v55 }
 0x3b8   : > { %v9899_v0 = vpop.permute.xlu1 %4847  ;;  %v9901_v25 = vpop.permute.xlu0 %4849  ;;  %v9957_v1 = vrot.slane %v9916_v12, %v6949_v55 }
 0x3b9   : > { %12707 = vst [vmem:[#allocation27_spill] sm:$0xff] %v9899_v0  ;;  %12708 = vst [vmem:[#allocation29_spill] sm:$0xff] %v9901_v25  ;;  %v9921_v25 = vrot.slane %v1342_v3, %v12693_v18  ;;  %v9942_v3 = vrot.slane %v1440_v47, %v12693_v18 }
 0x3ba   : > { %5091 = vrot.lane.b32.xlu1 %v9905_v31, %s6747_s30  ;;  %5093 = vrot.lane.b32.xlu0 %v9909_v45, %s6747_s30 }
 0x3bb   : > { %v9961_v47 = vrot.slane %v9921_v25, %v6949_v55  ;;  %v9983_v29 = vrot.slane %v9942_v3, %v6949_v55 }
 0x3bc   : > { %v9925_v37 = vpop.permute.xlu1 %4851  ;;  %v9927_v6 = vpop.permute.xlu0 %4853 }
 0x3bd   : > { %12711 = vst [vmem:[#allocation32_spill] sm:$0xff] %v9925_v37  ;;  %12712 = vst [vmem:[#allocation34_spill] sm:$0xff] %v9927_v6  ;;  %v9947_v37 = vrot.slane %v1538_v57, %v12693_v18  ;;  %v12717_v57 = vld [vmem:[#allocation42_spill] sm:$0xff] }
 0x3be   : > { %5095 = vrot.lane.b32.xlu1 %v9931_v48, %s6747_s30  ;;  %5097 = vrot.lane.b32.xlu0 %v9935_v52, %s6747_s30  ;;  %v1832_v15 = vcombine.high %v12717_v57, %v12413_v53 }
 0x3bf   : > { %v9987_v9 = vrot.slane %v9947_v37, %v6949_v55 }
 0x3c0   : > { %v9951_v49 = vpop.permute.xlu1 %4855  ;;  %v9953_v5 = vpop.permute.xlu0 %4857 }
 0x3c1   : > { %12715 = vst [vmem:[#allocation37_spill] sm:$0xff] %v9951_v49  ;;  %12716 = vst [vmem:[#allocation39_spill] sm:$0xff] %v9953_v5  ;;  %v9973_v5 = vrot.slane %v1734_v21, %v12693_v18  ;;  %v1930_v49 = vcombine.high %v12718_v26, %v12413_v53  ;;  %v9994_v26 = vrot.slane %v1832_v15, %v12693_v18  ;;  %v12721_v21 = vld [vmem:[#allocation47_spill] sm:$0xff] }
 0x3c2   : > { %5099 = vrot.lane.b32.xlu1 %v9957_v1, %s6747_s30  ;;  %5101 = vrot.lane.b32.xlu0 %v9961_v47, %s6747_s30  ;;  %v2028_v57 = vcombine.high %v12721_v21, %v12413_v53 }
 0x3c3   : > { %v10013_v15 = vrot.slane %v9973_v5, %v6949_v55  ;;  %v10035_v46 = vrot.slane %v9994_v26, %v6949_v55 }
 0x3c4   : > { %v9977_v32 = vpop.permute.xlu1 %4859  ;;  %v9979_v56 = vpop.permute.xlu0 %4861 }
 0x3c5   : > { %12719 = vst [vmem:[#allocation42_spill] sm:$0xff] %v9977_v32  ;;  %12720 = vst [vmem:[#allocation44_spill] sm:$0xff] %v9979_v56  ;;  %v9999_v32 = vrot.slane %v1930_v49, %v12693_v18  ;;  %v12722_v56 = vld [vmem:[#allocation49_spill] sm:$0xff]  ;;  %v10020_v49 = vrot.slane %v2028_v57, %v12693_v18 }
 0x3c6   : > { %5103 = vrot.lane.b32.xlu1 %v9983_v29, %s6747_s30  ;;  %5105 = vrot.lane.b32.xlu0 %v9987_v9, %s6747_s30  ;;  %v2126_v6 = vcombine.high %v12722_v56, %v12413_v53  ;;  %v12725_v56 = vld [vmem:[#allocation54_spill] sm:$0xff] }
 0x3c7   : > { %v2224_v21 = vcombine.high %v12725_v56, %v12413_v53  ;;  %v10039_v57 = vrot.slane %v9999_v32, %v6949_v55  ;;  %v10061_v22 = vrot.slane %v10020_v49, %v6949_v55 }
 0x3c8   : > { %v10003_v2 = vpop.permute.xlu1 %4863  ;;  %v10005_v23 = vpop.permute.xlu0 %4865 }
 0x3c9   : > { %12723 = vst [vmem:[#allocation47_spill] sm:$0xff] %v10003_v2  ;;  %12724 = vst [vmem:[#allocation49_spill] sm:$0xff] %v10005_v23  ;;  %v10025_v23 = vrot.slane %v2126_v6, %v12693_v18  ;;  %v12726_v2 = vld [vmem:[#allocation57_spill] sm:$0xff]  ;;  %v12729_v6 = vld [vmem:[#allocation62_spill] sm:$0xff] }
 0x3ca   : > { %5107 = vrot.lane.b32.xlu1 %v10009_v62, %s6747_s30  ;;  %5109 = vrot.lane.b32.xlu0 %v10013_v15, %s6747_s30  ;;  %v2322_v0 = vcombine.high %v12726_v2, %v12413_v53  ;;  %v10046_v2 = vrot.slane %v2224_v21, %v12693_v18  ;;  %v2420_v56 = vcombine.high %v12729_v6, %v12413_v53 }
 0x3cb   : > { %v10065_v21 = vrot.slane %v10025_v23, %v6949_v55 }
 0x3cc   : > { %v10029_v33 = vpop.permute.xlu1 %4867  ;;  %v10031_v11 = vpop.permute.xlu0 %4869  ;;  %v10087_v50 = vrot.slane %v10046_v2, %v6949_v55 }
 0x3cd   : > { %12727 = vst [vmem:[#allocation54_spill] sm:$0xff] %v10029_v33  ;;  %12728 = vst [vmem:[#allocation57_spill] sm:$0xff] %v10031_v11  ;;  %v10051_v33 = vrot.slane %v2322_v0, %v12693_v18  ;;  %v12730_v11 = vld [vmem:[#allocation65_spill] sm:$0xff]  ;;  %v12733_v0 = vld [vmem:[#allocation70_spill] sm:$0xff] }
 0x3ce   : > { %5111 = vrot.lane.b32.xlu1 %v10035_v46, %s6747_s30  ;;  %5113 = vrot.lane.b32.xlu0 %v10039_v57, %s6747_s30  ;;  %v2518_v19 = vcombine.high %v12730_v11, %v12413_v53  ;;  %v10072_v11 = vrot.slane %v2420_v56, %v12693_v18  ;;  %v2616_v6 = vcombine.high %v12733_v0, %v12413_v53 }
 0x3cf   : > { %v10091_v56 = vrot.slane %v10051_v33, %v6949_v55 }
 0x3d0   : > { %v10055_v39 = vpop.permute.xlu1 %4871  ;;  %v10057_v8 = vpop.permute.xlu0 %4873  ;;  %v10113_v60 = vrot.slane %v10072_v11, %v6949_v55 }
 0x3d1   : > { %12731 = vst [vmem:[#allocation62_spill] sm:$0xff] %v10055_v39  ;;  %12732 = vst [vmem:[#allocation65_spill] sm:$0xff] %v10057_v8  ;;  %v10077_v8 = vrot.slane %v2518_v19, %v12693_v18  ;;  %v12734_v39 = vld [vmem:[#allocation73_spill] sm:$0xff] }
 0x3d2   : > { %5115 = vrot.lane.b32.xlu1 %v10061_v22, %s6747_s30  ;;  %5117 = vrot.lane.b32.xlu0 %v10065_v21, %s6747_s30  ;;  %v2714_v4 = vcombine.high %v12734_v39, %v12413_v53  ;;  %v10098_v39 = vrot.slane %v2616_v6, %v12693_v18  ;;  %v12737_v19 = vld [vmem:[#allocation77_spill] sm:$0xff] }
 0x3d3   : > { %v2812_v0 = vcombine.high %v12737_v19, %v12413_v53  ;;  %v10117_v6 = vrot.slane %v10077_v8, %v6949_v55 }
 0x3d4   : > { %v10081_v61 = vpop.permute.xlu1 %4875  ;;  %v10083_v24 = vpop.permute.xlu0 %4877  ;;  %v10139_v40 = vrot.slane %v10098_v39, %v6949_v55 }
 0x3d5   : > { %12735 = vst [vmem:[#allocation70_spill] sm:$0xff] %v10081_v61  ;;  %12736 = vst [vmem:[#allocation73_spill] sm:$0xff] %v10083_v24  ;;  %v10103_v61 = vrot.slane %v2714_v4, %v12693_v18  ;;  %v12739_v24 = vld [vmem:[#allocation78_spill] sm:$0xff]  ;;  %v12743_v4 = vld [vmem:[#allocation79_spill] sm:$0xff] }
 0x3d6   : > { %5119 = vrot.lane.b32.xlu1 %v10087_v50, %s6747_s30  ;;  %5121 = vrot.lane.b32.xlu0 %v10091_v56, %s6747_s30  ;;  %v2910_v10 = vcombine.high %v12739_v24, %v12413_v53  ;;  %v10124_v24 = vrot.slane %v2812_v0, %v12693_v18  ;;  %v3008_v19 = vcombine.high %v12743_v4, %v12413_v53 }
 0x3d7   : > { %12738 = vst [vmem:[#allocation77_spill] sm:$0xff] %v10103_v61  ;;  %v10143_v0 = vrot.slane %v10103_v61, %v6949_v55 }
 0x3d8   : > { %v10107_v35 = vpop.permute.xlu1 %4879  ;;  %v10109_v43 = vpop.permute.xlu0 %4881  ;;  %12742 = vst [vmem:[#allocation367_spill] sm:$0xff] %v10124_v24  ;;  %v10165_v28 = vrot.slane %v10124_v24, %v6949_v55 }
 0x3d9   : > { %12740 = vst [vmem:[#allocation78_spill] sm:$0xff] %v10107_v35  ;;  %12741 = vst [vmem:[#allocation366_spill] sm:$0xff] %v10109_v43  ;;  %v10129_v43 = vrot.slane %v2910_v10, %v12693_v18  ;;  %v12745_v35 = vld [vmem:[#allocation80_spill] sm:$0xff]  ;;  %v10150_v10 = vrot.slane %v3008_v19, %v12693_v18 }
 0x3da   : > { %5123 = vrot.lane.b32.xlu1 %v10113_v60, %s6747_s30  ;;  %5125 = vrot.lane.b32.xlu0 %v10117_v6, %s6747_s30  ;;  %v3106_v44 = vcombine.high %v12745_v35, %v12413_v53  ;;  %v12749_v35 = vld [vmem:[#allocation81_spill] sm:$0xff] }
 0x3db   : > { %12744 = vst [vmem:[#allocation79_spill] sm:$0xff] %v10129_v43  ;;  %12748 = vst [vmem:[#allocation369_spill] sm:$0xff] %v10150_v10  ;;  %v3204_v4 = vcombine.high %v12749_v35, %v12413_v53  ;;  %v10169_v19 = vrot.slane %v10129_v43, %v6949_v55  ;;  %v10191_v24 = vrot.slane %v10150_v10, %v6949_v55 }
 0x3dc   : > { %v10133_v27 = vpop.permute.xlu1 %4883  ;;  %v10135_v42 = vpop.permute.xlu0 %4885 }
 0x3dd   : > { %12746 = vst [vmem:[#allocation80_spill] sm:$0xff] %v10133_v27  ;;  %12747 = vst [vmem:[#allocation368_spill] sm:$0xff] %v10135_v42  ;;  %v10155_v27 = vrot.slane %v3106_v44, %v12693_v18  ;;  %v12751_v42 = vld [vmem:[#allocation82_spill] sm:$0xff]  ;;  %v10176_v44 = vrot.slane %v3204_v4, %v12693_v18 }
 0x3de   : > { %5127 = vrot.lane.b32.xlu1 %v10139_v40, %s6747_s30  ;;  %5129 = vrot.lane.b32.xlu0 %v10143_v0, %s6747_s30  ;;  %v3302_v41 = vcombine.high %v12751_v42, %v12413_v53  ;;  %v12754_v42 = vld [vmem:[#allocation83_spill] sm:$0xff] }
 0x3df   : > { %12750 = vst [vmem:[#allocation81_spill] sm:$0xff] %v10155_v27  ;;  %v3400_v35 = vcombine.high %v12754_v42, %v12413_v53  ;;  %v10195_v4 = vrot.slane %v10155_v27, %v6949_v55  ;;  %v12760_v42 = vld [vmem:[#allocation85_spill] sm:$0xff]  ;;  %v10215_v27 = vrot.slane %v10176_v44, %v6949_v55 }
 0x3e0   : > { %v10159_v54 = vpop.permute.xlu1 %4887  ;;  %v10161_v13 = vpop.permute.xlu0 %4889 }
 0x3e1   : > { %12752 = vst [vmem:[#allocation82_spill] sm:$0xff] %v10159_v54  ;;  %12753 = vst [vmem:[#allocation370_spill] sm:$0xff] %v10161_v13  ;;  %v10181_v54 = vrot.slane %v3302_v41, %v12693_v18  ;;  %v12755_v13 = vld [vmem:[#allocation84_spill] sm:$0xff]  ;;  %v10202_v41 = vrot.slane %v3400_v35, %v12693_v18 }
 0x3e2   : > { %5131 = vrot.lane.b32.xlu1 %v10165_v28, %s6747_s30  ;;  %5133 = vrot.lane.b32.xlu0 %v10169_v19, %s6747_s30  ;;  %v3498_v17 = vcombine.high %v12755_v13, %v12413_v53 }
 0x3e3   : > { %12758 = vst [vmem:[#allocation371_spill] sm:$0xff] %v10202_v41  ;;  %v10219_v61 = vrot.slane %v10181_v54, %v6949_v55 }
 0x3e4   : > { %v10185_v30 = vpop.permute.xlu1 %4891  ;;  %v10187_v43 = vpop.permute.xlu0 %4957  ;;  %v10205_v13 = vrot.slane %v3498_v17, %v12693_v18 }
 0x3e5   : > { %12756 = vst [vmem:[#allocation83_spill] sm:$0xff] %v10185_v30  ;;  %12757 = vst [vmem:[#allocation84_spill] sm:$0xff] %v10187_v43  ;;  %v3596_v43 = vcombine.high %v12760_v42, %v12413_v53 }
 0x3e6   : > { %5135 = vrot.lane.b32.xlu1 %v10191_v24, %s6747_s30  ;;  %5137 = vrot.lane.b32.xlu0 %v10195_v4, %s6747_s30  ;;  %12759 = vst [vmem:[#allocation372_spill] sm:$0xff] %v10205_v13 }
 0x3e7   : > { %v10226_v17 = vrot.slane %v3596_v43, %v12693_v18 }
 0x3e8   : > { %v10209_v30 = vpop.permute.xlu1 %4959  ;;  %v10211_v10 = vpop.permute.xlu0 %4961 }
 0x3e9   : > { %12761 = vst [vmem:[#allocation85_spill] sm:$0xff] %v10209_v30  ;;  %12762 = vst [vmem:[#allocation373_spill] sm:$0xff] %v10211_v10  ;;  %v10234_v10 = vrot.slane %v10202_v41, %v6949_v55  ;;  %v10238_v30 = vrot.slane %v10205_v13, %v6949_v55 }
 0x3ea   : > { %5139 = vrot.lane.b32.xlu1 %v10215_v27, %s6747_s30  ;;  %5141 = vrot.lane.b32.xlu0 %v10219_v61, %s6747_s30  ;;  %12763 = vst [vmem:[#allocation374_spill] sm:$0xff] %v10226_v17 }
 0x3ec   : > { %v10228_v35 = vpop.permute.xlu1 %4963  ;;  %v10230_v42 = vpop.permute.xlu0 %4965 }
 0x3ed   : > { %12764 = vst [vmem:[#allocation375_spill] sm:$0xff] %v10228_v35  ;;  %12765 = vst [vmem:[#allocation376_spill] sm:$0xff] %v10230_v42  ;;  %v10250_v35 = vrot.slane %v10226_v17, %v6949_v55  ;;  %v605_v42 = vcombine.high %v9858_v63, %v12413_v53 }
 0x3ee   : > { %5143 = vrot.lane.b32.xlu1 %v10234_v10, %s6747_s30  ;;  %5145 = vrot.lane.b32.xlu0 %v10238_v30, %s6747_s30 }
 0x3f0   : > { %v10244_v43 = vpop.permute.xlu1 %4967  ;;  %v10246_v18 = vpop.permute.xlu0 %4969 }
 0x3f1   : > { %12766 = vst [vmem:[#allocation377_spill] sm:$0xff] %v10244_v43  ;;  %12767 = vst [vmem:[#allocation378_spill] sm:$0xff] %v10246_v18  ;;  %v703_v18 = vcombine.high %v9879_v7, %v12413_v53  ;;  %v801_v43 = vcombine.high %v9883_v14, %v12413_v53 }
 0x3f2   : > { %5147 = vrot.lane.b32.xlu1 %v10250_v35, %s6747_s30  ;;  %5213 = vrot.lane.b32.xlu0 %v605_v42, %s6748_s4  ;;  %v899_v42 = vcombine.high %v9905_v31, %v12413_v53 }
 0x3f4   : > { %v10257_v13 = vpop.permute.xlu1 %4971  ;;  %v10259_v41 = vpop.permute.xlu0 %4973 }
 0x3f5   : > { %12768 = vst [vmem:[#allocation379_spill] sm:$0xff] %v10257_v13  ;;  %v997_v13 = vcombine.high %v9909_v45, %v12413_v53 }
 0x3f6   : > { %5215 = vrot.lane.b32.xlu1 %v703_v18, %s6748_s4  ;;  %5217 = vrot.lane.b32.xlu0 %v801_v43, %s6748_s4  ;;  %v1095_v18 = vcombine.high %v9931_v48, %v12413_v53  ;;  %v1193_v43 = vcombine.high %v9935_v52, %v12413_v53 }
 0x3f8   : > { %v10267_v63 = vpop.permute.xlu1 %4975  ;;  %v10269_v17 = vpop.permute.xlu0 %4977 }
 0x3f9   : > { %12769 = vst [vmem:[#allocation380_spill] sm:$0xff] %v10269_v17 }
 0x3fa   : > { %5219 = vrot.lane.b32.xlu1 %v899_v42, %s6748_s4  ;;  %5221 = vrot.lane.b32.xlu0 %v997_v13, %s6748_s4  ;;  %v1291_v13 = vcombine.high %v9957_v1, %v12413_v53  ;;  %v1389_v42 = vcombine.high %v9961_v47, %v12413_v53 }
 0x3fc   : > { %v10277_v7 = vpop.permute.xlu1 %4979  ;;  %v10279_v14 = vpop.permute.xlu0 %4981 }
 0x3fd   : > { %12770 = vst [vmem:[#allocation381_spill] sm:$0xff] %v10277_v7 }
 0x3fe   : > { %5223 = vrot.lane.b32.xlu1 %v1095_v18, %s6748_s4  ;;  %5225 = vrot.lane.b32.xlu0 %v1193_v43, %s6748_s4  ;;  %v1487_v18 = vcombine.high %v9983_v29, %v12413_v53  ;;  %v1585_v43 = vcombine.high %v9987_v9, %v12413_v53 }
 0x400   : > { %v10287_v31 = vpop.permute.xlu1 %4983  ;;  %v10289_v45 = vpop.permute.xlu0 %4985 }
 0x401   : > { %12771 = vst [vmem:[#allocation382_spill] sm:$0xff] %v10289_v45 }
 0x402   : > { %5227 = vrot.lane.b32.xlu1 %v1291_v13, %s6748_s4  ;;  %5229 = vrot.lane.b32.xlu0 %v1389_v42, %s6748_s4  ;;  %v1683_v13 = vcombine.high %v10009_v62, %v12413_v53  ;;  %v1781_v42 = vcombine.high %v10013_v15, %v12413_v53 }
 0x404   : > { %v10297_v48 = vpop.permute.xlu1 %4987  ;;  %v10299_v52 = vpop.permute.xlu0 %4989 }
 0x405   : > { %12772 = vst [vmem:[#allocation383_spill] sm:$0xff] %v10297_v48  ;;  %12773 = vst [vmem:[#allocation384_spill] sm:$0xff] %v10299_v52 }
 0x406   : > { %5231 = vrot.lane.b32.xlu1 %v1487_v18, %s6748_s4  ;;  %5233 = vrot.lane.b32.xlu0 %v1585_v43, %s6748_s4  ;;  %v1879_v18 = vcombine.high %v10035_v46, %v12413_v53  ;;  %v1977_v43 = vcombine.high %v10039_v57, %v12413_v53 }
 0x408   : > { %v10307_v1 = vpop.permute.xlu1 %4991  ;;  %v10309_v47 = vpop.permute.xlu0 %4993 }
 0x409   : > { %12774 = vst [vmem:[#allocation385_spill] sm:$0xff] %v10307_v1  ;;  %12775 = vst [vmem:[#allocation386_spill] sm:$0xff] %v10309_v47 }
 0x40a   : > { %5235 = vrot.lane.b32.xlu1 %v1683_v13, %s6748_s4  ;;  %5237 = vrot.lane.b32.xlu0 %v1781_v42, %s6748_s4  ;;  %v2075_v13 = vcombine.high %v10061_v22, %v12413_v53  ;;  %v2173_v42 = vcombine.high %v10065_v21, %v12413_v53 }
 0x40c   : > { %v10317_v29 = vpop.permute.xlu1 %4995  ;;  %v10319_v9 = vpop.permute.xlu0 %4997 }
 0x40d   : > { %12776 = vst [vmem:[#allocation387_spill] sm:$0xff] %v10317_v29  ;;  %12777 = vst [vmem:[#allocation388_spill] sm:$0xff] %v10319_v9 }
 0x40e   : > { %5239 = vrot.lane.b32.xlu1 %v1879_v18, %s6748_s4  ;;  %5241 = vrot.lane.b32.xlu0 %v1977_v43, %s6748_s4  ;;  %v2271_v18 = vcombine.high %v10087_v50, %v12413_v53  ;;  %v2369_v43 = vcombine.high %v10091_v56, %v12413_v53 }
 0x410   : > { %v10327_v62 = vpop.permute.xlu1 %4999  ;;  %v10329_v15 = vpop.permute.xlu0 %5001 }
 0x411   : > { %12778 = vst [vmem:[#allocation389_spill] sm:$0xff] %v10327_v62  ;;  %12779 = vst [vmem:[#allocation390_spill] sm:$0xff] %v10329_v15 }
 0x412   : > { %5243 = vrot.lane.b32.xlu1 %v2075_v13, %s6748_s4  ;;  %5245 = vrot.lane.b32.xlu0 %v2173_v42, %s6748_s4  ;;  %v2467_v13 = vcombine.high %v10113_v60, %v12413_v53  ;;  %v2565_v42 = vcombine.high %v10117_v6, %v12413_v53 }
 0x414   : > { %v10337_v46 = vpop.permute.xlu1 %5003  ;;  %v10339_v57 = vpop.permute.xlu0 %5005 }
 0x415   : > { %12780 = vst [vmem:[#allocation391_spill] sm:$0xff] %v10337_v46  ;;  %12781 = vst [vmem:[#allocation392_spill] sm:$0xff] %v10339_v57 }
 0x416   : > { %5247 = vrot.lane.b32.xlu1 %v2271_v18, %s6748_s4  ;;  %5249 = vrot.lane.b32.xlu0 %v2369_v43, %s6748_s4  ;;  %v2663_v18 = vcombine.high %v10139_v40, %v12413_v53  ;;  %v2761_v43 = vcombine.high %v10143_v0, %v12413_v53 }
 0x418   : > { %v10347_v22 = vpop.permute.xlu1 %5007  ;;  %v10349_v21 = vpop.permute.xlu0 %5009 }
 0x419   : > { %12782 = vst [vmem:[#allocation393_spill] sm:$0xff] %v10347_v22  ;;  %12783 = vst [vmem:[#allocation394_spill] sm:$0xff] %v10349_v21 }
 0x41a   : > { %5251 = vrot.lane.b32.xlu1 %v2467_v13, %s6748_s4  ;;  %5253 = vrot.lane.b32.xlu0 %v2565_v42, %s6748_s4  ;;  %v2859_v13 = vcombine.high %v10165_v28, %v12413_v53  ;;  %v2957_v42 = vcombine.high %v10169_v19, %v12413_v53 }
 0x41c   : > { %v10357_v50 = vpop.permute.xlu1 %5011  ;;  %v10359_v56 = vpop.permute.xlu0 %5013 }
 0x41d   : > { %12784 = vst [vmem:[#allocation395_spill] sm:$0xff] %v10357_v50  ;;  %12785 = vst [vmem:[#allocation396_spill] sm:$0xff] %v10359_v56 }
 0x41e   : > { %5255 = vrot.lane.b32.xlu1 %v2663_v18, %s6748_s4  ;;  %5257 = vrot.lane.b32.xlu0 %v2761_v43, %s6748_s4  ;;  %v3055_v18 = vcombine.high %v10191_v24, %v12413_v53  ;;  %v3153_v43 = vcombine.high %v10195_v4, %v12413_v53  ;;  %v588_v24 = vcombine.high %v9826_v20, %v12413_v53 }
 0x41f   : > { %v784_v20 = vcombine.high %v9846_v34, %v12413_v53 }
 0x420   : > { %v10367_v60 = vpop.permute.xlu1 %5015  ;;  %v10369_v6 = vpop.permute.xlu0 %5017  ;;  %v10420_v50 = vrot.slane %v588_v24, %v6949_v55 }
 0x421   : > { %12786 = vst [vmem:[#allocation397_spill] sm:$0xff] %v10367_v60  ;;  %v10437_v24 = vrot.slane %v784_v20, %v6949_v55 }
 0x422   : > { %5259 = vrot.lane.b32.xlu1 %v2859_v13, %s6748_s4  ;;  %5261 = vrot.lane.b32.xlu0 %v2957_v42, %s6748_s4  ;;  %v3251_v13 = vcombine.high %v10215_v27, %v12413_v53  ;;  %v3349_v42 = vcombine.high %v10219_v61, %v12413_v53  ;;  %v3545_v27 = vcombine.high %v10238_v30, %v12413_v53 }
 0x423   : > { %v686_v61 = vcombine.high %v9841_v38, %v12413_v53  ;;  %v882_v30 = vcombine.high %v9864_v36, %v12413_v53  ;;  %v980_v38 = vcombine.high %v9869_v58, %v12413_v53  ;;  %v1078_v36 = vcombine.high %v9890_v51, %v12413_v53 }
 0x424   : > { %v10377_v40 = vpop.permute.xlu1 %5019  ;;  %v10379_v0 = vpop.permute.xlu0 %5085  ;;  %v1176_v58 = vcombine.high %v9895_v59, %v12413_v53  ;;  %v1274_v51 = vcombine.high %v9916_v12, %v12413_v53  ;;  %v1372_v59 = vcombine.high %v9921_v25, %v12413_v53  ;;  %v1470_v12 = vcombine.high %v9942_v3, %v12413_v53 }
 0x425   : > { %v10455_v20 = vrot.slane %v980_v38, %v6949_v55  ;;  %v1568_v25 = vcombine.high %v9947_v37, %v12413_v53  ;;  %v1666_v3 = vcombine.high %v9968_v16, %v12413_v53  ;;  %v1764_v37 = vcombine.high %v9973_v5, %v12413_v53 }
 0x426   : > { %5263 = vrot.lane.b32.xlu1 %v3055_v18, %s6748_s4  ;;  %5265 = vrot.lane.b32.xlu0 %v3153_v43, %s6748_s4  ;;  %v3447_v43 = vcombine.high %v10234_v10, %v12413_v53  ;;  %v3643_v10 = vcombine.high %v10250_v35, %v12413_v53  ;;  %v10434_v35 = vrot.slane %v686_v61, %v6949_v55 }
 0x427   : > { %v10452_v61 = vrot.slane %v882_v30, %v6949_v55  ;;  %v10470_v30 = vrot.slane %v1078_v36, %v6949_v55  ;;  %v10473_v38 = vrot.slane %v1176_v58, %v6949_v55  ;;  %v10488_v36 = vrot.slane %v1274_v51, %v6949_v55 }
 0x428   : > { %v10387_v28 = vpop.permute.xlu1 %5087  ;;  %v10389_v19 = vpop.permute.xlu0 %5089  ;;  %v10491_v58 = vrot.slane %v1372_v59, %v6949_v55  ;;  %v10506_v51 = vrot.slane %v1470_v12, %v6949_v55  ;;  %v10509_v59 = vrot.slane %v1568_v25, %v6949_v55  ;;  %v1862_v16 = vcombine.high %v9994_v26, %v12413_v53 }
 0x429   : > { %12787 = vst [vmem:[#allocation398_spill] sm:$0xff] %v10389_v19  ;;  %v1960_v5 = vcombine.high %v9999_v32, %v12413_v53  ;;  %v10524_v12 = vrot.slane %v1666_v3, %v6949_v55  ;;  %v10527_v25 = vrot.slane %v1764_v37, %v6949_v55  ;;  %v2058_v26 = vcombine.high %v10020_v49, %v12413_v53 }
 0x42a   : > { %5267 = vrot.lane.b32.xlu1 %v3251_v13, %s6748_s4  ;;  %5269 = vrot.lane.b32.xlu0 %v3349_v42, %s6748_s4  ;;  %v2156_v32 = vcombine.high %v10025_v23, %v12413_v53  ;;  %v10542_v3 = vrot.slane %v1862_v16, %v6949_v55  ;;  %v2254_v49 = vcombine.high %v10046_v2, %v12413_v53 }
 0x42b   : > { %v10545_v37 = vrot.slane %v1960_v5, %v6949_v55  ;;  %v2352_v23 = vcombine.high %v10051_v33, %v12413_v53  ;;  %v10560_v16 = vrot.slane %v2058_v26, %v6949_v55  ;;  %v2450_v2 = vcombine.high %v10072_v11, %v12413_v53 }
 0x42c   : > { %v10399_v4 = vpop.permute.xlu1 %5091  ;;  %v10401_v18 = vpop.permute.xlu0 %5093  ;;  %v10563_v5 = vrot.slane %v2156_v32, %v6949_v55  ;;  %v2548_v33 = vcombine.high %v10077_v8, %v12413_v53  ;;  %v10578_v26 = vrot.slane %v2254_v49, %v6949_v55  ;;  %v2646_v11 = vcombine.high %v10098_v39, %v12413_v53  ;;  %v12804_v8 = vld [vmem:[#allocation77_spill] sm:$0xff]  ;;  %v12807_v39 = vld [vmem:[#allocation367_spill] sm:$0xff] }
 0x42d   : > { %12788 = vst [vmem:[#allocation399_spill] sm:$0xff] %v10399_v4  ;;  %v10581_v32 = vrot.slane %v2352_v23, %v6949_v55  ;;  %v10596_v49 = vrot.slane %v2450_v2, %v6949_v55  ;;  %v704_v9 = vcombine.high %v10434_v35, %v12413_v53 }
 0x42e   : > { %5271 = vrot.lane.b32.xlu1 %v3447_v43, %s6748_s4  ;;  %5273 = vrot.lane.b32.xlu0 %v3545_v27, %s6748_s4  ;;  %v10599_v23 = vrot.slane %v2548_v33, %v6949_v55  ;;  %v10614_v2 = vrot.slane %v2646_v11, %v6949_v55 }
 0x430   : > { %v10413_v13 = vpop.permute.xlu1 %5095  ;;  %v10415_v42 = vpop.permute.xlu0 %5097 }
 0x431   : > { %12789 = vst [vmem:[#allocation400_spill] sm:$0xff] %v10415_v42 }
 0x432   : > { %5275 = vrot.lane.b32.xlu1 %v3643_v10, %s6748_s4  ;;  %5341 = vrot.lane.b32.xlu0 %v10420_v50, %s6749_s5 }
 0x434   : > { %v10429_v34 = vpop.permute.xlu1 %5099  ;;  %v10431_v43 = vpop.permute.xlu0 %5101 }
 0x435   : > { %12790 = vst [vmem:[#allocation401_spill] sm:$0xff] %v10429_v34  ;;  %v2842_v34 = vcombine.high %v12807_v39, %v12413_v53  ;;  %v12811_v39 = vld [vmem:[#allocation369_spill] sm:$0xff] }
 0x436   : > { %5343 = vrot.lane.b32.xlu1 %v10434_v35, %s6749_s5  ;;  %5345 = vrot.lane.b32.xlu0 %v10437_v24, %s6749_s5  ;;  %v3038_v19 = vcombine.high %v12811_v39, %v12413_v53  ;;  %v3234_v39 = vcombine.high %v10176_v44, %v12413_v53  ;;  %v12814_v44 = vld [vmem:[#allocation371_spill] sm:$0xff] }
 0x437   : > { %v10632_v11 = vrot.slane %v2842_v34, %v6949_v55 }
 0x438   : > { %v10447_v27 = vpop.permute.xlu1 %5103  ;;  %v10449_v10 = vpop.permute.xlu0 %5105  ;;  %v10650_v34 = vrot.slane %v3038_v19, %v6949_v55  ;;  %v10668_v19 = vrot.slane %v3234_v39, %v6949_v55 }
 0x439   : > { %12791 = vst [vmem:[#allocation402_spill] sm:$0xff] %v10449_v10 }
 0x43a   : > { %5347 = vrot.lane.b32.xlu1 %v10452_v61, %s6749_s5  ;;  %5349 = vrot.lane.b32.xlu0 %v10455_v20, %s6749_s5 }
 0x43c   : > { %v10465_v21 = vpop.permute.xlu1 %5107  ;;  %v10467_v46 = vpop.permute.xlu0 %5109 }
 0x43d   : > { %12792 = vst [vmem:[#allocation403_spill] sm:$0xff] %v10465_v21 }
 0x43e   : > { %5351 = vrot.lane.b32.xlu1 %v10470_v30, %s6749_s5  ;;  %5353 = vrot.lane.b32.xlu0 %v10473_v38, %s6749_s5 }
 0x440   : > { %v10483_v15 = vpop.permute.xlu1 %5111  ;;  %v10485_v29 = vpop.permute.xlu0 %5113 }
 0x441   : > { %12793 = vst [vmem:[#allocation404_spill] sm:$0xff] %v10485_v29 }
 0x442   : > { %5355 = vrot.lane.b32.xlu1 %v10488_v36, %s6749_s5  ;;  %5357 = vrot.lane.b32.xlu0 %v10491_v58, %s6749_s5 }
 0x444   : > { %v10501_v47 = vpop.permute.xlu1 %5115  ;;  %v10503_v48 = vpop.permute.xlu0 %5117 }
 0x445   : > { %12794 = vst [vmem:[#allocation405_spill] sm:$0xff] %v10501_v47  ;;  %12795 = vst [vmem:[#allocation406_spill] sm:$0xff] %v10503_v48  ;;  %v12864_v48 = vld [vmem:[#allocation36_spill] sm:$0xff] }
 0x446   : > { %5359 = vrot.lane.b32.xlu1 %v10506_v51, %s6749_s5  ;;  %5361 = vrot.lane.b32.xlu0 %v10509_v59, %s6749_s5 }
 0x448   : > { %v10519_v47 = vpop.permute.xlu1 %5119  ;;  %v10521_v29 = vpop.permute.xlu0 %5121 }
 0x449   : > { %12796 = vst [vmem:[#allocation407_spill] sm:$0xff] %v10519_v47  ;;  %12797 = vst [vmem:[#allocation408_spill] sm:$0xff] %v10521_v29 }
 0x44a   : > { %5363 = vrot.lane.b32.xlu1 %v10524_v12, %s6749_s5  ;;  %5365 = vrot.lane.b32.xlu0 %v10527_v25, %s6749_s5 }
 0x44c   : > { %v10537_v45 = vpop.permute.xlu1 %5123  ;;  %v10539_v29 = vpop.permute.xlu0 %5125 }
 0x44d   : > { %12798 = vst [vmem:[#allocation409_spill] sm:$0xff] %v10537_v45  ;;  %12799 = vst [vmem:[#allocation410_spill] sm:$0xff] %v10539_v29 }
 0x44e   : > { %5367 = vrot.lane.b32.xlu1 %v10542_v3, %s6749_s5  ;;  %5369 = vrot.lane.b32.xlu0 %v10545_v37, %s6749_s5 }
 0x450   : > { %v10555_v45 = vpop.permute.xlu1 %5127  ;;  %v10557_v21 = vpop.permute.xlu0 %5129 }
 0x451   : > { %12800 = vst [vmem:[#allocation411_spill] sm:$0xff] %v10555_v45  ;;  %12801 = vst [vmem:[#allocation412_spill] sm:$0xff] %v10557_v21 }
 0x452   : > { %5371 = vrot.lane.b32.xlu1 %v10560_v16, %s6749_s5  ;;  %5373 = vrot.lane.b32.xlu0 %v10563_v5, %s6749_s5 }
 0x454   : > { %v10573_v7 = vpop.permute.xlu1 %5131  ;;  %v10575_v21 = vpop.permute.xlu0 %5133 }
 0x455   : > { %12802 = vst [vmem:[#allocation413_spill] sm:$0xff] %v10573_v7  ;;  %12803 = vst [vmem:[#allocation414_spill] sm:$0xff] %v10575_v21  ;;  %v2744_v7 = vcombine.high %v12804_v8, %v12413_v53  ;;  %v12808_v8 = vld [vmem:[#allocation79_spill] sm:$0xff] }
 0x456   : > { %5375 = vrot.lane.b32.xlu1 %v10578_v26, %s6749_s5  ;;  %5377 = vrot.lane.b32.xlu0 %v10581_v32, %s6749_s5  ;;  %v2940_v42 = vcombine.high %v12808_v8, %v12413_v53  ;;  %v12812_v8 = vld [vmem:[#allocation81_spill] sm:$0xff] }
 0x457   : > { %v10617_v33 = vrot.slane %v2744_v7, %v6949_v55 }
 0x458   : > { %v10591_v10 = vpop.permute.xlu1 %5135  ;;  %v10593_v17 = vpop.permute.xlu0 %5137  ;;  %v10635_v7 = vrot.slane %v2940_v42, %v6949_v55 }
 0x459   : > { %12805 = vst [vmem:[#allocation77_spill] sm:$0xff] %v10591_v10  ;;  %12806 = vst [vmem:[#allocation415_spill] sm:$0xff] %v10593_v17  ;;  %v3430_v10 = vcombine.high %v12814_v44, %v12413_v53  ;;  %v12817_v44 = vld [vmem:[#allocation374_spill] sm:$0xff] }
 0x45a   : > { %5379 = vrot.lane.b32.xlu1 %v10596_v49, %s6749_s5  ;;  %5381 = vrot.lane.b32.xlu0 %v10599_v23, %s6749_s5  ;;  %v3626_v45 = vcombine.high %v12817_v44, %v12413_v53 }
 0x45c   : > { %v10609_v4 = vpop.permute.xlu1 %5139  ;;  %v10611_v17 = vpop.permute.xlu0 %5141  ;;  %v10698_v44 = vrot.slane %v3626_v45, %v6949_v55 }
 0x45d   : > { %12809 = vst [vmem:[#allocation367_spill] sm:$0xff] %v10609_v4  ;;  %12810 = vst [vmem:[#allocation79_spill] sm:$0xff] %v10611_v17  ;;  %v3136_v4 = vcombine.high %v12812_v8, %v12413_v53  ;;  %v3332_v8 = vcombine.high %v10181_v54, %v12413_v53  ;;  %v12815_v54 = vld [vmem:[#allocation372_spill] sm:$0xff] }
 0x45e   : > { %5383 = vrot.lane.b32.xlu1 %v10614_v2, %s6749_s5  ;;  %5385 = vrot.lane.b32.xlu0 %v10617_v33, %s6749_s5  ;;  %v3528_v22 = vcombine.high %v12815_v54, %v12413_v53 }
 0x45f   : > { %v10653_v42 = vrot.slane %v3136_v4, %v6949_v55  ;;  %v10671_v4 = vrot.slane %v3332_v8, %v6949_v55 }
 0x460   : > { %v10627_v60 = vpop.permute.xlu1 %5143  ;;  %v10629_v17 = vpop.permute.xlu0 %5145  ;;  %v10687_v39 = vrot.slane %v3528_v22, %v6949_v55 }
 0x461   : > { %12813 = vst [vmem:[#allocation369_spill] sm:$0xff] %v10627_v60 }
 0x462   : > { %5387 = vrot.lane.b32.xlu1 %v10632_v11, %s6749_s5  ;;  %5389 = vrot.lane.b32.xlu0 %v10635_v7, %s6749_s5 }
 0x464   : > { %v10645_v60 = vpop.permute.xlu1 %5147  ;;  %v10647_v56 = vpop.permute.xlu0 %5213 }
 0x466   : > { %5391 = vrot.lane.b32.xlu1 %v10650_v34, %s6749_s5  ;;  %5393 = vrot.lane.b32.xlu0 %v10653_v42, %s6749_s5 }
 0x468   : > { %v10663_v21 = vpop.permute.xlu1 %5215  ;;  %v10665_v57 = vpop.permute.xlu0 %5217 }
 0x469   : > { %12816 = vst [vmem:[#allocation81_spill] sm:$0xff] %v10665_v57  ;;  %v10684_v57 = vrot.slane %v3430_v10, %v6949_v55  ;;  %v606_v10 = vcombine.high %v10420_v50, %v12413_v53  ;;  %v802_v55 = vcombine.high %v10437_v24, %v12413_v53 }
 0x46a   : > { %5395 = vrot.lane.b32.xlu1 %v10668_v19, %s6749_s5  ;;  %5397 = vrot.lane.b32.xlu0 %v10671_v4, %s6749_s5 }
 0x46c   : > { %v10679_v54 = vpop.permute.xlu1 %5219  ;;  %v10681_v62 = vpop.permute.xlu0 %5221 }
 0x46d   : > { %12818 = vst [vmem:[#allocation371_spill] sm:$0xff] %v10679_v54 }
 0x46e   : > { %5399 = vrot.lane.b32.xlu1 %v10684_v57, %s6749_s5  ;;  %5401 = vrot.lane.b32.xlu0 %v10687_v39, %s6749_s5 }
 0x470   : > { %v10693_v8 = vpop.permute.xlu1 %5223  ;;  %v10695_v29 = vpop.permute.xlu0 %5225 }
 0x471   : > { %12819 = vst [vmem:[#allocation372_spill] sm:$0xff] %v10695_v29 }
 0x472   : > { %5403 = vrot.lane.b32.xlu1 %v10698_v44, %s6749_s5  ;;  %5469 = vrot.lane.b32.xlu0 %v606_v10, %s6750_s14  ;;  %v900_v10 = vcombine.high %v10452_v61, %v12413_v53 }
 0x474   : > { %v10705_v22 = vpop.permute.xlu1 %5227  ;;  %v10707_v54 = vpop.permute.xlu0 %5229 }
 0x475   : > { %12820 = vst [vmem:[#allocation374_spill] sm:$0xff] %v10705_v22  ;;  %v998_v22 = vcombine.high %v10455_v20, %v12413_v53 }
 0x476   : > { %5471 = vrot.lane.b32.xlu1 %v704_v9, %s6750_s14  ;;  %5473 = vrot.lane.b32.xlu0 %v802_v55, %s6750_s14  ;;  %v1096_v9 = vcombine.high %v10470_v30, %v12413_v53  ;;  %v1194_v55 = vcombine.high %v10473_v38, %v12413_v53 }
 0x478   : > { %v10715_v45 = vpop.permute.xlu1 %5231  ;;  %v10717_v50 = vpop.permute.xlu0 %5233 }
 0x479   : > { %12821 = vst [vmem:[#allocation416_spill] sm:$0xff] %v10717_v50 }
 0x47a   : > { %5475 = vrot.lane.b32.xlu1 %v900_v10, %s6750_s14  ;;  %5477 = vrot.lane.b32.xlu0 %v998_v22, %s6750_s14  ;;  %v1292_v22 = vcombine.high %v10488_v36, %v12413_v53  ;;  %v1390_v10 = vcombine.high %v10491_v58, %v12413_v53 }
 0x47c   : > { %v10725_v35 = vpop.permute.xlu1 %5235  ;;  %v10727_v24 = vpop.permute.xlu0 %5237 }
 0x47d   : > { %12822 = vst [vmem:[#allocation417_spill] sm:$0xff] %v10725_v35  ;;  %v12835_v35 = vld [vmem:[#allocation17_spill] sm:$0xff] }
 0x47e   : > { %5479 = vrot.lane.b32.xlu1 %v1096_v9, %s6750_s14  ;;  %5481 = vrot.lane.b32.xlu0 %v1194_v55, %s6750_s14  ;;  %v1488_v9 = vcombine.high %v10506_v51, %v12413_v53  ;;  %v1586_v55 = vcombine.high %v10509_v59, %v12413_v53 }
 0x480   : > { %v10735_v61 = vpop.permute.xlu1 %5239  ;;  %v10737_v20 = vpop.permute.xlu0 %5241 }
 0x481   : > { %12823 = vst [vmem:[#allocation418_spill] sm:$0xff] %v10737_v20  ;;  %v12833_v20 = vld [vmem:[#allocation15_spill] sm:$0xff] }
 0x482   : > { %5483 = vrot.lane.b32.xlu1 %v1292_v22, %s6750_s14  ;;  %5485 = vrot.lane.b32.xlu0 %v1390_v10, %s6750_s14  ;;  %v1684_v22 = vcombine.high %v10524_v12, %v12413_v53  ;;  %v1782_v10 = vcombine.high %v10527_v25, %v12413_v53  ;;  %v12831_v12 = vld [vmem:[#allocation14_spill] sm:$0xff] }
 0x483   : > { %v12832_v25 = vld [vmem:[#allocation86_spill] sm:$0xff] }
 0x484   : > { %v10745_v30 = vpop.permute.xlu1 %5243  ;;  %v10747_v38 = vpop.permute.xlu0 %5245 }
 0x485   : > { %12824 = vst [vmem:[#allocation419_spill] sm:$0xff] %v10745_v30  ;;  %12825 = vst [vmem:[#allocation420_spill] sm:$0xff] %v10747_v38  ;;  %v12861_v38 = vld [vmem:[#allocation98_spill] sm:$0xff] }
 0x486   : > { %5487 = vrot.lane.b32.xlu1 %v1488_v9, %s6750_s14  ;;  %5489 = vrot.lane.b32.xlu0 %v1586_v55, %s6750_s14  ;;  %v1880_v9 = vcombine.high %v10542_v3, %v12413_v53  ;;  %v1978_v55 = vcombine.high %v10545_v37, %v12413_v53  ;;  %v12836_v3 = vld [vmem:[#allocation89_spill] sm:$0xff]  ;;  %v12837_v37 = vld [vmem:[#allocation19_spill] sm:$0xff] }
 0x487   : > { %v10789_v50 = vsel %vm5565_vm0, %v12837_v37, %v12836_v3  ;;  %v12849_v3 = vld [vmem:[#allocation94_spill] sm:$0xff]  ;;  %v12850_v37 = vld [vmem:[#allocation28_spill] sm:$0xff] }
 0x488   : > { %v10755_v36 = vpop.permute.xlu1 %5247  ;;  %v10757_v58 = vpop.permute.xlu0 %5249  ;;  %v10810_v1 = vsel %vm5565_vm0, %v12850_v37, %v12849_v3  ;;  %v12858_v37 = vld [vmem:[#allocation97_spill] sm:$0xff] }
 0x489   : > { %12826 = vst [vmem:[#allocation421_spill] sm:$0xff] %v10755_v36  ;;  %12827 = vst [vmem:[#allocation422_spill] sm:$0xff] %v10757_v58  ;;  %v12830_v58 = vld [vmem:[#allocation87_spill] sm:$0xff] }
 0x48a   : > { %5491 = vrot.lane.b32.xlu1 %v1684_v22, %s6750_s14  ;;  %5493 = vrot.lane.b32.xlu0 %v1782_v10, %s6750_s14  ;;  %v5567_v30 = vsel %vm5565_vm0, %v12831_v12, %v12830_v58  ;;  %v5566_v22 = vsel %vm5565_vm0, %v12833_v20, %v12832_v25  ;;  %v12834_v10 = vld [vmem:[#allocation88_spill] sm:$0xff]  ;;  %12838 = vst [vmem:[#allocation87_spill] sm:$0xff] %v10789_v50  ;;  %v12839_v58 = vld [vmem:[#allocation90_spill] sm:$0xff]  ;;  %v12840_v12 = vld [vmem:[#allocation21_spill] sm:$0xff] }
 0x48b   : > { %v5570_v29 = vsel %vm5565_vm0, %v12840_v12, %v12839_v58  ;;  %v12841_v20 = vld [vmem:[#allocation91_spill] sm:$0xff]  ;;  %v12866_v50 = vld [vmem:[#allocation38_spill] sm:$0xff] }
 0x48c   : > { %v10765_v51 = vpop.permute.xlu1 %5251  ;;  %v10767_v59 = vpop.permute.xlu0 %5253  ;;  %v12842_v25 = vld [vmem:[#allocation23_spill] sm:$0xff] }
 0x48d   : > { %12828 = vst [vmem:[#allocation423_spill] sm:$0xff] %v10765_v51  ;;  %12829 = vst [vmem:[#allocation424_spill] sm:$0xff] %v10767_v59  ;;  %v10782_v51 = vsel %vm5565_vm0, %v12835_v35, %v12834_v10  ;;  %v5571_v59 = vsel %vm5565_vm0, %v12842_v25, %v12841_v20  ;;  %v12843_v35 = vld [vmem:[#allocation92_spill] sm:$0xff]  ;;  %v12844_v10 = vld [vmem:[#allocation25_spill] sm:$0xff]  ;;  %v2076_v20 = vcombine.high %v10560_v16, %v12413_v53 }
 0x48e   : > { %5495 = vrot.lane.b32.xlu1 %v1880_v9, %s6750_s14  ;;  %5497 = vrot.lane.b32.xlu0 %v1978_v55, %s6750_s14  ;;  %v10800_v36 = vsel %vm5565_vm0, %v12844_v10, %v12843_v35  ;;  %v12846_v9 = vld [vmem:[#allocation93_spill] sm:$0xff]  ;;  %v12847_v55 = vld [vmem:[#allocation26_spill] sm:$0xff]  ;;  %v2174_v25 = vcombine.high %v10563_v5, %v12413_v53  ;;  %v12853_v35 = vld [vmem:[#allocation95_spill] sm:$0xff] }
 0x48f   : > { %12845 = vst [vmem:[#allocation14_spill] sm:$0xff] %v10800_v36  ;;  %v10805_v47 = vsel %vm5565_vm0, %v12847_v55, %v12846_v9  ;;  %v12854_v10 = vld [vmem:[#allocation30_spill] sm:$0xff]  ;;  %v12855_v55 = vld [vmem:[#allocation96_spill] sm:$0xff]  ;;  %v12862_v16 = vld [vmem:[#allocation35_spill] sm:$0xff] }
 0x490   : > { %12848 = vst [vmem:[#allocation86_spill] sm:$0xff] %v10805_v47  ;;  %v10812_v58 = vpop.permute.xlu1 %5255  ;;  %v10814_v12 = vpop.permute.xlu0 %5257  ;;  %v10823_v9 = vsel %vm5565_vm0, %v12854_v10, %v12853_v35  ;;  %v12856_v47 = vld [vmem:[#allocation31_spill] sm:$0xff]  ;;  %v10838_v36 = vsel %vm5565_vm0, %v12862_v16, %v12861_v38  ;;  %v12865_v10 = vld [vmem:[#allocation100_spill] sm:$0xff]  ;;  %v12871_v38 = vld [vmem:[#allocation102_spill] sm:$0xff]  ;;  %v2272_v16 = vcombine.high %v10578_v26, %v12413_v53  ;;  %v10880_v26 = vcombine.high %v10632_v11, %v12413_v53 }
 0x491   : > { %12851 = vst [vmem:[#allocation15_spill] sm:$0xff] %v10812_v58  ;;  %12852 = vst [vmem:[#allocation88_spill] sm:$0xff] %v10814_v12  ;;  %v10828_v3 = vsel %vm5565_vm0, %v12856_v47, %v12855_v55  ;;  %v12859_v58 = vld [vmem:[#allocation33_spill] sm:$0xff]  ;;  %v12863_v5 = vld [vmem:[#allocation99_spill] sm:$0xff]  ;;  %v10848_v47 = vsel %vm5565_vm0, %v12866_v50, %v12865_v10  ;;  %v2370_v50 = vcombine.high %v10581_v32, %v12413_v53 }
 0x492   : > { %12857 = vst [vmem:[#allocation17_spill] sm:$0xff] %v10828_v3  ;;  %v10833_v12 = vsel %vm5565_vm0, %v12859_v58, %v12858_v37  ;;  %v10843_v35 = vsel %vm5565_vm0, %v12864_v48, %v12863_v5  ;;  %12867 = vst [vmem:[#allocation19_spill] sm:$0xff] %v10848_v47  ;;  %v12868_v55 = vld [vmem:[#allocation101_spill] sm:$0xff]  ;;  %v12869_v3 = vld [vmem:[#allocation40_spill] sm:$0xff]  ;;  %5499 = vrot.lane.b32.xlu1 %v2076_v20, %s6750_s14  ;;  %5501 = vrot.lane.b32.xlu0 %v2174_v25, %s6750_s14 }
 0x493   : > { %12860 = vst [vmem:[#allocation89_spill] sm:$0xff] %v10833_v12  ;;  %v10853_v58 = vsel %vm5565_vm0, %v12869_v3, %v12868_v55  ;;  %v12872_v37 = vld [vmem:[#allocation41_spill] sm:$0xff]  ;;  %v2468_v3 = vcombine.high %v10596_v49, %v12413_v53  ;;  %v2566_v20 = vcombine.high %v10599_v23, %v12413_v53  ;;  %v2664_v25 = vcombine.high %v10614_v2, %v12413_v53  ;;  %v12875_v32 = vld [vmem:[#allocation116_spill] sm:$0xff]  ;;  %v12883_v12 = vld [vmem:[#allocation123_spill] sm:$0xff] }
 0x494   : > { %12870 = vst [vmem:[#allocation90_spill] sm:$0xff] %v10853_v58  ;;  %v10860_v48 = vsel %vm5565_vm0, %v12872_v37, %v12871_v38  ;;  %v10868_v5 = vpop.permute.xlu1 %5259  ;;  %v10870_v10 = vpop.permute.xlu0 %5261  ;;  %v2762_v55 = vcombine.high %v10617_v33, %v12413_v53  ;;  %v12876_v38 = vld [vmem:[#allocation74_spill] sm:$0xff]  ;;  %v10887_v37 = vcombine.high %v10635_v7, %v12413_v53  ;;  %v10891_v23 = vcombine.high %v10650_v34, %v12413_v53  ;;  %v12877_v33 = vld [vmem:[#allocation117_spill] sm:$0xff]  ;;  %v12881_v7 = vld [vmem:[#allocation119_spill] sm:$0xff] }
 0x495   : > { %12873 = vst [vmem:[#allocation21_spill] sm:$0xff] %v10868_v5  ;;  %12874 = vst [vmem:[#allocation91_spill] sm:$0xff] %v10870_v10  ;;  %v5596_v49 = vsel %vm5565_vm0, %v12876_v38, %v12875_v32  ;;  %v10895_v2 = vcombine.high %v10653_v42, %v12413_v53  ;;  %v12878_v5 = vld [vmem:[#allocation76_spill] sm:$0xff]  ;;  %v12879_v10 = vld [vmem:[#allocation118_spill] sm:$0xff]  ;;  %v5600_v34 = vsel %vm5598_vm1, %v5567_v30, %v12881_v7 }
 0x496   : > { %v5597_v11 = vsel %vm5565_vm0, %v12878_v5, %v12877_v33  ;;  %v5599_v58 = vsel %vm5598_vm1, %v5566_v22, %v12879_v10  ;;  %v12880_v32 = vld [vmem:[#allocation146_spill] sm:$0xff]  ;;  %5503 = vrot.lane.b32.xlu1 %v2272_v16, %s6750_s14  ;;  %5505 = vrot.lane.b32.xlu0 %v2370_v50, %s6750_s14  ;;  %v10912_v5 = vsel %vm5598_vm1, %v5571_v59, %v12883_v12  ;;  %v12885_v10 = vld [vmem:[#allocation69_spill] sm:$0xff]  ;;  %v12887_v50 = vld [vmem:[#allocation64_spill] sm:$0xff] }
 0x497   : > { %v5629_v38 = vsel %vm5598_vm1, %v5596_v49, %v12880_v32  ;;  %v12882_v42 = vld [vmem:[#allocation122_spill] sm:$0xff]  ;;  %v5630_v49 = vsel %vm5598_vm1, %v5597_v11, %v12885_v10  ;;  %v12886_v32 = vld [vmem:[#allocation72_spill] sm:$0xff]  ;;  %v12888_v7 = vld [vmem:[#allocation75_spill] sm:$0xff] }
 0x498   : > { %v5603_v47 = vsel %vm5598_vm1, %v5570_v29, %v12882_v42  ;;  %v12884_v33 = vld [vmem:[#allocation178_spill] sm:$0xff]  ;;  %v5632_v16 = vsel %vm5631_vm2, %v5599_v58, %v12886_v32  ;;  %v10922_v30 = vpop.permute.xlu1 %5263  ;;  %v10924_v29 = vpop.permute.xlu0 %5265  ;;  %v5633_v59 = vsel %vm5631_vm2, %v5600_v34, %v12888_v7  ;;  %v12889_v12 = vld [vmem:[#allocation152_spill] sm:$0xff]  ;;  %v12894_v34 = vld [vmem:[#allocation181_spill] sm:$0xff] }
 0x499   : > { %v5662_v22 = vsel %vm5631_vm2, %v5629_v38, %v12884_v33  ;;  %v5636_v38 = vsel %vm5631_vm2, %v5603_v47, %v12889_v12  ;;  %v12890_v42 = vld [vmem:[#allocation234_spill] sm:$0xff]  ;;  %v12891_v33 = vld [vmem:[#allocation179_spill] sm:$0xff]  ;;  %v12892_v10 = vld [vmem:[#allocation180_spill] sm:$0xff]  ;;  %v5666_v47 = vsel %vm5664_vm3, %v5633_v59, %v12894_v34 }
 0x49a   : > { %v5695_v52 = vsel %vm5664_vm3, %v5662_v22, %v12887_v50  ;;  %v5663_v58 = vsel %vm5631_vm2, %v5630_v49, %v12891_v33  ;;  %v5665_v22 = vsel %vm5664_vm3, %v5632_v16, %v12892_v10  ;;  %v12893_v32 = vld [vmem:[#allocation270_spill] sm:$0xff]  ;;  %5507 = vrot.lane.b32.xlu1 %v2468_v3, %s6750_s14  ;;  %5509 = vrot.lane.b32.xlu0 %v2566_v20, %s6750_s14  ;;  %v12898_v33 = vld [vmem:[#allocation147_spill] sm:$0xff]  ;;  %v12899_v10 = vld [vmem:[#allocation268_spill] sm:$0xff] }
 0x49b   : > { %v5728_v11 = vsel %vm5697_vm4, %v5695_v52, %v12890_v42  ;;  %v12895_v7 = vld [vmem:[#allocation206_spill] sm:$0xff]  ;;  %v12897_v42 = vld [vmem:[#allocation207_spill] sm:$0xff]  ;;  %v12901_v34 = vld [vmem:[#allocation236_spill] sm:$0xff] }
 0x49c   : > { %v5761_v50 = vsel %vm5730_vm5, %v5728_v11, %v12893_v32  ;;  %v5696_v52 = vsel %vm5664_vm3, %v5663_v58, %v12895_v7  ;;  %v12896_v12 = vld [vmem:[#allocation306_spill] sm:$0xff]  ;;  %v5698_v16 = vsel %vm5697_vm4, %v5665_v22, %v12897_v42  ;;  %v5699_v11 = vsel %vm5697_vm4, %v5666_v47, %v12898_v33  ;;  %v10952_v20 = vpop.permute.xlu1 %5267  ;;  %v10954_v59 = vpop.permute.xlu0 %5269  ;;  %v12900_v32 = vld [vmem:[#allocation235_spill] sm:$0xff] }
 0x49d   : > { %v5794_v49 = vsel %vm5763_vm6, %v5761_v50, %v12896_v12  ;;  %v5729_v58 = vsel %vm5697_vm4, %v5696_v52, %v12900_v32  ;;  %v5731_v50 = vsel %vm5730_vm5, %v5698_v16, %v12901_v34  ;;  %v12902_v7 = vld [vmem:[#allocation362_spill] sm:$0xff]  ;;  %v12903_v12 = vld [vmem:[#allocation273_spill] sm:$0xff]  ;;  %v12906_v52 = vld [vmem:[#allocation307_spill] sm:$0xff] }
 0x49e   : > { %v5827_v3 = vsel %vm5796_vm7, %v5794_v49, %v12899_v10  ;;  %v5762_v47 = vsel %vm5730_vm5, %v5729_v58, %v12903_v12  ;;  %v12904_v42 = vld [vmem:[#allocation274_spill] sm:$0xff]  ;;  %5511 = vrot.lane.b32.xlu1 %v2664_v25, %s6750_s14  ;;  %5513 = vrot.lane.b32.xlu0 %v2762_v55, %s6750_s14  ;;  %v12907_v32 = vld [vmem:[#allocation308_spill] sm:$0xff]  ;;  %v12908_v34 = vld [vmem:[#allocation271_spill] sm:$0xff] }
 0x49f   : > { %v5860_v22 = vsel %vm5829_vm8, %v5827_v3, %v12902_v7  ;;  %v5764_v49 = vsel %vm5763_vm6, %v5731_v50, %v12904_v42  ;;  %v12905_v33 = vld [vmem:[#allocation370_spill] sm:$0xff]  ;;  %v5795_v16 = vsel %vm5763_vm6, %v5762_v47, %v12906_v52  ;;  %v12909_v7 = vld [vmem:[#allocation272_spill] sm:$0xff]  ;;  %v12910_v47 = vld [vmem:[#allocation237_spill] sm:$0xff] }
 0x4a0   : > { %v5893_v10 = vsel %vm5862_vm9, %v5860_v22, %v12905_v33  ;;  %v5797_v3 = vsel %vm5796_vm7, %v5764_v49, %v12907_v32  ;;  %v5828_v50 = vsel %vm5796_vm7, %v5795_v16, %v12908_v34  ;;  %v10982_v55 = vpop.permute.xlu1 %5271  ;;  %v5274_v12 = vpop.permute.xlu0 %5273  ;;  %v5732_v42 = vsel %vm5730_vm5, %v5699_v11, %v12910_v47  ;;  %v12911_v49 = vld [vmem:[#allocation363_spill] sm:$0xff]  ;;  %v12912_v33 = vld [vmem:[#allocation364_spill] sm:$0xff]  ;;  %v12913_v16 = vld [vmem:[#allocation277_spill] sm:$0xff] }
 0x4a1   : > { %v5926_v58 = vsel %vm5895_vm10, %v5893_v10, %v10369_v6  ;;  %v5830_v22 = vsel %vm5829_vm8, %v5797_v3, %v12909_v7  ;;  %v5861_v6 = vsel %vm5829_vm8, %v5828_v50, %v12911_v49  ;;  %v5765_v32 = vsel %vm5763_vm6, %v5732_v42, %v12913_v16  ;;  %v12916_v11 = vld [vmem:[#allocation184_spill] sm:$0xff]  ;;  %v12917_v7 = vld [vmem:[#allocation309_spill] sm:$0xff] }
 0x4a2   : > { %v5959_v25 = vsel %vm5928_vm11, %v5926_v58, %v10629_v17  ;;  %v5863_v10 = vsel %vm5862_vm9, %v5830_v22, %v12912_v33  ;;  %v12914_v17 = vld [vmem:[#allocation83_spill] sm:$0xff]  ;;  %v12915_v58 = vld [vmem:[#allocation84_spill] sm:$0xff]  ;;  %5515 = vrot.lane.b32.xlu1 %v10880_v26, %s6750_s14  ;;  %5517 = vrot.lane.b32.xlu0 %v10887_v37, %s6750_s14  ;;  %v5669_v50 = vsel %vm5664_vm3, %v5636_v38, %v12916_v11  ;;  %v12921_v16 = vld [vmem:[#allocation13_spill] sm:$0xff] }
 0x4a3   : > { %v10991_v52 = vsel %vm5961_vm12, %v5959_v25, %v5274_v12  ;;  %v5894_v3 = vsel %vm5862_vm9, %v5861_v6, %v12914_v17  ;;  %v5896_v34 = vsel %vm5895_vm10, %v5863_v10, %v12915_v58  ;;  %v5798_v22 = vsel %vm5796_vm7, %v5765_v32, %v12917_v7  ;;  %v12918_v47 = vld [vmem:[#allocation208_spill] sm:$0xff]  ;;  %v12919_v26 = vld [vmem:[#allocation275_spill] sm:$0xff] }
 0x4a4   : > { %v5927_v25 = vsel %vm5895_vm10, %v5894_v3, %v10377_v40  ;;  %v5929_v12 = vsel %vm5928_vm11, %v5896_v34, %v10379_v0  ;;  %v5702_v42 = vsel %vm5697_vm4, %v5669_v50, %v12918_v47  ;;  %v5831_v49 = vsel %vm5829_vm8, %v5798_v22, %v12919_v26  ;;  %v5276_v6 = vpop.permute.xlu1 %5275  ;;  %v5342_v33 = vpop.permute.xlu0 %5341  ;;  %v12920_v10 = vld [vmem:[#allocation240_spill] sm:$0xff]  ;;  %v12923_v3 = vld [vmem:[#allocation153_spill] sm:$0xff] }
 0x4a5   : > { %v5960_v37 = vsel %vm5928_vm11, %v5927_v25, %v10645_v60  ;;  %v5962_v38 = vsel %vm5961_vm12, %v5929_v12, %v10647_v56  ;;  %v5735_v40 = vsel %vm5730_vm5, %v5702_v42, %v12920_v10  ;;  %v5864_v0 = vsel %vm5862_vm9, %v5831_v49, %v12921_v16  ;;  %v12924_v58 = vld [vmem:[#allocation280_spill] sm:$0xff]  ;;  %v12925_v34 = vld [vmem:[#allocation85_spill] sm:$0xff] }
 0x4a6   : > { %v11024_v32 = vsel %vm5961_vm12, %v5960_v37, %v5276_v6  ;;  %v11027_v17 = vsel %vm5994_vm13, %v5962_v38, %v5342_v33  ;;  %v5637_v60 = vsel %vm5631_vm2, %v10912_v5, %v12923_v3  ;;  %v5768_v56 = vsel %vm5763_vm6, %v5735_v40, %v12924_v58  ;;  %5519 = vrot.lane.b32.xlu1 %v10891_v23, %s6750_s14  ;;  %v12926_v50 = vld [vmem:[#allocation185_spill] sm:$0xff]  ;;  %v12927_v22 = vld [vmem:[#allocation312_spill] sm:$0xff]  ;;  %v12930_v6 = vld [vmem:[#allocation126_spill] sm:$0xff] }
 0x4a7   : > { %12922 = vst [vmem:[#allocation23_spill] sm:$0xff] %v11024_v32  ;;  %v5897_v11 = vsel %vm5895_vm10, %v5864_v0, %v12925_v34  ;;  %5521 = vrot.lane.b32.xlu0 %v10895_v2, %s6750_s14  ;;  %v5670_v7 = vsel %vm5664_vm3, %v5637_v60, %v12926_v50  ;;  %v5801_v25 = vsel %vm5796_vm7, %v5768_v56, %v12927_v22  ;;  %v12928_v47 = vld [vmem:[#allocation209_spill] sm:$0xff]  ;;  %v12929_v26 = vld [vmem:[#allocation336_spill] sm:$0xff]  ;;  %v13165_v32 = vld [vmem:[#allocation282_spill] sm:$0xff] }
 0x4a8   : > { %v5930_v5 = vsel %vm5928_vm11, %v5897_v11, %v10387_v28  ;;  %v3252_v12 = vcombine.high %v10668_v19, %v12413_v53  ;;  %v5703_v42 = vsel %vm5697_vm4, %v5670_v7, %v12928_v47  ;;  %v5834_v23 = vsel %vm5829_vm8, %v5801_v25, %v12929_v26  ;;  %v5344_v49 = vpop.permute.xlu1 %5343  ;;  %v11054_v37 = vpop.permute.xlu0 %5345  ;;  %v12931_v19 = vld [vmem:[#allocation241_spill] sm:$0xff]  ;;  %v12932_v10 = vld [vmem:[#allocation16_spill] sm:$0xff] }
 0x4a9   : > { %v5963_v2 = vsel %vm5961_vm12, %v5930_v5, %v10663_v21  ;;  %v3350_v38 = vcombine.high %v10671_v4, %v12413_v53  ;;  %v5607_v28 = vsel %vm5598_vm1, %v10810_v1, %v12930_v6  ;;  %v5736_v33 = vsel %vm5730_vm5, %v5703_v42, %v12931_v19  ;;  %v12933_v21 = vld [vmem:[#allocation156_spill] sm:$0xff]  ;;  %v12934_v3 = vld [vmem:[#allocation281_spill] sm:$0xff] }
 0x4aa   : > { %v5867_v40 = vsel %vm5862_vm9, %v5834_v23, %v12932_v10  ;;  %v11066_v16 = vsel %vm5994_vm13, %v5963_v2, %v5344_v49  ;;  %v5640_v0 = vsel %vm5631_vm2, %v5607_v28, %v12933_v21  ;;  %v5769_v60 = vsel %vm5763_vm6, %v5736_v33, %v12934_v3  ;;  %v12935_v4 = vld [vmem:[#allocation376_spill] sm:$0xff]  ;;  %5523 = vrot.lane.b32.xlu1 %v3252_v12, %s6750_s14  ;;  %v12937_v34 = vld [vmem:[#allocation313_spill] sm:$0xff]  ;;  %v12940_v2 = vld [vmem:[#allocation127_spill] sm:$0xff] }
 0x4ab   : > { %v5900_v58 = vsel %vm5895_vm10, %v5867_v40, %v12935_v4  ;;  %5525 = vrot.lane.b32.xlu0 %v3350_v38, %s6750_s14  ;;  %v12936_v1 = vld [vmem:[#allocation188_spill] sm:$0xff]  ;;  %v5802_v11 = vsel %vm5796_vm7, %v5769_v60, %v12937_v34  ;;  %v3448_v7 = vcombine.high %v10684_v57, %v12413_v53  ;;  %v12939_v5 = vld [vmem:[#allocation337_spill] sm:$0xff]  ;;  %v3546_v23 = vcombine.high %v10687_v39, %v12413_v53  ;;  %v12942_v38 = vld [vmem:[#allocation18_spill] sm:$0xff] }
 0x4ac   : > { %v5673_v56 = vsel %vm5664_vm3, %v5640_v0, %v12936_v1  ;;  %v5933_v50 = vsel %vm5928_vm11, %v5900_v58, %v10401_v18  ;;  %v12938_v22 = vld [vmem:[#allocation212_spill] sm:$0xff]  ;;  %v5835_v12 = vsel %vm5829_vm8, %v5802_v11, %v12939_v5  ;;  %v11090_v42 = vpop.permute.xlu1 %5347  ;;  %v5350_v26 = vpop.permute.xlu0 %5349  ;;  %v5608_v18 = vsel %vm5598_vm1, %v10823_v9, %v12940_v2  ;;  %v12945_v39 = vld [vmem:[#allocation377_spill] sm:$0xff]  ;;  %v12946_v9 = vld [vmem:[#allocation103_spill] sm:$0xff] }
 0x4ad   : > { %v5706_v25 = vsel %vm5697_vm4, %v5673_v56, %v12938_v22  ;;  %v5966_v47 = vsel %vm5961_vm12, %v5933_v50, %v10681_v62  ;;  %v12941_v57 = vld [vmem:[#allocation244_spill] sm:$0xff]  ;;  %v5868_v6 = vsel %vm5862_vm9, %v5835_v12, %v12942_v38  ;;  %v12943_v62 = vld [vmem:[#allocation157_spill] sm:$0xff]  ;;  %v12947_v21 = vld [vmem:[#allocation43_spill] sm:$0xff]  ;;  %v3644_v5 = vcombine.high %v10698_v44, %v12413_v53 }
 0x4ae   : > { %v5739_v49 = vsel %vm5730_vm5, %v5706_v25, %v12941_v57  ;;  %v11102_v28 = vsel %vm5994_vm13, %v5966_v47, %v5350_v26  ;;  %v5641_v19 = vsel %vm5631_vm2, %v5608_v18, %v12943_v62  ;;  %v12944_v33 = vld [vmem:[#allocation284_spill] sm:$0xff]  ;;  %v5901_v40 = vsel %vm5895_vm10, %v5868_v6, %v12945_v39  ;;  %5527 = vrot.lane.b32.xlu1 %v3448_v7, %s6750_s14  ;;  %v12948_v3 = vld [vmem:[#allocation189_spill] sm:$0xff]  ;;  %v12952_v12 = vld [vmem:[#allocation130_spill] sm:$0xff] }
 0x4af   : > { %v5772_v10 = vsel %vm5763_vm6, %v5739_v49, %v12944_v33  ;;  %5529 = vrot.lane.b32.xlu0 %v3546_v23, %s6750_s14  ;;  %v11115_v0 = vsel %vm5565_vm0, %v12947_v21, %v12946_v9  ;;  %v5674_v60 = vsel %vm5664_vm3, %v5641_v19, %v12948_v3  ;;  %v12949_v4 = vld [vmem:[#allocation316_spill] sm:$0xff]  ;;  %v5934_v1 = vsel %vm5928_vm11, %v5901_v40, %v10413_v13  ;;  %v12950_v56 = vld [vmem:[#allocation213_spill] sm:$0xff]  ;;  %v12960_v19 = vld [vmem:[#allocation46_spill] sm:$0xff] }
 0x4b0   : > { %v5805_v58 = vsel %vm5796_vm7, %v5772_v10, %v12949_v4  ;;  %v5707_v34 = vsel %vm5697_vm4, %v5674_v60, %v12950_v56  ;;  %v12951_v11 = vld [vmem:[#allocation340_spill] sm:$0xff]  ;;  %v5967_v7 = vsel %vm5961_vm12, %v5934_v1, %v10693_v8  ;;  %v5352_v22 = vpop.permute.xlu1 %5351  ;;  %v11129_v25 = vpop.permute.xlu0 %5353  ;;  %v5611_v47 = vsel %vm5598_vm1, %v10838_v36, %v12952_v12  ;;  %v12953_v13 = vld [vmem:[#allocation245_spill] sm:$0xff]  ;;  %v12963_v3 = vld [vmem:[#allocation106_spill] sm:$0xff] }
 0x4b1   : > { %v5838_v50 = vsel %vm5829_vm8, %v5805_v58, %v12951_v11  ;;  %v5740_v26 = vsel %vm5730_vm5, %v5707_v34, %v12953_v13  ;;  %v12954_v23 = vld [vmem:[#allocation24_spill] sm:$0xff]  ;;  %v11141_v18 = vsel %vm5994_vm13, %v5967_v7, %v5352_v22  ;;  %v12956_v57 = vld [vmem:[#allocation45_spill] sm:$0xff]  ;;  %v12967_v7 = vld [vmem:[#allocation131_spill] sm:$0xff] }
 0x4b2   : > { %v5871_v2 = vsel %vm5862_vm9, %v5838_v50, %v12954_v23  ;;  %v12955_v8 = vld [vmem:[#allocation104_spill] sm:$0xff]  ;;  %v12958_v44 = vld [vmem:[#allocation285_spill] sm:$0xff]  ;;  %5531 = vrot.lane.b32.xlu1 %v3644_v5, %s6750_s14  ;;  %v12969_v12 = vld [vmem:[#allocation27_spill] sm:$0xff] }
 0x4b3   : > { %v11146_v49 = vsel %vm5565_vm0, %v12956_v57, %v12955_v8  ;;  %v12957_v38 = vld [vmem:[#allocation160_spill] sm:$0xff]  ;;  %v5773_v36 = vsel %vm5763_vm6, %v5740_v26, %v12958_v44  ;;  %v5904_v6 = vsel %vm5895_vm10, %v5871_v2, %v10259_v41  ;;  %v12959_v62 = vld [vmem:[#allocation105_spill] sm:$0xff]  ;;  %v12970_v26 = vld [vmem:[#allocation107_spill] sm:$0xff] }
 0x4b4   : > { %v5644_v53 = vsel %vm5631_vm2, %v5611_v47, %v12957_v38  ;;  %v11158_v33 = vsel %vm5565_vm0, %v12960_v19, %v12959_v62  ;;  %v12961_v10 = vld [vmem:[#allocation192_spill] sm:$0xff]  ;;  %v12962_v40 = vld [vmem:[#allocation317_spill] sm:$0xff]  ;;  %v5937_v21 = vsel %vm5928_vm11, %v5904_v6, %v10431_v43  ;;  %v11175_v11 = vpop.permute.xlu1 %5355  ;;  %v5358_v50 = vpop.permute.xlu0 %5357  ;;  %v5612_v43 = vsel %vm5598_vm1, %v10843_v35, %v12967_v7  ;;  %v12971_v23 = vld [vmem:[#allocation50_spill] sm:$0xff] }
 0x4b5   : > { %v5677_v39 = vsel %vm5664_vm3, %v5644_v53, %v12961_v10  ;;  %v5806_v9 = vsel %vm5796_vm7, %v5773_v36, %v12962_v40  ;;  %v12964_v60 = vld [vmem:[#allocation48_spill] sm:$0xff]  ;;  %v12966_v1 = vld [vmem:[#allocation341_spill] sm:$0xff]  ;;  %v5970_v34 = vsel %vm5961_vm12, %v5937_v21, %v10707_v54  ;;  %v11190_v54 = vsel %vm5565_vm0, %v12971_v23, %v12970_v26 }
 0x4b6   : > { %v5586_v41 = vsel %vm5565_vm0, %v12964_v60, %v12963_v3  ;;  %v12965_v4 = vld [vmem:[#allocation216_spill] sm:$0xff]  ;;  %v5839_v56 = vsel %vm5829_vm8, %v5806_v9, %v12966_v1  ;;  %v11185_v13 = vsel %vm5994_vm13, %v5970_v34, %v5358_v50  ;;  %v12972_v2 = vld [vmem:[#allocation161_spill] sm:$0xff]  ;;  %v12979_v9 = vld [vmem:[#allocation55_spill] sm:$0xff] }
 0x4b7   : > { %v5710_v58 = vsel %vm5697_vm4, %v5677_v39, %v12965_v4  ;;  %v12968_v22 = vld [vmem:[#allocation248_spill] sm:$0xff]  ;;  %v5872_v47 = vsel %vm5862_vm9, %v5839_v56, %v12969_v12  ;;  %v5645_v8 = vsel %vm5631_vm2, %v5612_v43, %v12972_v2  ;;  %v12976_v6 = vld [vmem:[#allocation193_spill] sm:$0xff]  ;;  %v12982_v34 = vld [vmem:[#allocation134_spill] sm:$0xff] }
 0x4b8   : > { %v5743_v5 = vsel %vm5730_vm5, %v5710_v58, %v12968_v22  ;;  %v12973_v57 = vld [vmem:[#allocation288_spill] sm:$0xff]  ;;  %v5905_v38 = vsel %vm5895_vm10, %v5872_v47, %v10267_v63  ;;  %v5678_v62 = vsel %vm5664_vm3, %v5645_v8, %v12976_v6  ;;  %v12978_v40 = vld [vmem:[#allocation109_spill] sm:$0xff]  ;;  %v5360_v1 = vpop.permute.xlu1 %5359  ;;  %v11220_v56 = vpop.permute.xlu0 %5361  ;;  %v12984_v43 = vld [vmem:[#allocation34_spill] sm:$0xff] }
 0x4b9   : > { %v5776_v35 = vsel %vm5763_vm6, %v5743_v5, %v12973_v57  ;;  %v12974_v53 = vld [vmem:[#allocation108_spill] sm:$0xff]  ;;  %v5938_v39 = vsel %vm5928_vm11, %v5905_v38, %v10447_v27  ;;  %v11212_v21 = vsel %vm5565_vm0, %v12979_v9, %v12978_v40  ;;  %v12980_v63 = vld [vmem:[#allocation217_spill] sm:$0xff]  ;;  %v5615_v27 = vsel %vm5598_vm1, %v10860_v48, %v12982_v34  ;;  %v12985_v12 = vld [vmem:[#allocation110_spill] sm:$0xff] }
 0x4ba   : > { %v12975_v44 = vld [vmem:[#allocation52_spill] sm:$0xff]  ;;  %v5711_v3 = vsel %vm5697_vm4, %v5678_v62, %v12980_v63  ;;  %v5971_v58 = vsel %vm5961_vm12, %v5938_v39, %v10715_v45  ;;  %v12983_v50 = vld [vmem:[#allocation249_spill] sm:$0xff]  ;;  %v12986_v47 = vld [vmem:[#allocation58_spill] sm:$0xff] }
 0x4bb   : > { %v11201_v36 = vsel %vm5565_vm0, %v12975_v44, %v12974_v53  ;;  %v12977_v19 = vld [vmem:[#allocation320_spill] sm:$0xff]  ;;  %v5744_v7 = vsel %vm5730_vm5, %v5711_v3, %v12983_v50  ;;  %v11230_v5 = vsel %vm5994_vm13, %v5971_v58, %v5360_v1  ;;  %v11235_v45 = vsel %vm5565_vm0, %v12986_v47, %v12985_v12  ;;  %v12988_v2 = vld [vmem:[#allocation289_spill] sm:$0xff]  ;;  %v12989_v57 = vld [vmem:[#allocation111_spill] sm:$0xff] }
 0x4bc   : > { %v5809_v10 = vsel %vm5796_vm7, %v5776_v35, %v12977_v19  ;;  %v12981_v60 = vld [vmem:[#allocation344_spill] sm:$0xff]  ;;  %v5777_v48 = vsel %vm5763_vm6, %v5744_v7, %v12988_v2  ;;  %v12992_v6 = vld [vmem:[#allocation321_spill] sm:$0xff]  ;;  %v12994_v39 = vld [vmem:[#allocation63_spill] sm:$0xff]  ;;  %v5366_v58 = vpop.permute.xlu0 %5365 }
 0x4bd   : > { %v5842_v4 = vsel %vm5829_vm8, %v5809_v10, %v12981_v60  ;;  %v12987_v26 = vld [vmem:[#allocation164_spill] sm:$0xff]  ;;  %v5810_v62 = vsel %vm5796_vm7, %v5777_v48, %v12992_v6  ;;  %v12996_v63 = vld [vmem:[#allocation345_spill] sm:$0xff]  ;;  %v12997_v1 = vld [vmem:[#allocation135_spill] sm:$0xff] }
 0x4be   : > { %v5875_v22 = vsel %vm5862_vm9, %v5842_v4, %v12984_v43  ;;  %v5648_v23 = vsel %vm5631_vm2, %v5615_v27, %v12987_v26  ;;  %v12990_v35 = vld [vmem:[#allocation60_spill] sm:$0xff]  ;;  %v5843_v3 = vsel %vm5829_vm8, %v5810_v62, %v12996_v63  ;;  %v11265_v4 = vpop.permute.xlu1 %5363  ;;  %v12999_v50 = vld [vmem:[#allocation37_spill] sm:$0xff]  ;;  %v13001_v12 = vld [vmem:[#allocation66_spill] sm:$0xff] }
 0x4bf   : > { %v5908_v8 = vsel %vm5895_vm10, %v5875_v22, %v10279_v14  ;;  %v11246_v38 = vsel %vm5565_vm0, %v12990_v35, %v12989_v57  ;;  %v12991_v53 = vld [vmem:[#allocation196_spill] sm:$0xff]  ;;  %v5876_v7 = vsel %vm5862_vm9, %v5843_v3, %v12999_v50  ;;  %v13000_v22 = vld [vmem:[#allocation113_spill] sm:$0xff]  ;;  %v13004_v48 = vld [vmem:[#allocation114_spill] sm:$0xff] }
 0x4c0   : > { %v5681_v44 = vsel %vm5664_vm3, %v5648_v23, %v12991_v53  ;;  %v5941_v19 = vsel %vm5928_vm11, %v5908_v8, %v10467_v46  ;;  %v12993_v10 = vld [vmem:[#allocation112_spill] sm:$0xff]  ;;  %v5616_v46 = vsel %vm5598_vm1, %v11115_v0, %v12997_v1  ;;  %v13002_v47 = vld [vmem:[#allocation165_spill] sm:$0xff]  ;;  %v5909_v2 = vsel %vm5895_vm10, %v5876_v7, %v10287_v31  ;;  %v13012_v1 = vld [vmem:[#allocation138_spill] sm:$0xff] }
 0x4c1   : > { %v11257_v40 = vsel %vm5565_vm0, %v12994_v39, %v12993_v10  ;;  %v12995_v14 = vld [vmem:[#allocation220_spill] sm:$0xff]  ;;  %v5974_v60 = vsel %vm5961_vm12, %v5941_v19, %v10727_v24  ;;  %v11280_v24 = vsel %vm5565_vm0, %v13001_v12, %v13000_v22  ;;  %v5649_v26 = vsel %vm5631_vm2, %v5616_v46, %v13002_v47  ;;  %v13006_v35 = vld [vmem:[#allocation197_spill] sm:$0xff]  ;;  %v13008_v19 = vld [vmem:[#allocation115_spill] sm:$0xff] }
 0x4c2   : > { %v5714_v9 = vsel %vm5697_vm4, %v5681_v44, %v12995_v14  ;;  %v12998_v34 = vld [vmem:[#allocation252_spill] sm:$0xff]  ;;  %v11275_v43 = vsel %vm5994_vm13, %v5974_v60, %v5366_v58  ;;  %v5682_v53 = vsel %vm5664_vm3, %v5649_v26, %v13006_v35  ;;  %v5942_v62 = vsel %vm5928_vm11, %v5909_v2, %v10483_v15  ;;  %v13009_v10 = vld [vmem:[#allocation71_spill] sm:$0xff]  ;;  %v13010_v31 = vld [vmem:[#allocation221_spill] sm:$0xff]  ;;  %v5368_v60 = vpop.permute.xlu1 %5367  ;;  %v11310_v58 = vpop.permute.xlu0 %5369 }
 0x4c3   : > { %v5747_v27 = vsel %vm5730_vm5, %v5714_v9, %v12998_v34  ;;  %v13003_v23 = vld [vmem:[#allocation292_spill] sm:$0xff]  ;;  %v11302_v39 = vsel %vm5565_vm0, %v13009_v10, %v13008_v19  ;;  %v5715_v14 = vsel %vm5697_vm4, %v5682_v53, %v13010_v31  ;;  %v5975_v3 = vsel %vm5961_vm12, %v5942_v62, %v10735_v61  ;;  %v13013_v46 = vld [vmem:[#allocation253_spill] sm:$0xff]  ;;  %v13025_v10 = vld [vmem:[#allocation14_spill] sm:$0xff] }
 0x4c4   : > { %v5780_v0 = vsel %vm5763_vm6, %v5747_v27, %v13003_v23  ;;  %v13005_v8 = vld [vmem:[#allocation68_spill] sm:$0xff]  ;;  %v5619_v15 = vsel %vm5598_vm1, %v5586_v41, %v13012_v1  ;;  %v5748_v34 = vsel %vm5730_vm5, %v5715_v14, %v13013_v46  ;;  %v11319_v7 = vsel %vm5994_vm13, %v5975_v3, %v5368_v60  ;;  %v13017_v26 = vld [vmem:[#allocation293_spill] sm:$0xff] }
 0x4c5   : > { %v11291_v57 = vsel %vm5565_vm0, %v13005_v8, %v13004_v48  ;;  %v13007_v44 = vld [vmem:[#allocation324_spill] sm:$0xff]  ;;  %v5781_v41 = vsel %vm5763_vm6, %v5748_v34, %v13017_v26  ;;  %v13019_v2 = vld [vmem:[#allocation121_spill] sm:$0xff]  ;;  %v13020_v48 = vld [vmem:[#allocation87_spill] sm:$0xff] }
 0x4c6   : > { %v5813_v6 = vsel %vm5796_vm7, %v5780_v0, %v13007_v44  ;;  %v13011_v9 = vld [vmem:[#allocation348_spill] sm:$0xff]  ;;  %v11335_v8 = vsel %vm5598_vm1, %v13020_v48, %v13019_v2  ;;  %v13022_v44 = vld [vmem:[#allocation325_spill] sm:$0xff]  ;;  %v5374_v46 = vpop.permute.xlu0 %5373  ;;  %v13029_v34 = vld [vmem:[#allocation139_spill] sm:$0xff] }
 0x4c7   : > { %v5846_v63 = vsel %vm5829_vm8, %v5813_v6, %v13011_v9  ;;  %v13014_v27 = vld [vmem:[#allocation44_spill] sm:$0xff]  ;;  %v13023_v6 = vld [vmem:[#allocation406_spill] sm:$0xff]  ;;  %v13034_v2 = vld [vmem:[#allocation169_spill] sm:$0xff] }
 0x4c8   : > { %v5879_v50 = vsel %vm5862_vm9, %v5846_v63, %v13014_v27  ;;  %v13015_v22 = vld [vmem:[#allocation120_spill] sm:$0xff]  ;;  %v13027_v63 = vld [vmem:[#allocation349_spill] sm:$0xff]  ;;  %v5620_v27 = vsel %vm5598_vm1, %v11190_v54, %v13029_v34 }
 0x4c9   : > { %v11324_v12 = vsel %vm5598_vm1, %v10782_v51, %v13015_v22  ;;  %v13016_v61 = vld [vmem:[#allocation168_spill] sm:$0xff]  ;;  %v5814_v51 = vsel %vm5796_vm7, %v5781_v41, %v13022_v44  ;;  %v13032_v41 = vld [vmem:[#allocation125_spill] sm:$0xff]  ;;  %v5653_v48 = vsel %vm5631_vm2, %v5620_v27, %v13034_v2 }
 0x4ca   : > { %v5652_v47 = vsel %vm5631_vm2, %v5619_v15, %v13016_v61  ;;  %v13018_v23 = vld [vmem:[#allocation384_spill] sm:$0xff]  ;;  %v5847_v3 = vsel %vm5829_vm8, %v5814_v51, %v13027_v63  ;;  %v11354_v15 = vpop.permute.xlu1 %5371  ;;  %v13031_v61 = vld [vmem:[#allocation47_spill] sm:$0xff]  ;;  %v13044_v34 = vld [vmem:[#allocation225_spill] sm:$0xff] }
 0x4cb   : > { %v5912_v0 = vsel %vm5895_vm10, %v5879_v50, %v13018_v23  ;;  %v13021_v35 = vld [vmem:[#allocation200_spill] sm:$0xff]  ;;  %v13033_v23 = vld [vmem:[#allocation86_spill] sm:$0xff]  ;;  %v13041_v63 = vld [vmem:[#allocation407_spill] sm:$0xff] }
 0x4cc   : > { %v5685_v53 = vsel %vm5664_vm3, %v5652_v47, %v13021_v35  ;;  %v5945_v62 = vsel %vm5928_vm11, %v5912_v0, %v13023_v6  ;;  %v13024_v19 = vld [vmem:[#allocation124_spill] sm:$0xff]  ;;  %v5880_v47 = vsel %vm5862_vm9, %v5847_v3, %v13031_v61  ;;  %v11369_v0 = vsel %vm5598_vm1, %v13033_v23, %v13032_v41  ;;  %v13038_v6 = vld [vmem:[#allocation17_spill] sm:$0xff]  ;;  %v11399_v23 = vpop.permute.xlu0 %5377 }
 0x4cd   : > { %v11346_v31 = vsel %vm5598_vm1, %v13025_v10, %v13024_v19  ;;  %v13026_v14 = vld [vmem:[#allocation224_spill] sm:$0xff]  ;;  %v13039_v19 = vld [vmem:[#allocation201_spill] sm:$0xff] }
 0x4ce   : > { %v5718_v9 = vsel %vm5697_vm4, %v5685_v53, %v13026_v14  ;;  %v13028_v60 = vld [vmem:[#allocation420_spill] sm:$0xff]  ;;  %v13036_v53 = vld [vmem:[#allocation385_spill] sm:$0xff]  ;;  %v5686_v10 = vsel %vm5664_vm3, %v5653_v48, %v13039_v19  ;;  %v5376_v41 = vpop.permute.xlu1 %5375  ;;  %v13051_v19 = vld [vmem:[#allocation19_spill] sm:$0xff] }
 0x4cf   : > { %v5978_v1 = vsel %vm5961_vm12, %v5945_v62, %v13028_v60  ;;  %v13030_v50 = vld [vmem:[#allocation256_spill] sm:$0xff]  ;;  %v5913_v44 = vsel %vm5895_vm10, %v5880_v47, %v13036_v53  ;;  %v13042_v60 = vld [vmem:[#allocation129_spill] sm:$0xff]  ;;  %v5719_v27 = vsel %vm5697_vm4, %v5686_v10, %v13044_v34  ;;  %v13056_v34 = vld [vmem:[#allocation90_spill] sm:$0xff] }
 0x4d0   : > { %v5751_v22 = vsel %vm5730_vm5, %v5718_v9, %v13030_v50  ;;  %v11364_v26 = vsel %vm5994_vm13, %v5978_v1, %v5374_v46  ;;  %v13035_v35 = vld [vmem:[#allocation296_spill] sm:$0xff]  ;;  %v5946_v3 = vsel %vm5928_vm11, %v5913_v44, %v13041_v63  ;;  %v13043_v1 = vld [vmem:[#allocation89_spill] sm:$0xff] }
 0x4d1   : > { %v5784_v54 = vsel %vm5763_vm6, %v5751_v22, %v13035_v35  ;;  %v13037_v51 = vld [vmem:[#allocation128_spill] sm:$0xff]  ;;  %v11391_v46 = vsel %vm5598_vm1, %v13043_v1, %v13042_v60  ;;  %v13046_v61 = vld [vmem:[#allocation421_spill] sm:$0xff] }
 0x4d2   : > { %v11380_v62 = vsel %vm5598_vm1, %v13038_v6, %v13037_v51  ;;  %v13040_v14 = vld [vmem:[#allocation328_spill] sm:$0xff]  ;;  %v5979_v47 = vsel %vm5961_vm12, %v5946_v3, %v13046_v61  ;;  %v13047_v2 = vld [vmem:[#allocation141_spill] sm:$0xff] }
 0x4d3   : > { %v5817_v9 = vsel %vm5796_vm7, %v5784_v54, %v13040_v14  ;;  %v13045_v50 = vld [vmem:[#allocation352_spill] sm:$0xff]  ;;  %v5623_v48 = vsel %vm5598_vm1, %v11235_v45, %v13047_v2  ;;  %v13048_v35 = vld [vmem:[#allocation257_spill] sm:$0xff]  ;;  %v11409_v51 = vsel %vm5994_vm13, %v5979_v47, %v5376_v41  ;;  %v13059_v41 = vld [vmem:[#allocation410_spill] sm:$0xff] }
 0x4d4   : > { %v5850_v22 = vsel %vm5829_vm8, %v5817_v9, %v13045_v50  ;;  %v5752_v54 = vsel %vm5730_vm5, %v5719_v27, %v13048_v35  ;;  %v13049_v53 = vld [vmem:[#allocation57_spill] sm:$0xff]  ;;  %v13050_v6 = vld [vmem:[#allocation132_spill] sm:$0xff] }
 0x4d5   : > { %v5883_v44 = vsel %vm5862_vm9, %v5850_v22, %v13049_v53  ;;  %v11414_v10 = vsel %vm5598_vm1, %v13051_v19, %v13050_v6  ;;  %v13052_v14 = vld [vmem:[#allocation172_spill] sm:$0xff]  ;;  %v13053_v63 = vld [vmem:[#allocation297_spill] sm:$0xff] }
 0x4d6   : > { %v5656_v9 = vsel %vm5631_vm2, %v5623_v48, %v13052_v14  ;;  %v5785_v45 = vsel %vm5763_vm6, %v5752_v54, %v13053_v63  ;;  %v13054_v3 = vld [vmem:[#allocation388_spill] sm:$0xff]  ;;  %v13055_v1 = vld [vmem:[#allocation133_spill] sm:$0xff]  ;;  %v5382_v63 = vpop.permute.xlu0 %5381 }
 0x4d7   : > { %v5916_v60 = vsel %vm5895_vm10, %v5883_v44, %v13054_v3  ;;  %v11425_v27 = vsel %vm5598_vm1, %v13056_v34, %v13055_v1  ;;  %v13057_v50 = vld [vmem:[#allocation204_spill] sm:$0xff]  ;;  %v13058_v61 = vld [vmem:[#allocation329_spill] sm:$0xff]  ;;  %v13066_v1 = vld [vmem:[#allocation62_spill] sm:$0xff] }
 0x4d8   : > { %v5689_v22 = vsel %vm5664_vm3, %v5656_v9, %v13057_v50  ;;  %v5818_v47 = vsel %vm5796_vm7, %v5785_v45, %v13058_v61  ;;  %v5949_v2 = vsel %vm5928_vm11, %v5916_v60, %v13059_v41  ;;  %v13060_v48 = vld [vmem:[#allocation136_spill] sm:$0xff]  ;;  %v13062_v44 = vld [vmem:[#allocation353_spill] sm:$0xff]  ;;  %v11444_v9 = vpop.permute.xlu1 %5379 }
 0x4d9   : > { %v11436_v35 = vsel %vm5598_vm1, %v11146_v49, %v13060_v48  ;;  %v13061_v54 = vld [vmem:[#allocation228_spill] sm:$0xff]  ;;  %v5851_v6 = vsel %vm5829_vm8, %v5818_v47, %v13062_v44  ;;  %v13068_v47 = vld [vmem:[#allocation173_spill] sm:$0xff] }
 0x4da   : > { %v5722_v53 = vsel %vm5697_vm4, %v5689_v22, %v13061_v54  ;;  %v13063_v19 = vld [vmem:[#allocation424_spill] sm:$0xff]  ;;  %v5884_v34 = vsel %vm5862_vm9, %v5851_v6, %v13066_v1  ;;  %v13067_v22 = vld [vmem:[#allocation137_spill] sm:$0xff] }
 0x4db   : > { %v5982_v14 = vsel %vm5961_vm12, %v5949_v2, %v13063_v19  ;;  %v13064_v45 = vld [vmem:[#allocation56_spill] sm:$0xff]  ;;  %v11459_v61 = vsel %vm5598_vm1, %v11158_v33, %v13067_v22  ;;  %v13070_v48 = vld [vmem:[#allocation389_spill] sm:$0xff] }
 0x4dc   : > { %v5624_v3 = vsel %vm5598_vm1, %v11246_v38, %v13064_v45  ;;  %v13065_v60 = vld [vmem:[#allocation260_spill] sm:$0xff]  ;;  %v11454_v50 = vsel %vm5994_vm13, %v5982_v14, %v5382_v63  ;;  %v5917_v54 = vsel %vm5895_vm10, %v5884_v34, %v13070_v48  ;;  %v13072_v6 = vld [vmem:[#allocation53_spill] sm:$0xff]  ;;  %v13074_v63 = vld [vmem:[#allocation411_spill] sm:$0xff] }
 0x4dd   : > { %v5755_v49 = vsel %vm5730_vm5, %v5722_v53, %v13065_v60  ;;  %v5657_v41 = vsel %vm5631_vm2, %v5624_v3, %v13068_v47  ;;  %v13069_v2 = vld [vmem:[#allocation300_spill] sm:$0xff]  ;;  %v5950_v45 = vsel %vm5928_vm11, %v5917_v54, %v13074_v63  ;;  %v13075_v3 = vld [vmem:[#allocation51_spill] sm:$0xff]  ;;  %v13080_v54 = vld [vmem:[#allocation261_spill] sm:$0xff] }
 0x4de   : > { %v5788_v38 = vsel %vm5763_vm6, %v5755_v49, %v13069_v2  ;;  %v13071_v53 = vld [vmem:[#allocation140_spill] sm:$0xff]  ;;  %v5690_v19 = vsel %vm5664_vm3, %v5657_v41, %v13072_v6  ;;  %v5622_v60 = vsel %vm5598_vm1, %v11212_v21, %v13075_v3  ;;  %v13076_v49 = vld [vmem:[#allocation229_spill] sm:$0xff]  ;;  %v5384_v41 = vpop.permute.xlu1 %5383  ;;  %v11485_v2 = vpop.permute.xlu0 %5385 }
 0x4df   : > { %v5621_v44 = vsel %vm5598_vm1, %v11201_v36, %v13071_v53  ;;  %v13073_v14 = vld [vmem:[#allocation332_spill] sm:$0xff]  ;;  %v5723_v1 = vsel %vm5697_vm4, %v5690_v19, %v13076_v49  ;;  %v13078_v36 = vld [vmem:[#allocation15_spill] sm:$0xff]  ;;  %v13081_v21 = vld [vmem:[#allocation73_spill] sm:$0xff] }
 0x4e0   : > { %v5821_v33 = vsel %vm5796_vm7, %v5788_v38, %v13073_v14  ;;  %v13077_v34 = vld [vmem:[#allocation356_spill] sm:$0xff]  ;;  %v5983_v47 = vsel %vm5961_vm12, %v5950_v45, %v13078_v36  ;;  %v5756_v53 = vsel %vm5730_vm5, %v5723_v1, %v13080_v54  ;;  %v13082_v14 = vld [vmem:[#allocation142_spill] sm:$0xff]  ;;  %v13084_v3 = vld [vmem:[#allocation301_spill] sm:$0xff] }
 0x4e1   : > { %v5854_v22 = vsel %vm5829_vm8, %v5821_v33, %v13077_v34  ;;  %v13079_v38 = vld [vmem:[#allocation144_spill] sm:$0xff]  ;;  %v11495_v19 = vsel %vm5994_vm13, %v5983_v47, %v5384_v41  ;;  %v5625_v33 = vsel %vm5598_vm1, %v11257_v40, %v13082_v14  ;;  %v5789_v49 = vsel %vm5763_vm6, %v5756_v53, %v13084_v3  ;;  %v13086_v1 = vld [vmem:[#allocation61_spill] sm:$0xff]  ;;  %v13087_v36 = vld [vmem:[#allocation59_spill] sm:$0xff] }
 0x4e2   : > { %v5627_v48 = vsel %vm5598_vm1, %v11291_v57, %v13079_v38  ;;  %v5887_v6 = vsel %vm5862_vm9, %v5854_v22, %v13081_v21  ;;  %v13083_v63 = vld [vmem:[#allocation176_spill] sm:$0xff]  ;;  %v5626_v22 = vsel %vm5598_vm1, %v11280_v24, %v13086_v1  ;;  %v13088_v41 = vld [vmem:[#allocation333_spill] sm:$0xff]  ;;  %v13089_v40 = vld [vmem:[#allocation414_spill] sm:$0xff] }
 0x4e3   : > { %v5660_v45 = vsel %vm5631_vm2, %v5627_v48, %v13083_v63  ;;  %v13085_v57 = vld [vmem:[#allocation392_spill] sm:$0xff]  ;;  %v5822_v38 = vsel %vm5796_vm7, %v5789_v49, %v13088_v41  ;;  %v13090_v48 = vld [vmem:[#allocation67_spill] sm:$0xff]  ;;  %v13092_v14 = vld [vmem:[#allocation357_spill] sm:$0xff] }
 0x4e4   : > { %v5920_v34 = vsel %vm5895_vm10, %v5887_v6, %v13085_v57  ;;  %v5693_v47 = vsel %vm5664_vm3, %v5660_v45, %v13087_v36  ;;  %v5628_v53 = vsel %vm5598_vm1, %v11302_v39, %v13090_v48  ;;  %v13091_v21 = vld [vmem:[#allocation232_spill] sm:$0xff]  ;;  %v5855_v63 = vsel %vm5829_vm8, %v5822_v38, %v13092_v14  ;;  %v13093_v24 = vld [vmem:[#allocation91_spill] sm:$0xff]  ;;  %v11524_v45 = vpop.permute.xlu1 %5387  ;;  %v5390_v57 = vpop.permute.xlu0 %5389  ;;  %v13094_v49 = vld [vmem:[#allocation149_spill] sm:$0xff] }
 0x4e5   : > { %v5953_v54 = vsel %vm5928_vm11, %v5920_v34, %v13089_v40  ;;  %v5726_v6 = vsel %vm5697_vm4, %v5693_v47, %v13091_v21  ;;  %v5634_v34 = vsel %vm5631_vm2, %v11324_v12, %v13094_v49  ;;  %v13095_v1 = vld [vmem:[#allocation266_spill] sm:$0xff]  ;;  %v13097_v38 = vld [vmem:[#allocation151_spill] sm:$0xff]  ;;  %v13099_v21 = vld [vmem:[#allocation304_spill] sm:$0xff] }
 0x4e6   : > { %v5986_v3 = vsel %vm5961_vm12, %v5953_v54, %v13093_v24  ;;  %v5759_v36 = vsel %vm5730_vm5, %v5726_v6, %v13095_v1  ;;  %v13096_v39 = vld [vmem:[#allocation78_spill] sm:$0xff]  ;;  %v5635_v40 = vsel %vm5631_vm2, %v11335_v8, %v13097_v38  ;;  %v13098_v54 = vld [vmem:[#allocation177_spill] sm:$0xff] }
 0x4e7   : > { %v5888_v41 = vsel %vm5862_vm9, %v5855_v63, %v13096_v39  ;;  %v11534_v47 = vsel %vm5994_vm13, %v5986_v3, %v5390_v57  ;;  %v5661_v48 = vsel %vm5631_vm2, %v5628_v53, %v13098_v54  ;;  %v5792_v14 = vsel %vm5763_vm6, %v5759_v36, %v13099_v21  ;;  %v13100_v12 = vld [vmem:[#allocation393_spill] sm:$0xff]  ;;  %v13101_v6 = vld [vmem:[#allocation154_spill] sm:$0xff]  ;;  %v13103_v57 = vld [vmem:[#allocation264_spill] sm:$0xff] }
 0x4e8   : > { %v5921_v24 = vsel %vm5895_vm10, %v5888_v41, %v13100_v12  ;;  %v5638_v63 = vsel %vm5631_vm2, %v11346_v31, %v13101_v6  ;;  %v13102_v49 = vld [vmem:[#allocation145_spill] sm:$0xff]  ;;  %v5825_v1 = vsel %vm5796_vm7, %v5792_v14, %v13103_v57  ;;  %v13105_v53 = vld [vmem:[#allocation155_spill] sm:$0xff]  ;;  %v13107_v54 = vld [vmem:[#allocation360_spill] sm:$0xff]  ;;  %v11563_v12 = vpop.permute.xlu0 %5393 }
 0x4e9   : > { %v5694_v3 = vsel %vm5664_vm3, %v5661_v48, %v13102_v49  ;;  %v13104_v8 = vld [vmem:[#allocation77_spill] sm:$0xff]  ;;  %v5639_v36 = vsel %vm5631_vm2, %v11369_v0, %v13105_v53  ;;  %v5858_v21 = vsel %vm5829_vm8, %v5825_v1, %v13107_v54  ;;  %v5392_v48 = vpop.permute.xlu1 %5391  ;;  %v13108_v14 = vld [vmem:[#allocation158_spill] sm:$0xff]  ;;  %v13110_v0 = vld [vmem:[#allocation368_spill] sm:$0xff] }
 0x4ea   : > { %v5954_v39 = vsel %vm5928_vm11, %v5921_v24, %v13104_v8  ;;  %v13106_v38 = vld [vmem:[#allocation233_spill] sm:$0xff]  ;;  %v5642_v24 = vsel %vm5631_vm2, %v11380_v62, %v13108_v14  ;;  %v5891_v57 = vsel %vm5862_vm9, %v5858_v21, %v13110_v0  ;;  %v13111_v1 = vld [vmem:[#allocation159_spill] sm:$0xff]  ;;  %v13112_v8 = vld [vmem:[#allocation162_spill] sm:$0xff] }
 0x4eb   : > { %v5727_v41 = vsel %vm5697_vm4, %v5694_v3, %v13106_v38  ;;  %v5987_v31 = vsel %vm5961_vm12, %v5954_v39, %v10922_v30  ;;  %v13109_v6 = vld [vmem:[#allocation269_spill] sm:$0xff]  ;;  %v5643_v30 = vsel %vm5631_vm2, %v11391_v46, %v13111_v1  ;;  %v5646_v39 = vsel %vm5631_vm2, %v11414_v10, %v13112_v8  ;;  %v13114_v38 = vld [vmem:[#allocation396_spill] sm:$0xff]  ;;  %v13115_v54 = vld [vmem:[#allocation163_spill] sm:$0xff] }
 0x4ec   : > { %v5760_v49 = vsel %vm5730_vm5, %v5727_v41, %v13109_v6  ;;  %v11573_v3 = vsel %vm5994_vm13, %v5987_v31, %v5392_v48  ;;  %v13113_v53 = vld [vmem:[#allocation305_spill] sm:$0xff]  ;;  %v5924_v41 = vsel %vm5895_vm10, %v5891_v57, %v13114_v38  ;;  %v5647_v21 = vsel %vm5631_vm2, %v11425_v27, %v13115_v54  ;;  %v13116_v31 = vld [vmem:[#allocation166_spill] sm:$0xff]  ;;  %v13117_v14 = vld [vmem:[#allocation267_spill] sm:$0xff]  ;;  %v5398_v38 = vpop.permute.xlu0 %5397 }
 0x4ed   : > { %v5793_v62 = vsel %vm5763_vm6, %v5760_v49, %v13113_v53  ;;  %v5650_v48 = vsel %vm5631_vm2, %v11436_v35, %v13116_v31  ;;  %v13118_v6 = vld [vmem:[#allocation79_spill] sm:$0xff]  ;;  %v13120_v1 = vld [vmem:[#allocation170_spill] sm:$0xff]  ;;  %v13121_v8 = vld [vmem:[#allocation361_spill] sm:$0xff]  ;;  %v11604_v35 = vpop.permute.xlu1 %5395 }
 0x4ee   : > { %v5826_v46 = vsel %vm5796_vm7, %v5793_v62, %v13117_v14  ;;  %v5957_v10 = vsel %vm5928_vm11, %v5924_v41, %v13118_v6  ;;  %v13119_v0 = vld [vmem:[#allocation167_spill] sm:$0xff]  ;;  %v5654_v57 = vsel %vm5631_vm2, %v5621_v44, %v13120_v1  ;;  %v13123_v41 = vld [vmem:[#allocation174_spill] sm:$0xff] }
 0x4ef   : > { %v5651_v49 = vsel %vm5631_vm2, %v11459_v61, %v13119_v0  ;;  %v5859_v27 = vsel %vm5829_vm8, %v5826_v46, %v13121_v8  ;;  %v5990_v53 = vsel %vm5961_vm12, %v5957_v10, %v10954_v59  ;;  %v13122_v62 = vld [vmem:[#allocation171_spill] sm:$0xff]  ;;  %v5658_v31 = vsel %vm5631_vm2, %v5625_v33, %v13123_v41  ;;  %v13124_v14 = vld [vmem:[#allocation82_spill] sm:$0xff]  ;;  %v13128_v8 = vld [vmem:[#allocation397_spill] sm:$0xff] }
 0x4f0   : > { %v5655_v54 = vsel %vm5631_vm2, %v5622_v60, %v13122_v62  ;;  %v5892_v61 = vsel %vm5862_vm9, %v5859_v27, %v13124_v14  ;;  %v11613_v44 = vsel %vm5994_vm13, %v5990_v53, %v5398_v38  ;;  %v13125_v6 = vld [vmem:[#allocation175_spill] sm:$0xff]  ;;  %v13126_v0 = vld [vmem:[#allocation182_spill] sm:$0xff]  ;;  %v13132_v14 = vld [vmem:[#allocation369_spill] sm:$0xff] }
 0x4f1   : > { %v5659_v46 = vsel %vm5631_vm2, %v5626_v22, %v13125_v6  ;;  %v5667_v59 = vsel %vm5664_vm3, %v5634_v34, %v13126_v0  ;;  %v13127_v10 = vld [vmem:[#allocation183_spill] sm:$0xff]  ;;  %v5925_v60 = vsel %vm5895_vm10, %v5892_v61, %v13128_v8  ;;  %v13129_v62 = vld [vmem:[#allocation186_spill] sm:$0xff]  ;;  %v5400_v8 = vpop.permute.xlu1 %5399 }
 0x4f2   : > { %v5668_v1 = vsel %vm5664_vm3, %v5635_v40, %v13127_v10  ;;  %v5671_v33 = vsel %vm5664_vm3, %v5638_v63, %v13129_v62  ;;  %v13130_v41 = vld [vmem:[#allocation187_spill] sm:$0xff]  ;;  %v13131_v53 = vld [vmem:[#allocation190_spill] sm:$0xff]  ;;  %v5958_v22 = vsel %vm5928_vm11, %v5925_v60, %v13132_v14 }
 0x4f3   : > { %v5672_v27 = vsel %vm5664_vm3, %v5639_v36, %v13130_v41  ;;  %v5675_v38 = vsel %vm5664_vm3, %v5642_v24, %v13131_v53  ;;  %v13133_v6 = vld [vmem:[#allocation191_spill] sm:$0xff]  ;;  %v13134_v0 = vld [vmem:[#allocation194_spill] sm:$0xff]  ;;  %v5991_v63 = vsel %vm5961_vm12, %v5958_v22, %v10982_v55  ;;  %v11639_v36 = vpop.permute.xlu0 %5401  ;;  %v13138_v53 = vld [vmem:[#allocation148_spill] sm:$0xff] }
 0x4f4   : > { %v5676_v34 = vsel %vm5664_vm3, %v5643_v30, %v13133_v6  ;;  %v5679_v40 = vsel %vm5664_vm3, %v5646_v39, %v13134_v0  ;;  %v13135_v10 = vld [vmem:[#allocation195_spill] sm:$0xff]  ;;  %v13136_v62 = vld [vmem:[#allocation198_spill] sm:$0xff]  ;;  %v5700_v30 = vsel %vm5697_vm4, %v5667_v59, %v13138_v53  ;;  %v11648_v39 = vsel %vm5994_vm13, %v5991_v63, %v5400_v8  ;;  %v13141_v6 = vld [vmem:[#allocation205_spill] sm:$0xff] }
 0x4f5   : > { %v5680_v61 = vsel %vm5664_vm3, %v5647_v21, %v13135_v10  ;;  %v5683_v24 = vsel %vm5664_vm3, %v5650_v48, %v13136_v62  ;;  %v13137_v41 = vld [vmem:[#allocation199_spill] sm:$0xff]  ;;  %v13139_v14 = vld [vmem:[#allocation202_spill] sm:$0xff]  ;;  %v11660_v48 = vsel %vm5664_vm3, %v5658_v31, %v13141_v6 }
 0x4f6   : > { %v5684_v60 = vsel %vm5664_vm3, %v5651_v49, %v13137_v41  ;;  %v11652_v21 = vsel %vm5664_vm3, %v5654_v57, %v13139_v14  ;;  %v13140_v55 = vld [vmem:[#allocation203_spill] sm:$0xff]  ;;  %v13142_v0 = vld [vmem:[#allocation238_spill] sm:$0xff] }
 0x4f7   : > { %v11656_v22 = vsel %vm5664_vm3, %v5655_v54, %v13140_v55  ;;  %v5733_v49 = vsel %vm5730_vm5, %v5700_v30, %v13142_v0  ;;  %v13143_v10 = vld [vmem:[#allocation143_spill] sm:$0xff]  ;;  %v13144_v63 = vld [vmem:[#allocation150_spill] sm:$0xff]  ;;  %v5470_v0 = vpop.permute.xlu0 %5469 }
 0x4f8   : > { %v11666_v59 = vsel %vm5664_vm3, %v5659_v46, %v13143_v10  ;;  %v5701_v8 = vsel %vm5697_vm4, %v5668_v1, %v13144_v63  ;;  %v13145_v57 = vld [vmem:[#allocation210_spill] sm:$0xff]  ;;  %v13147_v53 = vld [vmem:[#allocation211_spill] sm:$0xff]  ;;  %v11680_v46 = vpop.permute.xlu1 %5403 }
 0x4f9   : > { %v5704_v62 = vsel %vm5697_vm4, %v5671_v33, %v13145_v57  ;;  %v13146_v41 = vld [vmem:[#allocation278_spill] sm:$0xff]  ;;  %v5705_v31 = vsel %vm5697_vm4, %v5672_v27, %v13147_v53  ;;  %v13148_v14 = vld [vmem:[#allocation239_spill] sm:$0xff]  ;;  %v13153_v27 = vld [vmem:[#allocation276_spill] sm:$0xff] }
 0x4fa   : > { %v5766_v54 = vsel %vm5763_vm6, %v5733_v49, %v13146_v41  ;;  %v5734_v55 = vsel %vm5730_vm5, %v5701_v8, %v13148_v14  ;;  %v13149_v30 = vld [vmem:[#allocation310_spill] sm:$0xff]  ;;  %v13151_v33 = vld [vmem:[#allocation215_spill] sm:$0xff] }
 0x4fb   : > { %v5799_v6 = vsel %vm5796_vm7, %v5766_v54, %v13149_v30  ;;  %v13150_v1 = vld [vmem:[#allocation214_spill] sm:$0xff]  ;;  %v5709_v63 = vsel %vm5697_vm4, %v5676_v34, %v13151_v33  ;;  %v13152_v49 = vld [vmem:[#allocation279_spill] sm:$0xff] }
 0x4fc   : > { %v5708_v10 = vsel %vm5697_vm4, %v5675_v38, %v13150_v1  ;;  %v5767_v57 = vsel %vm5763_vm6, %v5734_v55, %v13152_v49  ;;  %v5832_v41 = vsel %vm5829_vm8, %v5799_v6, %v13153_v27  ;;  %v13154_v8 = vld [vmem:[#allocation218_spill] sm:$0xff]  ;;  %v13155_v54 = vld [vmem:[#allocation219_spill] sm:$0xff]  ;;  %v13157_v1 = vld [vmem:[#allocation365_spill] sm:$0xff] }
 0x4fd   : > { %v11692_v53 = vsel %vm5697_vm4, %v5679_v40, %v13154_v8  ;;  %v11696_v14 = vsel %vm5697_vm4, %v5680_v61, %v13155_v54  ;;  %v13156_v30 = vld [vmem:[#allocation311_spill] sm:$0xff]  ;;  %v5865_v34 = vsel %vm5862_vm9, %v5832_v41, %v13157_v1  ;;  %v13158_v33 = vld [vmem:[#allocation222_spill] sm:$0xff]  ;;  %v13160_v27 = vld [vmem:[#allocation373_spill] sm:$0xff]  ;;  %v6028_v61 = vsel %vm6027_vm14, %v11027_v17, %v5470_v0 }
 0x4fe   : > { %v5800_v38 = vsel %vm5796_vm7, %v5767_v57, %v13156_v30  ;;  %v11704_v55 = vsel %vm5697_vm4, %v5683_v24, %v13158_v33  ;;  %v13159_v49 = vld [vmem:[#allocation335_spill] sm:$0xff]  ;;  %v5898_v40 = vsel %vm5895_vm10, %v5865_v34, %v13160_v27  ;;  %v13162_v57 = vld [vmem:[#allocation242_spill] sm:$0xff]  ;;  %v13163_v30 = vld [vmem:[#allocation12_spill] sm:$0xff] }
 0x4ff   : > { %v5833_v6 = vsel %vm5829_vm8, %v5800_v38, %v13159_v49  ;;  %v13161_v8 = vld [vmem:[#allocation223_spill] sm:$0xff]  ;;  %v5737_v41 = vsel %vm5730_vm5, %v5704_v62, %v13162_v57  ;;  %v13164_v1 = vld [vmem:[#allocation398_spill] sm:$0xff]  ;;  %v5472_v38 = vpop.permute.xlu1 %5471  ;;  %v5474_v49 = vpop.permute.xlu0 %5473  ;;  %v13167_v0 = vld [vmem:[#allocation81_spill] sm:$0xff] }
 0x500   : > { %v11714_v54 = vsel %vm5697_vm4, %v5684_v60, %v13161_v8  ;;  %v5866_v24 = vsel %vm5862_vm9, %v5833_v6, %v13163_v30  ;;  %v5931_v33 = vsel %vm5928_vm11, %v5898_v40, %v13164_v1  ;;  %v5770_v34 = vsel %vm5763_vm6, %v5737_v41, %v13165_v32  ;;  %v13166_v27 = vld [vmem:[#allocation375_spill] sm:$0xff]  ;;  %v13169_v57 = vld [vmem:[#allocation10_spill] sm:$0xff] }
 0x501   : > { %v5899_v17 = vsel %vm5895_vm10, %v5866_v24, %v13166_v27  ;;  %v5964_v60 = vsel %vm5961_vm12, %v5931_v33, %v13167_v0  ;;  %v6029_v62 = vsel %vm6027_vm14, %v11066_v16, %v5472_v38  ;;  %v13168_v8 = vld [vmem:[#allocation399_spill] sm:$0xff]  ;;  %v6063_v30 = vrot.slane %v6028_v61, %v13169_v57  ;;  %v13171_v24 = vld [vmem:[#allocation314_spill] sm:$0xff] }
 0x502   : > { %v5932_v6 = vsel %vm5928_vm11, %v5899_v17, %v13168_v8  ;;  %v5997_v40 = vsel %vm5994_vm13, %v5964_v60, %v11054_v37  ;;  %v6067_v1 = vrot.slane %v6029_v62, %v13169_v57  ;;  %v13170_v32 = vld [vmem:[#allocation243_spill] sm:$0xff]  ;;  %v5803_v27 = vsel %vm5796_vm7, %v5770_v34, %v13171_v24  ;;  %v13174_v8 = vld [vmem:[#allocation338_spill] sm:$0xff] }
 0x503   : > { %v5738_v41 = vsel %vm5730_vm5, %v5705_v31, %v13170_v32  ;;  %v13172_v33 = vld [vmem:[#allocation371_spill] sm:$0xff]  ;;  %v6030_v16 = vsel %vm6027_vm14, %v5997_v40, %v5474_v49  ;;  %v5836_v37 = vsel %vm5829_vm8, %v5803_v27, %v13174_v8  ;;  %v5476_v62 = vpop.permute.xlu1 %5475  ;;  %v5478_v31 = vpop.permute.xlu0 %5477  ;;  %v13175_v32 = vld [vmem:[#allocation246_spill] sm:$0xff]  ;;  %v13177_v49 = vld [vmem:[#allocation20_spill] sm:$0xff] }
 0x504   : > { %v5965_v0 = vsel %vm5961_vm12, %v5932_v6, %v13172_v33  ;;  %v13173_v38 = vld [vmem:[#allocation283_spill] sm:$0xff]  ;;  %v6220_v60 = vcombine.low %v6063_v30, %v6067_v1  ;;  %v5741_v34 = vsel %vm5730_vm5, %v5708_v10, %v13175_v32  ;;  %v5869_v40 = vsel %vm5862_vm9, %v5836_v37, %v13177_v49  ;;  %v13181_v8 = vld [vmem:[#allocation22_spill] sm:$0xff]  ;;  %v13182_v32 = vld [vmem:[#allocation400_spill] sm:$0xff] }
 0x505   : > { %v5771_v17 = vsel %vm5763_vm6, %v5738_v41, %v13173_v38  ;;  %v5998_v61 = vsel %vm5994_vm13, %v5965_v0, %v11090_v42  ;;  %v13176_v24 = vld [vmem:[#allocation315_spill] sm:$0xff]  ;;  %v13179_v38 = vld [vmem:[#allocation378_spill] sm:$0xff]  ;;  %v6071_v30 = vrot.slane %v6030_v16, %v13169_v57  ;;  %v13185_v49 = vld [vmem:[#allocation372_spill] sm:$0xff] }
 0x506   : > { %v5804_v6 = vsel %vm5796_vm7, %v5771_v17, %v13176_v24  ;;  %v6031_v41 = vsel %vm6027_vm14, %v5998_v61, %v5476_v62  ;;  %v13178_v33 = vld [vmem:[#allocation339_spill] sm:$0xff]  ;;  %v5902_v42 = vsel %vm5895_vm10, %v5869_v40, %v13179_v38  ;;  %v6032_v61 = vsel %vm6027_vm14, %v11102_v28, %v5478_v31  ;;  %v13183_v62 = vld [vmem:[#allocation286_spill] sm:$0xff] }
 0x507   : > { %v5837_v27 = vsel %vm5829_vm8, %v5804_v6, %v13178_v33  ;;  %v6075_v1 = vrot.slane %v6031_v41, %v13169_v57  ;;  %v13180_v0 = vld [vmem:[#allocation247_spill] sm:$0xff]  ;;  %v5935_v37 = vsel %vm5928_vm11, %v5902_v42, %v13182_v32  ;;  %v5774_v24 = vsel %vm5763_vm6, %v5741_v34, %v13183_v62  ;;  %v5480_v41 = vpop.permute.xlu1 %5479  ;;  %v5482_v33 = vpop.permute.xlu0 %5481  ;;  %v13187_v42 = vld [vmem:[#allocation401_spill] sm:$0xff]  ;;  %v13189_v32 = vld [vmem:[#allocation318_spill] sm:$0xff] }
 0x508   : > { %v5742_v10 = vsel %vm5730_vm5, %v5709_v63, %v13180_v0  ;;  %v5870_v17 = vsel %vm5862_vm9, %v5837_v27, %v13181_v8  ;;  %v13184_v6 = vld [vmem:[#allocation379_spill] sm:$0xff]  ;;  %v5968_v40 = vsel %vm5961_vm12, %v5935_v37, %v13185_v49  ;;  %v6033_v31 = vsel %vm6027_vm14, %v11141_v18, %v5480_v41  ;;  %v13190_v37 = vld [vmem:[#allocation374_spill] sm:$0xff] }
 0x509   : > { %v5903_v16 = vsel %vm5895_vm10, %v5870_v17, %v13184_v6  ;;  %v6221_v63 = vcombine.low %v6071_v30, %v6075_v1  ;;  %v13186_v27 = vld [vmem:[#allocation287_spill] sm:$0xff]  ;;  %v6001_v28 = vsel %vm5994_vm13, %v5968_v40, %v11129_v25  ;;  %v6079_v30 = vrot.slane %v6032_v61, %v13169_v57  ;;  %v13191_v6 = vld [vmem:[#allocation342_spill] sm:$0xff] }
 0x50a   : > { %v5775_v38 = vsel %vm5763_vm6, %v5742_v10, %v13186_v27  ;;  %v5936_v0 = vsel %vm5928_vm11, %v5903_v16, %v13187_v42  ;;  %v13188_v34 = vld [vmem:[#allocation11_spill] sm:$0xff]  ;;  %v6083_v1 = vrot.slane %v6033_v31, %v13169_v57  ;;  %v5807_v10 = vsel %vm5796_vm7, %v5774_v24, %v13189_v32  ;;  %v13194_v42 = vld [vmem:[#allocation29_spill] sm:$0xff]  ;;  %v13196_v31 = vld [vmem:[#allocation380_spill] sm:$0xff] }
 0x50b   : > { %v6228_v8 = vrot.slane %v6220_v60, %v13188_v34  ;;  %v6235_v17 = vrot.slane %v6221_v63, %v13188_v34  ;;  %v5969_v62 = vsel %vm5961_vm12, %v5936_v0, %v13190_v37  ;;  %v6034_v25 = vsel %vm6027_vm14, %v6001_v28, %v5482_v33  ;;  %v5484_v61 = vpop.permute.xlu1 %5483  ;;  %v5486_v40 = vpop.permute.xlu0 %5485  ;;  %v13192_v63 = vld [vmem:[#allocation226_spill] sm:$0xff]  ;;  %v13193_v41 = vld [vmem:[#allocation319_spill] sm:$0xff] }
 0x50c   : > { %v5840_v18 = vsel %vm5829_vm8, %v5807_v10, %v13191_v6  ;;  %v6002_v60 = vsel %vm5994_vm13, %v5969_v62, %v11175_v11  ;;  %v6237_v49 = vcombine.low %v6079_v30, %v6083_v1  ;;  %v11801_v24 = vsel %vm5697_vm4, %v11652_v21, %v13192_v63  ;;  %v13195_v28 = vld [vmem:[#allocation343_spill] sm:$0xff]  ;;  %v13198_v1 = vld [vmem:[#allocation32_spill] sm:$0xff]  ;;  %v13199_v10 = vld [vmem:[#allocation402_spill] sm:$0xff] }
 0x50d   : > { %v6236_v16 = vcombine.low %v6228_v8, %v6235_v17  ;;  %v5808_v27 = vsel %vm5796_vm7, %v5775_v38, %v13193_v41  ;;  %v5873_v33 = vsel %vm5862_vm9, %v5840_v18, %v13194_v42  ;;  %v6035_v0 = vsel %vm6027_vm14, %v6002_v60, %v5484_v61  ;;  %v13197_v17 = vld [vmem:[#allocation250_spill] sm:$0xff]  ;;  %v13200_v6 = vld [vmem:[#allocation251_spill] sm:$0xff] }
 0x50e   : > { %v5841_v11 = vsel %vm5829_vm8, %v5808_v27, %v13195_v28  ;;  %v5906_v8 = vsel %vm5895_vm10, %v5873_v33, %v13196_v31  ;;  %v6087_v21 = vrot.slane %v6034_v25, %v13169_v57  ;;  %v6091_v38 = vrot.slane %v6035_v0, %v13169_v57  ;;  %v13201_v25 = vld [vmem:[#allocation381_spill] sm:$0xff]  ;;  %v13203_v27 = vld [vmem:[#allocation290_spill] sm:$0xff]  ;;  %v13204_v33 = vld [vmem:[#allocation403_spill] sm:$0xff] }
 0x50f   : > { %6365 = vst.msk [vmem:[%s11812_s3] sm:$0xff] %vm6364_vm15, %v6236_v16  ;;  %v5745_v30 = vsel %vm5730_vm5, %v11692_v53, %v13197_v17  ;;  %v5874_v32 = vsel %vm5862_vm9, %v5841_v11, %v13198_v1  ;;  %v5939_v37 = vsel %vm5928_vm11, %v5906_v8, %v13199_v10  ;;  %v6036_v62 = vsel %vm6027_vm14, %v11185_v13, %v5486_v40  ;;  %v13202_v16 = vld [vmem:[#allocation416_spill] sm:$0xff]  ;;  %v5488_v63 = vpop.permute.xlu1 %5487  ;;  %v5490_v41 = vpop.permute.xlu0 %5489  ;;  %v13205_v8 = vld [vmem:[#allocation291_spill] sm:$0xff]  ;;  %v13208_v1 = vld [vmem:[#allocation346_spill] sm:$0xff] }
 0x510   : > { %v5746_v18 = vsel %vm5730_vm5, %v11696_v14, %v13200_v6  ;;  %v5907_v60 = vsel %vm5895_vm10, %v5874_v32, %v13201_v25  ;;  %v5972_v61 = vsel %vm5961_vm12, %v5939_v37, %v13202_v16  ;;  %v6238_v53 = vcombine.low %v6087_v21, %v6091_v38  ;;  %v13206_v38 = vld [vmem:[#allocation322_spill] sm:$0xff] }
 0x511   : > { %v5778_v42 = vsel %vm5763_vm6, %v5745_v30, %v13203_v27  ;;  %v5940_v0 = vsel %vm5928_vm11, %v5907_v60, %v13204_v33  ;;  %v6005_v13 = vsel %vm5994_vm13, %v5972_v61, %v11220_v56  ;;  %v6037_v14 = vsel %vm6027_vm14, %v11230_v5, %v5488_v63  ;;  %v13207_v30 = vld [vmem:[#allocation417_spill] sm:$0xff]  ;;  %v13210_v60 = vld [vmem:[#allocation323_spill] sm:$0xff] }
 0x512   : > { %v6245_v40 = vrot.slane %v6237_v49, %v13188_v34  ;;  %v6252_v28 = vrot.slane %v6238_v53, %v13188_v34  ;;  %v6095_v11 = vrot.slane %v6036_v62, %v13169_v57  ;;  %v6099_v31 = vrot.slane %v6037_v14, %v13169_v57  ;;  %v13211_v61 = vld [vmem:[#allocation39_spill] sm:$0xff]  ;;  %v13215_v14 = vld [vmem:[#allocation42_spill] sm:$0xff] }
 0x513   : > { %v5779_v21 = vsel %vm5763_vm6, %v5746_v18, %v13205_v8  ;;  %v5811_v17 = vsel %vm5796_vm7, %v5778_v42, %v13206_v38  ;;  %v5973_v56 = vsel %vm5961_vm12, %v5940_v0, %v13207_v30  ;;  %v6038_v5 = vsel %vm6027_vm14, %v6005_v13, %v5490_v41  ;;  %v5492_v62 = vpop.permute.xlu1 %5491  ;;  %v5494_v6 = vpop.permute.xlu0 %5493  ;;  %v13209_v18 = vld [vmem:[#allocation227_spill] sm:$0xff]  ;;  %v13214_v0 = vld [vmem:[#allocation254_spill] sm:$0xff] }
 0x514   : > { %v5844_v49 = vsel %vm5829_vm8, %v5811_v17, %v13208_v1  ;;  %v6006_v32 = vsel %vm5994_vm13, %v5973_v56, %v11265_v4  ;;  %v6253_v10 = vcombine.low %v6245_v40, %v6252_v28  ;;  %v6254_v37 = vcombine.low %v6095_v11, %v6099_v31  ;;  %v13212_v41 = vld [vmem:[#allocation347_spill] sm:$0xff]  ;;  %v13213_v4 = vld [vmem:[#allocation382_spill] sm:$0xff]  ;;  %v13216_v28 = vld [vmem:[#allocation404_spill] sm:$0xff] }
 0x515   : > { %v5721_v25 = vsel %vm5697_vm4, %v11656_v22, %v13209_v18  ;;  %v5812_v16 = vsel %vm5796_vm7, %v5779_v21, %v13210_v60  ;;  %v5877_v53 = vsel %vm5862_vm9, %v5844_v49, %v13211_v61  ;;  %v6039_v63 = vsel %vm6027_vm14, %v6006_v32, %v5492_v62  ;;  %v13217_v8 = vld [vmem:[#allocation255_spill] sm:$0xff]  ;;  %v13219_v30 = vld [vmem:[#allocation418_spill] sm:$0xff] }
 0x516   : > { %v5845_v27 = vsel %vm5829_vm8, %v5812_v16, %v13212_v41  ;;  %v5910_v42 = vsel %vm5895_vm10, %v5877_v53, %v13213_v4  ;;  %6366 = vst.msk [vmem:[%s11812_s3 + $0x8] sm:$0xff] %vm6364_vm15, %v6253_v10  ;;  %v6103_v33 = vrot.slane %v6038_v5, %v13169_v57  ;;  %v6107_v22 = vrot.slane %v6039_v63, %v13169_v57  ;;  %v13218_v38 = vld [vmem:[#allocation383_spill] sm:$0xff]  ;;  %v13220_v49 = vld [vmem:[#allocation294_spill] sm:$0xff]  ;;  %v13221_v10 = vld [vmem:[#allocation405_spill] sm:$0xff] }
 0x517   : > { %v5749_v13 = vsel %vm5730_vm5, %v11704_v55, %v13214_v0  ;;  %v5878_v40 = vsel %vm5862_vm9, %v5845_v27, %v13215_v14  ;;  %v5943_v11 = vsel %vm5928_vm11, %v5910_v42, %v13216_v28  ;;  %v6040_v31 = vsel %vm6027_vm14, %v11275_v43, %v5494_v6  ;;  %v5496_v5 = vpop.permute.xlu1 %5495  ;;  %v5498_v1 = vpop.permute.xlu0 %5497  ;;  %v13222_v61 = vld [vmem:[#allocation295_spill] sm:$0xff]  ;;  %v13223_v63 = vld [vmem:[#allocation326_spill] sm:$0xff] }
 0x518   : > { %v5750_v21 = vsel %vm5730_vm5, %v11714_v54, %v13217_v8  ;;  %v5911_v17 = vsel %vm5895_vm10, %v5878_v40, %v13218_v38  ;;  %v5976_v56 = vsel %vm5961_vm12, %v5943_v11, %v13219_v30  ;;  %v6255_v55 = vcombine.low %v6103_v33, %v6107_v22  ;;  %v13224_v27 = vld [vmem:[#allocation419_spill] sm:$0xff]  ;;  %v13225_v4 = vld [vmem:[#allocation350_spill] sm:$0xff] }
 0x519   : > { %v5782_v32 = vsel %vm5763_vm6, %v5749_v13, %v13220_v49  ;;  %v5944_v62 = vsel %vm5928_vm11, %v5911_v17, %v13221_v10  ;;  %v6009_v43 = vsel %vm5994_vm13, %v5976_v56, %v11310_v58  ;;  %v6041_v54 = vsel %vm6027_vm14, %v11319_v7, %v5496_v5  ;;  %v13226_v14 = vld [vmem:[#allocation230_spill] sm:$0xff]  ;;  %v13227_v28 = vld [vmem:[#allocation327_spill] sm:$0xff] }
 0x51a   : > { %v6262_v6 = vrot.slane %v6254_v37, %v13188_v34  ;;  %v6269_v18 = vrot.slane %v6255_v55, %v13188_v34  ;;  %v6111_v60 = vrot.slane %v6040_v31, %v13169_v57  ;;  %v6115_v16 = vrot.slane %v6041_v54, %v13169_v57  ;;  %v13228_v31 = vld [vmem:[#allocation49_spill] sm:$0xff]  ;;  %v13229_v38 = vld [vmem:[#allocation351_spill] sm:$0xff]  ;;  %v13231_v55 = vld [vmem:[#allocation258_spill] sm:$0xff] }
 0x51b   : > { %v5783_v53 = vsel %vm5763_vm6, %v5750_v21, %v13222_v61  ;;  %v5815_v41 = vsel %vm5796_vm7, %v5782_v32, %v13223_v63  ;;  %v5977_v58 = vsel %vm5961_vm12, %v5944_v62, %v13224_v27  ;;  %v6042_v7 = vsel %vm6027_vm14, %v6009_v43, %v5498_v1  ;;  %v5500_v0 = vpop.permute.xlu1 %5499  ;;  %v5502_v13 = vpop.permute.xlu0 %5501  ;;  %v13232_v1 = vld [vmem:[#allocation54_spill] sm:$0xff]  ;;  %v13233_v32 = vld [vmem:[#allocation408_spill] sm:$0xff]  ;;  %v13234_v43 = vld [vmem:[#allocation259_spill] sm:$0xff] }
 0x51c   : > { %v5848_v37 = vsel %vm5829_vm8, %v5815_v41, %v13225_v4  ;;  %v6010_v42 = vsel %vm5994_vm13, %v5977_v58, %v11354_v15  ;;  %v6270_v33 = vcombine.low %v6262_v6, %v6269_v18  ;;  %v6271_v22 = vcombine.low %v6111_v60, %v6115_v16  ;;  %v13230_v15 = vld [vmem:[#allocation386_spill] sm:$0xff]  ;;  %v13235_v6 = vld [vmem:[#allocation387_spill] sm:$0xff]  ;;  %v13238_v27 = vld [vmem:[#allocation409_spill] sm:$0xff] }
 0x51d   : > { %v5724_v40 = vsel %vm5697_vm4, %v11660_v48, %v13226_v14  ;;  %v5816_v11 = vsel %vm5796_vm7, %v5783_v53, %v13227_v28  ;;  %v5881_v8 = vsel %vm5862_vm9, %v5848_v37, %v13228_v31  ;;  %v6043_v21 = vsel %vm6027_vm14, %v6010_v42, %v5500_v0  ;;  %v13236_v60 = vld [vmem:[#allocation422_spill] sm:$0xff]  ;;  %v13241_v28 = vld [vmem:[#allocation423_spill] sm:$0xff] }
 0x51e   : > { %v5849_v17 = vsel %vm5829_vm8, %v5816_v11, %v13229_v38  ;;  %v5914_v30 = vsel %vm5895_vm10, %v5881_v8, %v13230_v15  ;;  %6367 = vst.msk [vmem:[%s11812_s3 + $0x10] sm:$0xff] %vm6364_vm15, %v6270_v33  ;;  %v6119_v56 = vrot.slane %v6042_v7, %v13169_v57  ;;  %v6123_v48 = vrot.slane %v6043_v21, %v13169_v57  ;;  %v13237_v63 = vld [vmem:[#allocation298_spill] sm:$0xff]  ;;  %v13239_v33 = vld [vmem:[#allocation299_spill] sm:$0xff] }
 0x51f   : > { %v5753_v5 = vsel %vm5730_vm5, %v11801_v24, %v13231_v55  ;;  %v5882_v49 = vsel %vm5862_vm9, %v5849_v17, %v13232_v1  ;;  %v5947_v10 = vsel %vm5928_vm11, %v5914_v30, %v13233_v32  ;;  %v6044_v62 = vsel %vm6027_vm14, %v11364_v26, %v5502_v13  ;;  %v5504_v24 = vpop.permute.xlu1 %5503  ;;  %v5506_v53 = vpop.permute.xlu0 %5505  ;;  %v13240_v13 = vld [vmem:[#allocation330_spill] sm:$0xff]  ;;  %v13243_v15 = vld [vmem:[#allocation231_spill] sm:$0xff]  ;;  %v13245_v55 = vld [vmem:[#allocation65_spill] sm:$0xff] }
 0x520   : > { %v5754_v54 = vsel %vm5730_vm5, %v5721_v25, %v13234_v43  ;;  %v5915_v18 = vsel %vm5895_vm10, %v5882_v49, %v13235_v6  ;;  %v5980_v16 = vsel %vm5961_vm12, %v5947_v10, %v13236_v60  ;;  %v6272_v61 = vcombine.low %v6119_v56, %v6123_v48  ;;  %v13242_v11 = vld [vmem:[#allocation354_spill] sm:$0xff]  ;;  %v13244_v56 = vld [vmem:[#allocation331_spill] sm:$0xff]  ;;  %v13250_v60 = vld [vmem:[#allocation412_spill] sm:$0xff] }
 0x521   : > { %v5786_v41 = vsel %vm5763_vm6, %v5753_v5, %v13237_v63  ;;  %v5948_v58 = vsel %vm5928_vm11, %v5915_v18, %v13238_v27  ;;  %v6013_v26 = vsel %vm5994_vm13, %v5980_v16, %v11399_v23  ;;  %v6045_v25 = vsel %vm6027_vm14, %v11409_v51, %v5504_v24  ;;  %v13246_v49 = vld [vmem:[#allocation355_spill] sm:$0xff]  ;;  %v13248_v43 = vld [vmem:[#allocation262_spill] sm:$0xff]  ;;  %v13251_v24 = vld [vmem:[#allocation265_spill] sm:$0xff] }
 0x522   : > { %v6279_v7 = vrot.slane %v6271_v22, %v13188_v34  ;;  %v6286_v4 = vrot.slane %v6272_v61, %v13188_v34  ;;  %v6127_v37 = vrot.slane %v6044_v62, %v13169_v57  ;;  %v6131_v42 = vrot.slane %v6045_v25, %v13169_v57  ;;  %v13249_v6 = vld [vmem:[#allocation70_spill] sm:$0xff]  ;;  %v13252_v63 = vld [vmem:[#allocation391_spill] sm:$0xff]  ;;  %v13253_v27 = vld [vmem:[#allocation88_spill] sm:$0xff] }
 0x523   : > { %v5787_v0 = vsel %vm5763_vm6, %v5754_v54, %v13239_v33  ;;  %v5819_v14 = vsel %vm5796_vm7, %v5786_v41, %v13240_v13  ;;  %v5981_v23 = vsel %vm5961_vm12, %v5948_v58, %v13241_v28  ;;  %v6046_v51 = vsel %vm6027_vm14, %v6013_v26, %v5506_v53  ;;  %v5508_v38 = vpop.permute.xlu1 %5507  ;;  %v5510_v17 = vpop.permute.xlu0 %5509 }
 0x524   : > { %v5852_v22 = vsel %vm5829_vm8, %v5819_v14, %v13242_v11  ;;  %v6014_v31 = vsel %vm5994_vm13, %v5981_v23, %v11444_v9  ;;  %v6287_v8 = vcombine.low %v6279_v7, %v6286_v4  ;;  %v6288_v21 = vcombine.low %v6127_v37, %v6131_v42  ;;  %v13247_v9 = vld [vmem:[#allocation390_spill] sm:$0xff]  ;;  %v13255_v37 = vld [vmem:[#allocation413_spill] sm:$0xff]  ;;  %v13256_v23 = vld [vmem:[#allocation303_spill] sm:$0xff] }
 0x525   : > { %v5725_v30 = vsel %vm5697_vm4, %v11666_v59, %v13243_v15  ;;  %v5820_v48 = vsel %vm5796_vm7, %v5787_v0, %v13244_v56  ;;  %v5885_v5 = vsel %vm5862_vm9, %v5852_v22, %v13245_v55  ;;  %v6047_v1 = vsel %vm6027_vm14, %v6014_v31, %v5508_v38  ;;  %v13254_v7 = vld [vmem:[#allocation302_spill] sm:$0xff]  ;;  %v13258_v31 = vld [vmem:[#allocation21_spill] sm:$0xff] }
 0x526   : > { %v5853_v32 = vsel %vm5829_vm8, %v5820_v48, %v13246_v49  ;;  %v5918_v10 = vsel %vm5895_vm10, %v5885_v5, %v13247_v9  ;;  %6368 = vst.msk [vmem:[%s11812_s3 + $0x18] sm:$0xff] %vm6364_vm15, %v6287_v8  ;;  %v6135_v62 = vrot.slane %v6046_v51, %v13169_v57  ;;  %v6139_v59 = vrot.slane %v6047_v1, %v13169_v57  ;;  %v13257_v11 = vld [vmem:[#allocation334_spill] sm:$0xff]  ;;  %v13260_v48 = vld [vmem:[#allocation263_spill] sm:$0xff] }
 0x527   : > { %v5757_v54 = vsel %vm5730_vm5, %v5724_v40, %v13248_v43  ;;  %v5886_v18 = vsel %vm5862_vm9, %v5853_v32, %v13249_v6  ;;  %v5951_v16 = vsel %vm5928_vm11, %v5918_v10, %v13250_v60  ;;  %v6048_v61 = vsel %vm6027_vm14, %v11454_v50, %v5510_v17  ;;  %v5512_v40 = vpop.permute.xlu1 %5511  ;;  %v5514_v25 = vpop.permute.xlu0 %5513  ;;  %v13259_v8 = vld [vmem:[#allocation358_spill] sm:$0xff]  ;;  %v13262_v32 = vld [vmem:[#allocation359_spill] sm:$0xff]  ;;  %v13264_v43 = vld [vmem:[#allocation80_spill] sm:$0xff] }
 0x528   : > { %v5758_v53 = vsel %vm5730_vm5, %v5725_v30, %v13251_v24  ;;  %v5919_v41 = vsel %vm5895_vm10, %v5886_v18, %v13252_v63  ;;  %v5984_v58 = vsel %vm5961_vm12, %v5951_v16, %v13253_v27  ;;  %v6289_v26 = vcombine.low %v6135_v62, %v6139_v59  ;;  %v13261_v5 = vld [vmem:[#allocation366_spill] sm:$0xff]  ;;  %v13265_v6 = vld [vmem:[#allocation415_spill] sm:$0xff] }
 0x529   : > { %v5790_v4 = vsel %vm5763_vm6, %v5757_v54, %v13254_v7  ;;  %v5952_v42 = vsel %vm5928_vm11, %v5919_v41, %v13255_v37  ;;  %v6017_v50 = vsel %vm5994_vm13, %v5984_v58, %v11485_v2  ;;  %v6049_v33 = vsel %vm6027_vm14, %v11495_v19, %v5512_v40  ;;  %v13263_v10 = vld [vmem:[#allocation394_spill] sm:$0xff]  ;;  %v13266_v16 = vld [vmem:[#allocation395_spill] sm:$0xff] }
 0x52a   : > { %v6296_v0 = vrot.slane %v6288_v21, %v13188_v34  ;;  %v6303_v13 = vrot.slane %v6289_v26, %v13188_v34  ;;  %v6143_v14 = vrot.slane %v6048_v61, %v13169_v57  ;;  %v6147_v28 = vrot.slane %v6049_v33, %v13169_v57  ;;  %v13267_v27 = vld [vmem:[#allocation367_spill] sm:$0xff] }
 0x52b   : > { %v5791_v51 = vsel %vm5763_vm6, %v5758_v53, %v13256_v23  ;;  %v5823_v22 = vsel %vm5796_vm7, %v5790_v4, %v13257_v11  ;;  %v5985_v2 = vsel %vm5961_vm12, %v5952_v42, %v13258_v31  ;;  %v6050_v19 = vsel %vm6027_vm14, %v6017_v50, %v5514_v25  ;;  %v5516_v30 = vpop.permute.xlu1 %5515  ;;  %v5518_v56 = vpop.permute.xlu0 %5517 }
 0x52c   : > { %v5856_v21 = vsel %vm5829_vm8, %v5823_v22, %v13259_v8  ;;  %v6018_v38 = vsel %vm5994_vm13, %v5985_v2, %v11524_v45  ;;  %v6304_v17 = vcombine.low %v6296_v0, %v6303_v13  ;;  %v6305_v15 = vcombine.low %v6143_v14, %v6147_v28  ;;  %v13268_v8 = vld [vmem:[#allocation23_spill] sm:$0xff] }
 0x52d   : > { %v5824_v55 = vsel %vm5796_vm7, %v5791_v51, %v13260_v48  ;;  %v5889_v1 = vsel %vm5862_vm9, %v5856_v21, %v13261_v5  ;;  %v6051_v49 = vsel %vm6027_vm14, %v6018_v38, %v5516_v30  ;;  %v6151_v45 = vrot.slane %v6050_v19, %v13169_v57 }
 0x52e   : > { %v5857_v9 = vsel %vm5829_vm8, %v5824_v55, %v13262_v32  ;;  %v5922_v62 = vsel %vm5895_vm10, %v5889_v1, %v13263_v10  ;;  %6369 = vst.msk [vmem:[%s11812_s3 + $0x20] sm:$0xff] %vm6364_vm15, %v6304_v17  ;;  %v6155_v59 = vrot.slane %v6051_v49, %v13169_v57  ;;  %v6052_v60 = vsel %vm6027_vm14, %v11534_v47, %v5518_v56 }
 0x52f   : > { %v5890_v54 = vsel %vm5862_vm9, %v5857_v9, %v13264_v43  ;;  %v5955_v18 = vsel %vm5928_vm11, %v5922_v62, %v13265_v6  ;;  %v5520_v63 = vpop.permute.xlu1 %5519  ;;  %v5522_v41 = vpop.permute.xlu0 %5521  ;;  %v6313_v47 = vrot.slane %v6305_v15, %v13188_v34  ;;  %v6159_v7 = vrot.slane %v6052_v60, %v13169_v57 }
 0x530   : > { %v5923_v61 = vsel %vm5895_vm10, %v5890_v54, %v13266_v16  ;;  %v5988_v24 = vsel %vm5961_vm12, %v5955_v18, %v10924_v29  ;;  %v6306_v53 = vcombine.low %v6151_v45, %v6155_v59  ;;  %v6053_v40 = vsel %vm6027_vm14, %v11573_v3, %v5520_v63 }
 0x531   : > { %v5956_v58 = vsel %vm5928_vm11, %v5923_v61, %v13267_v27  ;;  %v6021_v26 = vsel %vm5994_vm13, %v5988_v24, %v11563_v12  ;;  %v6163_v29 = vrot.slane %v6053_v40, %v13169_v57  ;;  %v6026_v21 = vsel %vm5994_vm13, %v13268_v8, %v11680_v46 }
 0x532   : > { %v6320_v25 = vrot.slane %v6306_v53, %v13188_v34  ;;  %v5989_v4 = vsel %vm5961_vm12, %v5956_v58, %v10952_v20  ;;  %v6054_v37 = vsel %vm6027_vm14, %v6021_v26, %v5522_v41 }
 0x533   : > { %v6022_v42 = vsel %vm5994_vm13, %v5989_v4, %v11604_v35  ;;  %v6322_v50 = vcombine.low %v6159_v7, %v6163_v29  ;;  %v5524_v33 = vpop.permute.xlu1 %5523  ;;  %v5526_v3 = vpop.permute.xlu0 %5525  ;;  %v6167_v13 = vrot.slane %v6054_v37, %v13169_v57  ;;  %v6025_v35 = vsel %vm5994_vm13, %v10991_v52, %v11639_v36 }
 0x534   : > { %v6321_v12 = vcombine.low %v6313_v47, %v6320_v25  ;;  %v6055_v0 = vsel %vm6027_vm14, %v6022_v42, %v5524_v33  ;;  %v6056_v20 = vsel %vm6027_vm14, %v11613_v44, %v5526_v3 }
 0x535   : > { %v6171_v14 = vrot.slane %v6055_v0, %v13169_v57  ;;  %v6330_v22 = vrot.slane %v6322_v50, %v13188_v34  ;;  %v6175_v2 = vrot.slane %v6056_v20, %v13169_v57 }
 0x536   : > { %6370 = vst.msk [vmem:[%s11812_s3 + $0x28] sm:$0xff] %vm6364_vm15, %v6321_v12 }
 0x537   : > { %v6323_v28 = vcombine.low %v6167_v13, %v6171_v14  ;;  %v5528_v23 = vpop.permute.xlu1 %5527  ;;  %v5530_v51 = vpop.permute.xlu0 %5529 }
 0x538   : > { %v6057_v11 = vsel %vm6027_vm14, %v11648_v39, %v5528_v23  ;;  %v6058_v19 = vsel %vm6027_vm14, %v6025_v35, %v5530_v51 }
 0x539   : > { %v6337_v31 = vrot.slane %v6323_v28, %v13188_v34  ;;  %v6179_v44 = vrot.slane %v6057_v11, %v13169_v57  ;;  %v6183_v17 = vrot.slane %v6058_v19, %v13169_v57 }
 0x53b   : > { %v6338_v52 = vcombine.low %v6330_v22, %v6337_v31  ;;  %v6339_v36 = vcombine.low %v6175_v2, %v6179_v44  ;;  %v5532_v38 = vpop.permute.xlu1 %5531 }
 0x53c   : > { %v6059_v39 = vsel %vm6027_vm14, %v6026_v21, %v5532_v38 }
 0x53d   : > { %6371 = vst.msk [vmem:[%s11812_s3 + $0x30] sm:$0xff] %vm6364_vm15, %v6338_v52  ;;  %v6187_v15 = vrot.slane %v6059_v39, %v13169_v57  ;;  %v6347_v56 = vrot.slane %v6339_v36, %v13188_v34 }
 0x53f   : > { %v6340_v30 = vcombine.low %v6183_v17, %v6187_v15 }
 0x541   : > { %v6354_v48 = vrot.slane %v6340_v30, %v13188_v34 }
 0x543   : > { %v6355_v55 = vcombine.low %v6347_v56, %v6354_v48 }
 0x545   : > { %6372 = vst.msk [vmem:[%s11812_s3 + $0x38] sm:$0xff] %vm6364_vm15, %v6355_v55 }
 0x546   : > { %s6512_s19 = sshll.u32 %s6711_s9, 1  ;;  %s6513_s23 = sshll.u32 %s6715_s10, 4 }
 0x547   : > { %s6386_s18 = sadd.s32 %s6513_s23, %s6512_s19  ;;  %s6399_s24 = sshll.u32 %s11812_s3, 4  ;;  %s6400_s24 = int_to_ptr.vmem [resolvable:$true] %s6399_s24 }
 0x548   : > { %s6514_s28 = sshll.u32 %s6386_s18, 7  ;;  %s6751_s26 = smov 256  }
 0x549   : > { %s6388_s2 = scalar_lea.hbm %s12136_s1, %s6514_s28  ;;  %6519 = sst [smem:[#allocation7]] (%p6833_p9), %s6751_s26 }
 0x54a   : > { %s6752_s30 = smov 512   ;;  %s6753_s4 = smov 2  }
 0x54b   : > { %6520 = sst [smem:[#allocation7 + $0x1]] (%p6833_p9), %s6752_s30  ;;  %s6754_s9 = smov 128  }
 0x54c   : > { %6521 = sst [smem:[#allocation7 + $0x2]] (%p6833_p9), %s6753_s4  ;;  %s6755_s10 = smov 8  }
 0x54d   : > { %6522 = sst [smem:[#allocation7 + $0x3]] (%p6833_p9), %s6754_s9  ;;  %s6756_s5 = smov 131072  }
 0x54e   : > { %6523 = sst [smem:[#allocation7 + $0x4]] (%p6833_p9), %s6754_s9  ;;  %s6757_s14 = smov 0  }
 0x54f   : > { %6524 = sst [smem:[#allocation7 + $0x5]] (%p6833_p9), %s6755_s10 }
 0x550   : > { %6525 = dma.general (%p6833_p9), %s6400_s24, 1024, %s6388_s2, %s6374_s15, %s6756_s5, [#allocation7], %s6757_s14, 0  }
 0x551 PF: > { %p6536_p8 = scmp.ge.s32.totalorder %s6727_s13, 2  ;;  %s6427_s21 = sand.u32 1, %s6699_s6  }
 0x552   : > { %s6428_s3 = scalar_lea.sflag [#allocation4], %s6427_s21 }
 0x553   : > { %p6532_p0 = pnand %p6536_p8, %p6839_p12 }
 0x555   : > { %p6533_p2 = pneg %p6532_p0 }
 0x557   : > { %6694 = dma.done.wait (%p6533_p2), %s6428_s3, 1024  }
 0x558   : > { %6696 = vsyncadd (%p6533_p2), %s6428_s3, 4294966272  ;;  %s17_s13 = sadd.s32 1, %s6727_s13   ;;  %s13269_s6 = smov %s6703_s7 }
 0x559   : > { %p14_p4 = scmp.ge.s32.totalorder %s17_s13, 6   ;;  %s13270_s7 = smov %s6707_s8 }
 0x55a   : > { %s13271_s8 = smov %s6846_s27  ;;  %s13272_s9 = smov %s6719_s11 }
 0x55b   : > { %s13273_s10 = smov %s6723_s12  ;;  %s13274_s11 = smov %s13277_s16 }
 0x55c   : > { %s13275_s12 = smov %s13281_s17  ;;  %16 = sbr.rel (!%p14_p4) target bundleno = 7 (0x7), region = 74 }
 0x561   :  { %6433 = vsyncpa [#allocation3], 1 }
 0x562   :  { %6435 = vsyncpa [#allocation3 + $0x1], 1 }
 0x563   :  { %6436 = vsyncpa [#allocation4], 1 }
 0x564   :  { %6438 = vsyncpa [#allocation4 + $0x1], 1 }

</bundles_post_ra>
